<compile_context>
chip_gen: v6e
topology: v6e:2x2x1
jax: 0.10.0
libtpu: 0.0.40
codegen_flags: <defaults>
</compile_context>

<pallas_src>
import jax
import jax.numpy as jnp
from jax import lax
from jax.experimental import pallas as pl
from jax.experimental.pallas import tpu as pltpu


def _round_up(x, m):
    return (x + m - 1) // m * m


def _skipgram_kernel(tw_ref, oth_ref, tgt_tbl_ref, ctx_tbl_ref, scores_ref):
    """One batch tile.

    tw_ref:      (1, TB)     int32  target-word ids (batch on lanes)
    oth_ref:     (K+1, TB)   int32  row 0 = context id, rows 1..K = negatives
    tgt_tbl_ref: (V, D)             target embedding table (VMEM resident)
    ctx_tbl_ref: (V, D)             context embedding table (VMEM resident)
    scores_ref:  (K+1, TB)   f32    row 0 = positive score, rows 1..K = negatives
    """
    V, _ = tgt_tbl_ref.shape
    kp1, tb = scores_ref.shape

    tgt_tbl = tgt_tbl_ref[...]
    ctx_tbl = ctx_tbl_ref[...]

    # Vocab-id grid, hoisted out of the slot loop (JAX doesn't CSE broadcasts).
    vocab_iota = lax.broadcasted_iota(jnp.int32, (V, tb), 0)          # (V, TB)

    def gather_t(tbl, idx_row):
        # idx_row: (1, TB) int32  ->  one-hot (V, TB)  ->  (D, TB) embeddings.
        # One-hot MXU gather: fully vectorized, no per-row DMA descriptors.
        one_hot = (vocab_iota == idx_row).astype(tbl.dtype)           # (V, TB)
        return lax.dot_general(
            tbl, one_hot,
            dimension_numbers=(((0,), (0,)), ((), ())),               # tbl^T-contract
            preferred_element_type=jnp.float32,
            precision=lax.Precision.HIGHEST)                          # (D, TB) f32

    tgt_t = gather_t(tgt_tbl, tw_ref[...])                            # (D, TB) f32

    # Slot-major score compute: live set is one (D, TB) slab per slot; the
    # sublane reduce directly produces lane-dense (1, TB) rows.
    rows = []
    for j in range(kp1):                                              # K+1 is small & static
        emb_t = gather_t(ctx_tbl, oth_ref[j:j + 1, :])                # (D, TB) f32
        rows.append(jnp.sum(tgt_t * emb_t, axis=0, keepdims=True))    # (1, TB)

    # Single lane-dense (K+1, TB) store (last dim multiple of 128 -> unmasked vst).
    scores_ref[...] = jnp.concatenate(rows, axis=0)


def _pick_tile(batch, tile_b):
    bp128 = _round_up(batch, 128)
    if tile_b is None:
        tile_b = 256
    tile_b = _round_up(max(128, min(tile_b, bp128)), 128)
    # Keep >=2 grid steps when the batch allows it so dimension_semantics
    # ("parallel",) can shard the batch across v7x's two TensorCores.
    if bp128 // tile_b < 2 and bp128 >= 256:
        tile_b = _round_up(bp128 // 2, 128)
    return tile_b, _round_up(batch, tile_b)


def skipgram_forward(params, target_words, context_words, negative_samples,
                     *, tile_b=None):
    """Returns (positive_score (B,), negative_score (B, K)) like the nn.Module."""
    tgt_tbl = params["target_embedding"]      # (V, D)
    ctx_tbl = params["context_embedding"]     # (V, D)
    assert tgt_tbl.shape == ctx_tbl.shape
    V, D = tgt_tbl.shape
    B = target_words.shape[0]
    K = negative_samples.shape[1]

    tile_b, Bp = _pick_tile(B, tile_b)
    pad = Bp - B

    # Lane-oriented index layout: batch along the last (lane) dim.  Row 0 of
    # `others` is the context word (positive pair), rows 1..K the negatives —
    # all gathered from the context table.  Pad with valid id 0; padded columns
    # are sliced off below.
    tw = jnp.pad(target_words.astype(jnp.int32), (0, pad))[None, :]            # (1, Bp)
    others = jnp.concatenate(
        [context_words.astype(jnp.int32)[None, :],
         negative_samples.astype(jnp.int32).T], axis=0)                        # (K+1, B)
    others = jnp.pad(others, ((0, 0), (0, pad)))                               # (K+1, Bp)

    # Demand-driven scoped-VMEM limit (defaults are only 16/32 MiB on v5e/v6e+).
    table_bytes = (tgt_tbl.size * tgt_tbl.dtype.itemsize
                   + ctx_tbl.size * ctx_tbl.dtype.itemsize)
    vmem_limit = int(min(100 << 20, max(32 << 20, 2 * table_bytes + (8 << 20))))

    scores_t = pl.pallas_call(
        _skipgram_kernel,
        out_shape=jax.ShapeDtypeStruct((K + 1, Bp), jnp.float32),
        grid=(Bp // tile_b,),
        in_specs=[
            pl.BlockSpec((1, tile_b), lambda i: (0, i)),          # target ids
            pl.BlockSpec((K + 1, tile_b), lambda i: (0, i)),      # ctx + neg ids
            pl.BlockSpec((V, D), lambda i: (0, 0)),               # target table (VMEM resident)
            pl.BlockSpec((V, D), lambda i: (0, 0)),               # context table (VMEM resident)
        ],
        out_specs=pl.BlockSpec((K + 1, tile_b), lambda i: (0, i)),
        compiler_params=pltpu.CompilerParams(
            dimension_semantics=("parallel",),
            vmem_limit_bytes=vmem_limit),
    )(tw, others, tgt_tbl, ctx_tbl)

    scores = scores_t[:, :B]                  # (K+1, B) lane-dense in-kernel layout
    return scores[0], scores[1:].T            # (B,), (B, K)


def init_params(key, vocab_size, embedding_dim, dtype=jnp.float32):
    # xavier_uniform_: U(-a, a), a = sqrt(6 / (fan_in + fan_out))
    bound = (6.0 / (vocab_size + embedding_dim)) ** 0.5
    k1, k2 = jax.random.split(key)
    return {
        "target_embedding": jax.random.uniform(
            k1, (vocab_size, embedding_dim), jnp.float32, -bound, bound
        ).astype(dtype),
        "context_embedding": jax.random.uniform(
            k2, (vocab_size, embedding_dim), jnp.float32, -bound, bound
        ).astype(dtype),
    }


if __name__ == "__main__":
    vocab_size = 50
    embedding_dim = 32   # NOTE: pad D to 128 at the model level for prod lane utilization.
    batch = 8
    num_neg = 8

    key = jax.random.PRNGKey(0)
    kp, kt, kc, kn = jax.random.split(key, 4)

    params = init_params(kp, vocab_size, embedding_dim)
    target_words = jax.random.randint(kt, (batch,), 0, vocab_size, jnp.int32)
    context_words = jax.random.randint(kc, (batch,), 0, vocab_size, jnp.int32)
    negative_samples = jax.random.randint(
        kn, (batch, num_neg), 0, vocab_size, jnp.int32)

    pos_score, neg_score = jax.jit(skipgram_forward)(
        params, target_words, context_words, negative_samples)
    jax.block_until_ready((pos_score, neg_score))

    # Pure-JAX reference check.
    tgt = jnp.take(params["target_embedding"], target_words, axis=0)
    ctx = jnp.take(params["context_embedding"], context_words, axis=0)
    neg = jnp.take(params["context_embedding"], negative_samples, axis=0)
    pos_ref = jnp.sum(tgt * ctx, axis=1)
    neg_ref = jnp.einsum("bkd,bd->bk", neg, tgt)

    assert pos_score.shape == (batch,)
    assert neg_score.shape == (batch, num_neg)
    # Tolerance allows for reduced-precision MXU passes in the one-hot gather;
    # with HIGHEST precision the gather is exact and errors are ~1e-6.
    assert jnp.allclose(pos_score, pos_ref, atol=1e-2, rtol=1e-2)
    assert jnp.allclose(neg_score, neg_ref, atol=1e-2, rtol=1e-2)

    print("KERNEL_OK")
</pallas_src>

<mosaic_0001>
module attributes {stable_mosaic.version = 11 : i64} {
  func.func @_skipgram_kernel(%arg0: i32, %arg1: memref<1x128xi32, #tpu.memory_space<vmem>>, %arg2: memref<9x128xi32, #tpu.memory_space<vmem>>, %arg3: memref<50x32xf32, #tpu.memory_space<vmem>>, %arg4: memref<50x32xf32, #tpu.memory_space<vmem>>, %arg5: memref<9x128xf32, #tpu.memory_space<vmem>>) attributes {dimension_semantics = [#tpu.dimension_semantics<parallel>], iteration_bounds = array<i64: 1>, scalar_prefetch = 0 : i64, scratch_operands = 0 : i64, tpu.core_type = #tpu.core_type<tc>, window_params = [{transform_indices = @transform_0, window_bounds = array<i64: 1, 128>}, {transform_indices = @transform_1, window_bounds = array<i64: 9, 128>}, {pipeline_mode = #tpu.pipeline_mode<synchronous>, transform_indices = @transform_2, window_bounds = array<i64: 50, 32>}, {pipeline_mode = #tpu.pipeline_mode<synchronous>, transform_indices = @transform_3, window_bounds = array<i64: 50, 32>}, {transform_indices = @transform_4, window_bounds = array<i64: 9, 128>}]} {
    %c0 = arith.constant 0 : index
    %c0_0 = arith.constant 0 : index
    %0 = vector.load %arg3[%c0, %c0_0] : memref<50x32xf32, #tpu.memory_space<vmem>>, vector<50x32xf32>
    %c0_1 = arith.constant 0 : index
    %c0_2 = arith.constant 0 : index
    %1 = vector.load %arg4[%c0_1, %c0_2] : memref<50x32xf32, #tpu.memory_space<vmem>>, vector<50x32xf32>
    %2 = tpu.iota {dimensions = array<i32: 0>} : vector<50x128xi32>
    %c0_3 = arith.constant 0 : index
    %c0_4 = arith.constant 0 : index
    %3 = vector.load %arg1[%c0_3, %c0_4] : memref<1x128xi32, #tpu.memory_space<vmem>>, vector<1x128xi32>
    %4 = vector.broadcast %3 : vector<1x128xi32> to vector<50x128xi32>
    %5 = arith.cmpi eq, %2, %4 : vector<50x128xi32>
    %6 = arith.extui %5 : vector<50x128xi1> to vector<50x128xi32>
    %7 = arith.sitofp %6 : vector<50x128xi32> to vector<50x128xf32>
    %cst = arith.constant dense<0.000000e+00> : vector<32x128xf32>
    %8 = tpu.matmul %0, %7, %cst {dimension_numbers = #tpu.dot_dimension_numbers<[0], [0], [1], [1], [0, 1, 1, 1], [], []>, precision = #tpu.contract_precision<fp32>} : vector<50x32xf32>, vector<50x128xf32>, vector<32x128xf32> -> vector<32x128xf32>
    %c0_5 = arith.constant 0 : index
    %c0_6 = arith.constant 0 : index
    %9 = vector.load %arg2[%c0_5, %c0_6] : memref<9x128xi32, #tpu.memory_space<vmem>>, vector<1x128xi32>
    %10 = vector.broadcast %9 : vector<1x128xi32> to vector<50x128xi32>
    %11 = arith.cmpi eq, %2, %10 : vector<50x128xi32>
    %12 = arith.extui %11 : vector<50x128xi1> to vector<50x128xi32>
    %13 = arith.sitofp %12 : vector<50x128xi32> to vector<50x128xf32>
    %cst_7 = arith.constant dense<0.000000e+00> : vector<32x128xf32>
    %14 = tpu.matmul %1, %13, %cst_7 {dimension_numbers = #tpu.dot_dimension_numbers<[0], [0], [1], [1], [0, 1, 1, 1], [], []>, precision = #tpu.contract_precision<fp32>} : vector<50x32xf32>, vector<50x128xf32>, vector<32x128xf32> -> vector<32x128xf32>
    %15 = arith.mulf %8, %14 : vector<32x128xf32>
    %cst_8 = arith.constant dense<0.000000e+00> : vector<128xf32>
    %16 = vector.multi_reduction <add>, %15, %cst_8 [0] : vector<32x128xf32> to vector<128xf32>
    %17 = vector.shape_cast %16 : vector<128xf32> to vector<1x128xf32>
    %c1 = arith.constant 1 : index
    %c0_9 = arith.constant 0 : index
    %18 = vector.load %arg2[%c1, %c0_9] : memref<9x128xi32, #tpu.memory_space<vmem>>, vector<1x128xi32>
    %19 = vector.broadcast %18 : vector<1x128xi32> to vector<50x128xi32>
    %20 = arith.cmpi eq, %2, %19 : vector<50x128xi32>
    %21 = arith.extui %20 : vector<50x128xi1> to vector<50x128xi32>
    %22 = arith.sitofp %21 : vector<50x128xi32> to vector<50x128xf32>
    %cst_10 = arith.constant dense<0.000000e+00> : vector<32x128xf32>
    %23 = tpu.matmul %1, %22, %cst_10 {dimension_numbers = #tpu.dot_dimension_numbers<[0], [0], [1], [1], [0, 1, 1, 1], [], []>, precision = #tpu.contract_precision<fp32>} : vector<50x32xf32>, vector<50x128xf32>, vector<32x128xf32> -> vector<32x128xf32>
    %24 = arith.mulf %8, %23 : vector<32x128xf32>
    %cst_11 = arith.constant dense<0.000000e+00> : vector<128xf32>
    %25 = vector.multi_reduction <add>, %24, %cst_11 [0] : vector<32x128xf32> to vector<128xf32>
    %26 = vector.shape_cast %25 : vector<128xf32> to vector<1x128xf32>
    %c2 = arith.constant 2 : index
    %c0_12 = arith.constant 0 : index
    %27 = vector.load %arg2[%c2, %c0_12] : memref<9x128xi32, #tpu.memory_space<vmem>>, vector<1x128xi32>
    %28 = vector.broadcast %27 : vector<1x128xi32> to vector<50x128xi32>
    %29 = arith.cmpi eq, %2, %28 : vector<50x128xi32>
    %30 = arith.extui %29 : vector<50x128xi1> to vector<50x128xi32>
    %31 = arith.sitofp %30 : vector<50x128xi32> to vector<50x128xf32>
    %cst_13 = arith.constant dense<0.000000e+00> : vector<32x128xf32>
    %32 = tpu.matmul %1, %31, %cst_13 {dimension_numbers = #tpu.dot_dimension_numbers<[0], [0], [1], [1], [0, 1, 1, 1], [], []>, precision = #tpu.contract_precision<fp32>} : vector<50x32xf32>, vector<50x128xf32>, vector<32x128xf32> -> vector<32x128xf32>
    %33 = arith.mulf %8, %32 : vector<32x128xf32>
    %cst_14 = arith.constant dense<0.000000e+00> : vector<128xf32>
    %34 = vector.multi_reduction <add>, %33, %cst_14 [0] : vector<32x128xf32> to vector<128xf32>
    %35 = vector.shape_cast %34 : vector<128xf32> to vector<1x128xf32>
    %c3 = arith.constant 3 : index
    %c0_15 = arith.constant 0 : index
    %36 = vector.load %arg2[%c3, %c0_15] : memref<9x128xi32, #tpu.memory_space<vmem>>, vector<1x128xi32>
    %37 = vector.broadcast %36 : vector<1x128xi32> to vector<50x128xi32>
    %38 = arith.cmpi eq, %2, %37 : vector<50x128xi32>
    %39 = arith.extui %38 : vector<50x128xi1> to vector<50x128xi32>
    %40 = arith.sitofp %39 : vector<50x128xi32> to vector<50x128xf32>
    %cst_16 = arith.constant dense<0.000000e+00> : vector<32x128xf32>
    %41 = tpu.matmul %1, %40, %cst_16 {dimension_numbers = #tpu.dot_dimension_numbers<[0], [0], [1], [1], [0, 1, 1, 1], [], []>, precision = #tpu.contract_precision<fp32>} : vector<50x32xf32>, vector<50x128xf32>, vector<32x128xf32> -> vector<32x128xf32>
    %42 = arith.mulf %8, %41 : vector<32x128xf32>
    %cst_17 = arith.constant dense<0.000000e+00> : vector<128xf32>
    %43 = vector.multi_reduction <add>, %42, %cst_17 [0] : vector<32x128xf32> to vector<128xf32>
    %44 = vector.shape_cast %43 : vector<128xf32> to vector<1x128xf32>
    %c4 = arith.constant 4 : index
    %c0_18 = arith.constant 0 : index
    %45 = vector.load %arg2[%c4, %c0_18] : memref<9x128xi32, #tpu.memory_space<vmem>>, vector<1x128xi32>
    %46 = vector.broadcast %45 : vector<1x128xi32> to vector<50x128xi32>
    %47 = arith.cmpi eq, %2, %46 : vector<50x128xi32>
    %48 = arith.extui %47 : vector<50x128xi1> to vector<50x128xi32>
    %49 = arith.sitofp %48 : vector<50x128xi32> to vector<50x128xf32>
    %cst_19 = arith.constant dense<0.000000e+00> : vector<32x128xf32>
    %50 = tpu.matmul %1, %49, %cst_19 {dimension_numbers = #tpu.dot_dimension_numbers<[0], [0], [1], [1], [0, 1, 1, 1], [], []>, precision = #tpu.contract_precision<fp32>} : vector<50x32xf32>, vector<50x128xf32>, vector<32x128xf32> -> vector<32x128xf32>
    %51 = arith.mulf %8, %50 : vector<32x128xf32>
    %cst_20 = arith.constant dense<0.000000e+00> : vector<128xf32>
    %52 = vector.multi_reduction <add>, %51, %cst_20 [0] : vector<32x128xf32> to vector<128xf32>
    %53 = vector.shape_cast %52 : vector<128xf32> to vector<1x128xf32>
    %c5 = arith.constant 5 : index
    %c0_21 = arith.constant 0 : index
    %54 = vector.load %arg2[%c5, %c0_21] : memref<9x128xi32, #tpu.memory_space<vmem>>, vector<1x128xi32>
    %55 = vector.broadcast %54 : vector<1x128xi32> to vector<50x128xi32>
    %56 = arith.cmpi eq, %2, %55 : vector<50x128xi32>
    %57 = arith.extui %56 : vector<50x128xi1> to vector<50x128xi32>
    %58 = arith.sitofp %57 : vector<50x128xi32> to vector<50x128xf32>
    %cst_22 = arith.constant dense<0.000000e+00> : vector<32x128xf32>
    %59 = tpu.matmul %1, %58, %cst_22 {dimension_numbers = #tpu.dot_dimension_numbers<[0], [0], [1], [1], [0, 1, 1, 1], [], []>, precision = #tpu.contract_precision<fp32>} : vector<50x32xf32>, vector<50x128xf32>, vector<32x128xf32> -> vector<32x128xf32>
    %60 = arith.mulf %8, %59 : vector<32x128xf32>
    %cst_23 = arith.constant dense<0.000000e+00> : vector<128xf32>
    %61 = vector.multi_reduction <add>, %60, %cst_23 [0] : vector<32x128xf32> to vector<128xf32>
    %62 = vector.shape_cast %61 : vector<128xf32> to vector<1x128xf32>
    %c6 = arith.constant 6 : index
    %c0_24 = arith.constant 0 : index
    %63 = vector.load %arg2[%c6, %c0_24] : memref<9x128xi32, #tpu.memory_space<vmem>>, vector<1x128xi32>
    %64 = vector.broadcast %63 : vector<1x128xi32> to vector<50x128xi32>
    %65 = arith.cmpi eq, %2, %64 : vector<50x128xi32>
    %66 = arith.extui %65 : vector<50x128xi1> to vector<50x128xi32>
    %67 = arith.sitofp %66 : vector<50x128xi32> to vector<50x128xf32>
    %cst_25 = arith.constant dense<0.000000e+00> : vector<32x128xf32>
    %68 = tpu.matmul %1, %67, %cst_25 {dimension_numbers = #tpu.dot_dimension_numbers<[0], [0], [1], [1], [0, 1, 1, 1], [], []>, precision = #tpu.contract_precision<fp32>} : vector<50x32xf32>, vector<50x128xf32>, vector<32x128xf32> -> vector<32x128xf32>
    %69 = arith.mulf %8, %68 : vector<32x128xf32>
    %cst_26 = arith.constant dense<0.000000e+00> : vector<128xf32>
    %70 = vector.multi_reduction <add>, %69, %cst_26 [0] : vector<32x128xf32> to vector<128xf32>
    %71 = vector.shape_cast %70 : vector<128xf32> to vector<1x128xf32>
    %c7 = arith.constant 7 : index
    %c0_27 = arith.constant 0 : index
    %72 = vector.load %arg2[%c7, %c0_27] : memref<9x128xi32, #tpu.memory_space<vmem>>, vector<1x128xi32>
    %73 = vector.broadcast %72 : vector<1x128xi32> to vector<50x128xi32>
    %74 = arith.cmpi eq, %2, %73 : vector<50x128xi32>
    %75 = arith.extui %74 : vector<50x128xi1> to vector<50x128xi32>
    %76 = arith.sitofp %75 : vector<50x128xi32> to vector<50x128xf32>
    %cst_28 = arith.constant dense<0.000000e+00> : vector<32x128xf32>
    %77 = tpu.matmul %1, %76, %cst_28 {dimension_numbers = #tpu.dot_dimension_numbers<[0], [0], [1], [1], [0, 1, 1, 1], [], []>, precision = #tpu.contract_precision<fp32>} : vector<50x32xf32>, vector<50x128xf32>, vector<32x128xf32> -> vector<32x128xf32>
    %78 = arith.mulf %8, %77 : vector<32x128xf32>
    %cst_29 = arith.constant dense<0.000000e+00> : vector<128xf32>
    %79 = vector.multi_reduction <add>, %78, %cst_29 [0] : vector<32x128xf32> to vector<128xf32>
    %80 = vector.shape_cast %79 : vector<128xf32> to vector<1x128xf32>
    %c8 = arith.constant 8 : index
    %c0_30 = arith.constant 0 : index
    %81 = vector.load %arg2[%c8, %c0_30] : memref<9x128xi32, #tpu.memory_space<vmem>>, vector<1x128xi32>
    %82 = vector.broadcast %81 : vector<1x128xi32> to vector<50x128xi32>
    %83 = arith.cmpi eq, %2, %82 : vector<50x128xi32>
    %84 = arith.extui %83 : vector<50x128xi1> to vector<50x128xi32>
    %85 = arith.sitofp %84 : vector<50x128xi32> to vector<50x128xf32>
    %cst_31 = arith.constant dense<0.000000e+00> : vector<32x128xf32>
    %86 = tpu.matmul %1, %85, %cst_31 {dimension_numbers = #tpu.dot_dimension_numbers<[0], [0], [1], [1], [0, 1, 1, 1], [], []>, precision = #tpu.contract_precision<fp32>} : vector<50x32xf32>, vector<50x128xf32>, vector<32x128xf32> -> vector<32x128xf32>
    %87 = arith.mulf %8, %86 : vector<32x128xf32>
    %cst_32 = arith.constant dense<0.000000e+00> : vector<128xf32>
    %88 = vector.multi_reduction <add>, %87, %cst_32 [0] : vector<32x128xf32> to vector<128xf32>
    %89 = vector.shape_cast %88 : vector<128xf32> to vector<1x128xf32>
    %90 = tpu.concatenate %17, %26, %35, %44, %53, %62, %71, %80, %89 in 0 : vector<1x128xf32>, vector<1x128xf32>, vector<1x128xf32>, vector<1x128xf32>, vector<1x128xf32>, vector<1x128xf32>, vector<1x128xf32>, vector<1x128xf32>, vector<1x128xf32> -> vector<9x128xf32>
    %c0_33 = arith.constant 0 : index
    %c0_34 = arith.constant 0 : index
    %91 = vector.load %arg5[%c0_33, %c0_34] : memref<9x128xf32, #tpu.memory_space<vmem>>, vector<9x128xf32>
    tpu.vector_store %arg5[%c0_33, %c0_34], %90 {strides = array<i32>} : memref<9x128xf32, #tpu.memory_space<vmem>>, vector<9x128xf32>,
    return
  }
  func.func @transform_0(%arg0: i32) -> (i32, i32) {
    %c0_i32 = arith.constant 0 : i32
    %c0_i32_0 = arith.constant 0 : i32
    return %c0_i32, %arg0 : i32, i32
  }
  func.func @transform_1(%arg0: i32) -> (i32, i32) {
    %c0_i32 = arith.constant 0 : i32
    %c0_i32_0 = arith.constant 0 : i32
    return %c0_i32, %arg0 : i32, i32
  }
  func.func @transform_2(%arg0: i32) -> (i32, i32) {
    %c0_i32 = arith.constant 0 : i32
    %c0_i32_0 = arith.constant 0 : i32
    %c0_i32_1 = arith.constant 0 : i32
    return %c0_i32, %c0_i32_0 : i32, i32
  }
  func.func @transform_3(%arg0: i32) -> (i32, i32) {
    %c0_i32 = arith.constant 0 : i32
    %c0_i32_0 = arith.constant 0 : i32
    %c0_i32_1 = arith.constant 0 : i32
    return %c0_i32, %c0_i32_0 : i32, i32
  }
  func.func @transform_4(%arg0: i32) -> (i32, i32) {
    %c0_i32 = arith.constant 0 : i32
    %c0_i32_0 = arith.constant 0 : i32
    return %c0_i32, %arg0 : i32, i32
  }
}

</mosaic_0001>

<bundles_post_ra>
// kernel: skipgram_forward.1
= control target key start
LH: loop header
LB: loop body
LE: loop exit
PB: predicated region body
PF: predicated region fallthrough
CT: control target
= control target key end

     0   :  { %v31_v0 = vlaneseq  ;;  %vm110_vm0 = vcmask 1041408   ;;  %v12365_v14 = vmov 0.0   ;;  %v12367_v31 = vmov 1.0   ;;  %s12360_s2 = inlined_call_operand.vmem [shape: f32[50,32], index: 2, kind: input, shape index: {}]   ;;  %s12361_s3 = inlined_call_operand.vmem [shape: f32[50,32], index: 3, kind: input, shape index: {}]   ;;  %s12362_s0 = inlined_call_operand.vmem [shape: s32[1,128], index: 0, kind: input, shape index: {}]   ;;  %s12363_s1 = inlined_call_operand.vmem [shape: s32[9,128], index: 1, kind: input, shape index: {}]   ;;  %s12364_s4 = inlined_call_operand.vmem [shape: f32[9,128], index: 4, kind: output, shape index: {}]  }
   0x1   :  { %v17_v1 = vld [vmem:[%s12360_s2] sm:$0xff]  ;;  %v18_v3 = vld [vmem:[%s12360_s2 + $0x8] sm:$0xff]  ;;  %v19_v13 = vld [vmem:[%s12360_s2 + $0x10] sm:$0xff]  ;;  %vm97_vm8 = vcmask 408576  }
   0x2   :  { %65 = vxpose.xlu0.b32.start [1/7] (short) (narrow) %v17_v1, 32  ;;  %v9267_v2 = vshrl.u32 %v31_v0, 7  ;;  %v24_v4 = vld [vmem:[%s12361_s3] sm:$0xff]  ;;  %v25_v7 = vld [vmem:[%s12361_s3 + $0x8] sm:$0xff]  ;;  %v26_v23 = vld [vmem:[%s12361_s3 + $0x10] sm:$0xff] }
   0x3   :  { %793 = vxpose.xlu1.b32.start [1/7] (short) (narrow) %v24_v4, 32  ;;  %v7085_v8 = vld [vmem:[%s12362_s0] ss:$0 sm:$0xff]  ;;  %v20_v33 = vld [vmem:[%s12360_s2 + $0x18] sm:$0xff]  ;;  %v22_v57 = vld [vmem:[%s12360_s2 + $0x28] sm:$0xff] }
   0x4   :  { %v9276_v5 = vadd.s32 48, %v9267_v2  ;;  %v9279_v6 = vadd.s32 40, %v9267_v2  ;;  %v9288_v9 = vadd.s32 32, %v9267_v2  ;;  %v9297_v11 = vadd.s32 24, %v9267_v2  ;;  %v27_v42 = vld [vmem:[%s12361_s3 + $0x18] sm:$0xff]  ;;  %v21_v48 = vld [vmem:[%s12360_s2 + $0x20] sm:$0xff] }
   0x5   :  { %v9300_v12 = vadd.s32 16, %v9267_v2  ;;  %v9317_v18 = vadd.s32 8, %v9267_v2  ;;  %vm9394_vm7 = vcmp.eq.s32.totalorder %v9267_v2, %v7085_v8  ;;  %v28_v53 = vld [vmem:[%s12361_s3 + $0x20] sm:$0xff]  ;;  %v29_v60 = vld [vmem:[%s12361_s3 + $0x28] sm:$0xff]  ;;  %v23_v63 = vld [vmem:[%s12360_s2 + $0x30] sm:$0x3] }
   0x6   :  { %66 = vxpose.xlu0.b32.cont [2/7] (short) (narrow) %v18_v3, 32  ;;  %vm50_vm1 = vcmp.eq.s32.totalorder %v9276_v5, %v7085_v8  ;;  %vm9292_vm2 = vcmp.eq.s32.totalorder %v9279_v6, %v7085_v8  ;;  %vm9312_vm3 = vcmp.eq.s32.totalorder %v9288_v9, %v7085_v8  ;;  %vm9327_vm4 = vcmp.eq.s32.totalorder %v9297_v11, %v7085_v8  ;;  %v30_v1 = vld [vmem:[%s12361_s3 + $0x30] sm:$0x3] }
   0x7   :  { %v9306_v15 = vsel %vm50_vm1, 1.0, %v12365_v14  ;;  %v7091_v16 = vsel %vm9292_vm2, 1.0, %v12365_v14  ;;  %12401 = vst [vmem:[#allocation2_spill] sm:$0xff] %v9317_v18  ;;  %794 = vxpose.xlu1.b32.cont [2/7] (short) (narrow) %v25_v7, 32  ;;  %v7090_v21 = vsel %vm9312_vm3, 1.0, %v12365_v14  ;;  %v7089_v26 = vsel %vm9327_vm4, 1.0, %v12365_v14 }
   0x8   :  { %v112_v19 = vsel %vm110_vm0, %v9306_v15, 0  ;;  %v9321_v20 = vsub.f32 %v7091_v16, %v7091_v16  ;;  %8035 = vmatprep.subr.msk.mxu0 %vm110_vm0, %v9306_v15  ;;  %v9338_v25 = vsub.f32 %v7090_v21, %v7090_v21  ;;  %vm9344_vm5 = vcmp.eq.s32.totalorder %v9300_v12, %v7085_v8 }
   0x9   :  { %v9336_v24 = vsub.f32 %v112_v19, %v112_v19  ;;  %8036 = vmatpush3.msk.msra.mxu0 %vm110_vm0, %v9306_v15  ;;  %v9353_v29 = vsub.f32 %v7089_v26, %v7089_v26  ;;  %v7088_v30 = vsel %vm9344_vm5, 1.0, %v12365_v14  ;;  %vm9362_vm6 = vcmp.eq.s32.totalorder %v9317_v18, %v7085_v8 }
   0xa   :  { %67 = vxpose.xlu0.b32.cont [3/7] (short) (narrow) %v19_v13, 32  ;;  %v9351_v28 = vand.u32 4294901760, %v9321_v20  ;;  %8037 = vmatprep.subr.msk.mxu0 %vm9292_vm2, %v12367_v31  ;;  %v9373_v35 = vand.u32 4294901760, %v9338_v25  ;;  %v9375_v36 = vsub.f32 %v7088_v30, %v7088_v30  ;;  %v7087_v37 = vsel %vm9362_vm6, 1.0, %v12365_v14 }
   0xb   :  { %v9370_v34 = vand.u32 4294901760, %v9336_v24  ;;  %8038 = vmatpush3.msk.msra.mxu0 %vm9292_vm2, %v12367_v31  ;;  %795 = vxpose.xlu1.b32.cont [3/7] (short) (narrow) %v26_v23, 32  ;;  %v9386_v39 = vand.u32 4294901760, %v9353_v29  ;;  %v9388_v40 = vsub.f32 %v7087_v37, %v7087_v37  ;;  %v7086_v46 = vsel %vm9394_vm7, 1.0, %v12365_v14 }
   0xc   :  { %v255_v38 = vsub.f32 %v9321_v20, %v9351_v28  ;;  %8039 = vmatprep.subr.msk.mxu0 %vm9312_vm3, %v12367_v31  ;;  %v262_v44 = vsub.f32 %v9338_v25, %v9373_v35  ;;  %v9406_v45 = vand.u32 4294901760, %v9375_v36  ;;  %v9414_v47 = vsub.f32 %v7086_v46, %v7086_v46 }
   0xd   :  { %v248_v43 = vsub.f32 %v9336_v24, %v9370_v34  ;;  %8040 = vmatpush3.msk.msra.mxu0 %vm9312_vm3, %v12367_v31  ;;  %v269_v51 = vsub.f32 %v9353_v29, %v9386_v39  ;;  %v9425_v52 = vand.u32 4294901760, %v9388_v40 }
   0xe   :  { %68 = vxpose.xlu0.b32.cont [4/7] (short) (narrow) %v20_v33, 32  ;;  %8041 = vmatprep.subr.msk.mxu0 %vm9327_vm4, %v12367_v31  ;;  %v256_v50 = vand.u32 4294901760, %v255_v38  ;;  %v263_v54 = vand.u32 4294901760, %v262_v44  ;;  %v276_v55 = vsub.f32 %v9375_v36, %v9406_v45  ;;  %v9439_v56 = vand.u32 4294901760, %v9414_v47 }
   0xf   :  { %v249_v49 = vand.u32 4294901760, %v248_v43  ;;  %8042 = vmatpush3.msk.msra.mxu0 %vm9327_vm4, %v12367_v31  ;;  %796 = vxpose.xlu1.b32.cont [4/7] (short) (narrow) %v27_v42, 32  ;;  %v270_v58 = vand.u32 4294901760, %v269_v51  ;;  %v283_v59 = vsub.f32 %v9388_v40, %v9425_v52 }
  0x10   :  { %8043 = vmatprep.subr.msk.mxu0 %vm9344_vm5, %v12367_v31  ;;  %v277_v61 = vand.u32 4294901760, %v276_v55  ;;  %v290_v62 = vsub.f32 %v9414_v47, %v9439_v56 }
  0x11   :  { %8055 = vmatprep.subr.mxu1 %v249_v49  ;;  %8044 = vmatpush3.msk.msra.mxu0 %vm9344_vm5, %v12367_v31  ;;  %v284_v0 = vand.u32 4294901760, %v283_v59 }
  0x12   :  { %69 = vxpose.xlu0.b32.cont [5/7] (short) (narrow) %v21_v48, 32  ;;  %8056 = vmatpush3.msra.mxu1 %v249_v49  ;;  %v291_v3 = vand.u32 4294901760, %v290_v62 }
  0x13   :  { %8057 = vmatprep.subr.mxu1 %v256_v50  ;;  %8045 = vmatprep.subr.msk.mxu0 %vm9362_vm6, %v12367_v31 }
  0x14   :  { %797 = vxpose.xlu1.b32.cont [5/7] (short) (narrow) %v28_v53, 32  ;;  %8058 = vmatpush3.msra.mxu1 %v256_v50 }
  0x15   :  { %8059 = vmatprep.subr.mxu1 %v263_v54  ;;  %8046 = vmatpush3.msk.msra.mxu0 %vm9362_vm6, %v12367_v31 }
  0x16   :  { %70 = vxpose.xlu0.b32.cont [6/7] (short) (narrow) %v22_v57, 32  ;;  %8060 = vmatpush3.msra.mxu1 %v263_v54  ;;  %v9527_v54 = vld [vmem:[%s12363_s1] ss:$0 sm:$0xff] }
  0x17   :  { %8061 = vmatprep.subr.mxu1 %v270_v58  ;;  %8047 = vmatprep.subr.msk.mxu0 %vm9394_vm7, %v12367_v31  ;;  %vm778_vm9 = vcmp.eq.s32.totalorder %v9276_v5, %v9527_v54  ;;  %vm9571_vm10 = vcmp.eq.s32.totalorder %v9279_v6, %v9527_v54  ;;  %vm9581_vm11 = vcmp.eq.s32.totalorder %v9288_v9, %v9527_v54 }
  0x18   :  { %798 = vxpose.xlu1.b32.cont [6/7] (short) (narrow) %v29_v60, 32  ;;  %8062 = vmatpush3.msra.mxu1 %v270_v58  ;;  %v9558_v60 = vsel %vm778_vm9, 1.0, %v12365_v14  ;;  %vm9599_vm12 = vcmp.eq.s32.totalorder %v9297_v11, %v9527_v54  ;;  %vm9625_vm13 = vcmp.eq.s32.totalorder %v9300_v12, %v9527_v54  ;;  %vm9639_vm14 = vcmp.eq.s32.totalorder %v9317_v18, %v9527_v54 }
  0x19   :  { %8063 = vmatprep.subr.mxu1 %v277_v61  ;;  %8048 = vmatpush3.msk.msra.mxu0 %vm9394_vm7, %v12367_v31  ;;  %vm9671_vm15 = vcmp.eq.s32.totalorder %v9267_v2, %v9527_v54 }
  0x1a   :  { %71 = vxpose.xlu0.b32.end [7/7] (short) (narrow) %v23_v63, 32  ;;  %8064 = vmatpush3.msra.mxu1 %v277_v61  ;;  %v838_v61 = vsel %vm110_vm0, %v9558_v60, 0 }
  0x1b   :  { %8065 = vmatprep.subr.mxu1 %v284_v0  ;;  %8075 = vmatprep.subr.mxu0 %v9336_v24  ;;  %v9588_v63 = vsub.f32 %v838_v61, %v838_v61 }
  0x1c   :  { %799 = vxpose.xlu1.b32.end [7/7] (short) (narrow) %v30_v1, 32  ;;  %8066 = vmatpush3.msra.mxu1 %v284_v0  ;;  %v7119_v0 = vsel %vm9581_vm11, 1.0, %v12365_v14 }
  0x1d   :  { %8067 = vmatprep.subr.mxu1 %v291_v3  ;;  %v9631_v17 = vsub.f32 %v7119_v0, %v7119_v0 }
  0x1e   :  { %8068 = vmatpush3.msra.mxu1 %v291_v3  ;;  %v7118_v3 = vsel %vm9599_vm12, 1.0, %v12365_v14 }
  0x1f   :  { %8095 = vmatprep.subr.msk.mxu1 %vm110_vm0, %v9306_v15 }
  0x7e   :  { %v81_v4 = vpop.trf.xlu0 }
  0x7f   :  { %v99_v7 = vsel %vm97_vm8, %v81_v4, 0 }
  0x80   :  { %v9476_v8 = vand.u32 4294901760, %v99_v7  ;;  %v809_v1 = vpop.trf.xlu1 }
  0x82   :  { %v9479_v13 = vsub.f32 %v99_v7, %v9476_v8  ;;  %8069 = vmatprep.mubr.f32.mxu1 %v9476_v8  ;;  %v82_v16 = vpop.trf.xlu0 }
  0x83   :  { %v102_v19 = vsel %vm97_vm8, %v82_v16, 0  ;;  %v9664_v16 = vand.u32 4294901760, %v9631_v17 }
  0x84   :  { %v9483_v21 = vand.u32 4294901760, %v102_v19  ;;  %v188_v23 = vand.u32 4294901760, %v9479_v13 }
  0x85   :  { %v988_v32 = vsub.f32 %v9631_v17, %v9664_v16 }
  0x86   :  { %v9487_v26 = vsub.f32 %v102_v19, %v9483_v21  ;;  %v83_v30 = vpop.trf.xlu0  ;;  %8070 = vmatmul.mubr.f32.vlgmr.msra.gmra.mxu1 %v9483_v21  ;;  %v189_v33 = vsub.f32 %v9479_v13, %v188_v23  ;;  %v7116_v19 = vsel %vm9639_vm14, 1.0, %v12365_v14 }
  0x87   :  { %v105_v37 = vsel %vm97_vm8, %v83_v30, 0  ;;  %8096 = vmatpush3.msk.msra.mxu1 %vm110_vm0, %v9306_v15  ;;  %v989_v41 = vand.u32 4294901760, %v988_v32  ;;  %v9859_v32 = vld [vmem:[%s12363_s1 + $0x1] ss:$0 sm:$0xff] }
  0x88   :  { %v198_v38 = vand.u32 4294901760, %v9487_v26  ;;  %v9495_v42 = vand.u32 4294901760, %v105_v37  ;;  %8097 = vmatprep.subr.msk.mxu1 %vm9292_vm2, %v12367_v31  ;;  %v190_v43 = vand.u32 4294901760, %v189_v33  ;;  %vm1517_vm1 = vcmp.eq.s32.totalorder %v9276_v5, %v9859_v32 }
  0x89   :  { %8098 = vmatpush3.msk.msra.mxu1 %vm9292_vm2, %v12367_v31 }
  0x8a   :  { %v9504_v44 = vsub.f32 %v105_v37, %v9495_v42  ;;  %8099 = vmatprep.subr.msk.mxu1 %vm9312_vm3, %v12367_v31  ;;  %8049 = vmatprep.mubr.f32.mxu0 %v190_v43  ;;  %v84_v46 = vpop.trf.xlu0  ;;  %v199_v48 = vsub.f32 %v9487_v26, %v198_v38  ;;  %v826_v37 = vsel %vm97_vm8, %v809_v1, 0 }
  0x8b   :  { %v108_v49 = vsel %vm97_vm8, %v84_v46, 0  ;;  %8100 = vmatpush3.msk.msra.mxu1 %vm9312_vm3, %v12367_v31  ;;  %8072 = vmatprep.mubr.f32.mxu1 %v9495_v42 }
  0x8c   :  { %v208_v50 = vand.u32 4294901760, %v9504_v44  ;;  %v9516_v51 = vand.u32 4294901760, %v108_v49  ;;  %8101 = vmatprep.subr.msk.mxu1 %vm9327_vm4, %v12367_v31  ;;  %v200_v53 = vand.u32 4294901760, %v199_v48 }
  0x8d   :  { %8102 = vmatpush3.msk.msra.mxu1 %vm9327_vm4, %v12367_v31 }
  0x8e   :  { %v9530_v55 = vsub.f32 %v108_v49, %v9516_v51  ;;  %8103 = vmatprep.subr.msk.mxu1 %vm9344_vm5, %v12367_v31  ;;  %8050 = vmatmul.mubr.f32.vlgmr.msra.gmra.mxu0 %v200_v53  ;;  %v209_v57 = vsub.f32 %v9504_v44, %v208_v50 }
  0x8f   :  { %8073 = vmatmul.mubr.f32.gmra.mxu1 %v9516_v51  ;;  %8076 = vmatpush3.msra.mxu0 %v9336_v24 }
  0x90   :  { %v218_v58 = vand.u32 4294901760, %v9530_v55  ;;  %8104 = vmatpush3.msk.msra.mxu1 %vm9344_vm5, %v12367_v31  ;;  %8077 = vmatprep.subr.mxu0 %v9321_v20  ;;  %v210_v59 = vand.u32 4294901760, %v209_v57 }
  0x91   :  { %8105 = vmatprep.subr.msk.mxu1 %vm9362_vm6, %v12367_v31  ;;  %8109 = vmatprep.mubr.f32.mxu1 %v188_v23 }
  0x92   :  { %8078 = vmatpush3.msra.mxu0 %v9321_v20  ;;  %8106 = vmatpush3.msk.msra.mxu1 %vm9362_vm6, %v12367_v31  ;;  %v219_v24 = vsub.f32 %v9530_v55, %v218_v58 }
  0x93   :  { %8079 = vmatprep.subr.mxu0 %v9338_v25  ;;  %8107 = vmatprep.subr.msk.mxu1 %vm9394_vm7, %v12367_v31 }
  0x94   :  { %8052 = vmatprep.mubr.f32.mxu0 %v210_v59  ;;  %8080 = vmatpush3.msra.mxu0 %v9338_v25  ;;  %v220_v20 = vand.u32 4294901760, %v219_v24 }
  0x95   :  { %8108 = vmatpush3.msk.msra.mxu1 %vm9394_vm7, %v12367_v31  ;;  %8081 = vmatprep.subr.mxu0 %v9353_v29 }
  0x96   :  { %8110 = vmatmul.mubr.f32.vlgmr.msra.gmra.mxu1 %v198_v38  ;;  %8135 = vmatprep.subr.msk.mxu1 %vm110_vm0, %v9306_v15  ;;  %v9695_v38 = vsub.f32 %v7116_v19, %v7116_v19 }
  0x97   :  { %8082 = vmatpush3.msra.mxu0 %v9353_v29  ;;  %8112 = vmatprep.mubr.f32.mxu1 %v208_v50  ;;  %v7120_v29 = vsel %vm9571_vm10, 1.0, %v12365_v14 }
  0x98   :  { %8136 = vmatpush3.msk.msra.mxu1 %vm110_vm0, %v9306_v15  ;;  %8083 = vmatprep.subr.mxu0 %v9375_v36  ;;  %v9611_v10 = vsub.f32 %v7120_v29, %v7120_v29 }
  0x99   :  { %8137 = vmatprep.subr.msk.mxu1 %vm9292_vm2, %v12367_v31  ;;  %8053 = vmatmul.mubr.f32.gmra.mxu0 %v220_v20 }
  0x9a   :  { %8084 = vmatpush3.msra.mxu0 %v9375_v36  ;;  %8138 = vmatpush3.msk.msra.mxu1 %vm9292_vm2, %v12367_v31  ;;  %v9618_v36 = vand.u32 4294901760, %v9588_v63  ;;  %v9648_v7 = vand.u32 4294901760, %v9611_v10  ;;  %vm9906_vm2 = vcmp.eq.s32.totalorder %v9279_v6, %v9859_v32 }
  0x9b   :  { %8085 = vmatprep.subr.mxu0 %v9388_v40  ;;  %8089 = vmatprep.mubr.f32.mxu0 %v9479_v13  ;;  %v9650_v13 = vsub.f32 %v7118_v3, %v7118_v3 }
  0x9c   :  { %8113 = vmatmul.mubr.f32.gmra.mxu1 %v218_v58  ;;  %8139 = vmatprep.subr.msk.mxu1 %vm9312_vm3, %v12367_v31  ;;  %v974_v22 = vsub.f32 %v9588_v63, %v9618_v36  ;;  %v981_v30 = vsub.f32 %v9611_v10, %v9648_v7 }
  0x9d   :  { %8086 = vmatpush3.msra.mxu0 %v9388_v40  ;;  %8140 = vmatpush3.msk.msra.mxu1 %vm9312_vm3, %v12367_v31  ;;  %v9688_v33 = vand.u32 4294901760, %v9650_v13  ;;  %vm9917_vm3 = vcmp.eq.s32.totalorder %v9288_v9, %v9859_v32 }
  0x9e   :  { %8149 = vmatprep.mubr.f32.mxu1 %v9476_v8  ;;  %8087 = vmatprep.subr.mxu0 %v9414_v47  ;;  %v975_v27 = vand.u32 4294901760, %v974_v22  ;;  %v982_v46 = vand.u32 4294901760, %v981_v30 }
  0x9f   :  { %8141 = vmatprep.subr.msk.mxu1 %vm9327_vm4, %v12367_v31  ;;  %8088 = vmatpush3.msra.mxu0 %v9414_v47  ;;  %v7117_v47 = vsel %vm9625_vm13, 1.0, %v12365_v14  ;;  %v995_v48 = vsub.f32 %v9650_v13, %v9688_v33 }
  0xa0   :  { %8142 = vmatpush3.msk.msra.mxu1 %vm9327_vm4, %v12367_v31  ;;  %8090 = vmatmul.mubr.f32.vlgmr.msra.gmra.mxu0 %v9487_v26  ;;  %v9679_v26 = vsub.f32 %v7117_v47, %v7117_v47  ;;  %vm9942_vm4 = vcmp.eq.s32.totalorder %v9297_v11, %v9859_v32 }
  0xa1   :  { %8115 = vmatprep.subr.mxu0 %v9370_v34  ;;  %8143 = vmatprep.subr.msk.mxu1 %vm9344_vm5, %v12367_v31  ;;  %v996_v54 = vand.u32 4294901760, %v995_v48  ;;  %v7147_v25 = vsel %vm9942_vm4, 1.0, %v12365_v14 }
  0xa2   :  { %8092 = vmatprep.mubr.f32.mxu0 %v9504_v44  ;;  %8116 = vmatpush3.msra.mxu0 %v9370_v34  ;;  %v810_v34 = vpop.trf.xlu1  ;;  %v9709_v43 = vand.u32 4294901760, %v9679_v26  ;;  %v9715_v44 = vand.u32 4294901760, %v826_v37 }
  0xa3   :  { %8144 = vmatpush3.msk.msra.mxu1 %vm9344_vm5, %v12367_v31  ;;  %8117 = vmatprep.subr.mxu0 %v9351_v28  ;;  %v829_v57 = vsel %vm97_vm8, %v810_v34, 0  ;;  %vm9961_vm5 = vcmp.eq.s32.totalorder %v9300_v12, %v9859_v32 }
  0xa4   :  { %8145 = vmatprep.subr.msk.mxu1 %vm9362_vm6, %v12367_v31  ;;  %8118 = vmatpush3.msra.mxu0 %v9351_v28  ;;  %v7115_v28 = vsel %vm9671_vm15, 1.0, %v12365_v14  ;;  %v1002_v50 = vsub.f32 %v9679_v26, %v9709_v43  ;;  %v9731_v53 = vsub.f32 %v826_v37, %v9715_v44  ;;  %v9751_v61 = vand.u32 4294901760, %v829_v57 }
  0xa5   :  { %8146 = vmatpush3.msk.msra.mxu1 %vm9362_vm6, %v12367_v31  ;;  %8093 = vmatmul.mubr.f32.gmra.mxu0 %v9530_v55  ;;  %v9719_v49 = vsub.f32 %v7115_v28, %v7115_v28  ;;  %vm9988_vm6 = vcmp.eq.s32.totalorder %v9317_v18, %v9859_v32 }
  0xa6   :  { %8119 = vmatprep.subr.mxu0 %v9373_v35  ;;  %8147 = vmatprep.subr.msk.mxu1 %vm9394_vm7, %v12367_v31  ;;  %v1003_v58 = vand.u32 4294901760, %v1002_v50  ;;  %v9744_v59 = vand.u32 4294901760, %v9731_v53  ;;  %v9770_v3 = vsub.f32 %v829_v57, %v9751_v61  ;;  %v7149_v50 = vsel %vm9906_vm2, 1.0, %v12365_v14 }
  0xa7   :  { %8120 = vmatpush3.msra.mxu0 %v9373_v35  ;;  %8129 = vmatprep.mubr.f32.mxu0 %v9476_v8  ;;  %v811_v35 = vpop.trf.xlu1  ;;  %v9723_v8 = vand.u32 4294901760, %v9695_v38  ;;  %v9735_v55 = vand.u32 4294901760, %v9719_v49  ;;  %v9950_v62 = vsub.f32 %v7149_v50, %v7149_v50  ;;  %v7146_v57 = vsel %vm9961_vm5, 1.0, %v12365_v14 }
  0xa8   :  { %8148 = vmatpush3.msk.msra.mxu1 %vm9394_vm7, %v12367_v31  ;;  %8121 = vmatprep.subr.mxu0 %v9386_v39  ;;  %v832_v20 = vsel %vm97_vm8, %v811_v35, 0  ;;  %v915_v1 = vsub.f32 %v9731_v53, %v9744_v59  ;;  %12422 = vst [vmem:[#allocation3_spill] sm:$0xff] %v9770_v3  ;;  %vm10007_vm7 = vcmp.eq.s32.totalorder %v9267_v2, %v9859_v32 }
  0xa9   :  { %8150 = vmatmul.mubr.f32.vlgmr.msra.gmra.mxu1 %v9483_v21  ;;  %8175 = vmatprep.subr.mxu1 %v975_v27  ;;  %v1016_v24 = vsub.f32 %v9719_v49, %v9735_v55 }
  0xaa   :  { %8122 = vmatpush3.msra.mxu0 %v9386_v39  ;;  %8152 = vmatprep.mubr.f32.mxu1 %v9495_v42  ;;  %v1009_v39 = vsub.f32 %v9695_v38, %v9723_v8  ;;  %v9783_v47 = vand.u32 4294901760, %v915_v1 }
  0xab   :  { %8176 = vmatpush3.msra.mxu1 %v975_v27  ;;  %8123 = vmatprep.subr.mxu0 %v9406_v45  ;;  %v1017_v0 = vand.u32 4294901760, %v1016_v24 }
  0xac   :  { %8177 = vmatprep.subr.mxu1 %v982_v46  ;;  %8124 = vmatpush3.msra.mxu0 %v9406_v45  ;;  %v812_v45 = vpop.trf.xlu1 }
  0xad   :  { %8178 = vmatpush3.msra.mxu1 %v982_v46  ;;  %8125 = vmatprep.subr.mxu0 %v9425_v52  ;;  %v835_v29 = vsel %vm97_vm8, %v812_v45, 0 }
  0xae   :  { %8153 = vmatmul.mubr.f32.gmra.mxu1 %v9516_v51  ;;  %8179 = vmatprep.subr.mxu1 %v989_v41 }
  0xaf   :  { %8126 = vmatpush3.msra.mxu0 %v9425_v52  ;;  %8180 = vmatpush3.msra.mxu1 %v989_v41  ;;  %v1010_v52 = vand.u32 4294901760, %v1009_v39 }
  0xb0   :  { %8127 = vmatprep.subr.mxu0 %v9439_v56  ;;  %8181 = vmatprep.subr.mxu1 %v996_v54 }
  0xb1   :  { %8128 = vmatpush3.msra.mxu0 %v9439_v56  ;;  %8182 = vmatpush3.msra.mxu1 %v996_v54  ;;  %v9760_v56 = vand.u32 4294901760, %v832_v20 }
  0xb2   :  { %8130 = vmatmul.mubr.f32.vlgmr.msra.gmra.mxu0 %v9483_v21  ;;  %8155 = vmatprep.subr.msk.mxu0 %vm110_vm0, %v9558_v60  ;;  %v9767_v21 = vand.u32 4294901760, %v835_v29 }
  0xb3   :  { %8183 = vmatprep.subr.mxu1 %v1003_v58  ;;  %8132 = vmatprep.mubr.f32.mxu0 %v9495_v42  ;;  %v9778_v42 = vsub.f32 %v832_v20, %v9760_v56  ;;  %v10015_v20 = vsub.f32 %v7146_v57, %v7146_v57 }
  0xb4   :  { %8156 = vmatpush3.msk.msra.mxu0 %vm110_vm0, %v9558_v60  ;;  %8184 = vmatpush3.msra.mxu1 %v1003_v58  ;;  %v9789_v22 = vsub.f32 %v835_v29, %v9767_v21 }
  0xb5   :  { %8157 = vmatprep.subr.msk.mxu0 %vm9571_vm10, %v12367_v31  ;;  %8185 = vmatprep.subr.mxu1 %v1010_v52  ;;  %12423 = vst [vmem:[#allocation4_spill] sm:$0xff] %v9778_v42  ;;  %v9804_v19 = vand.u32 4294901760, %v9778_v42  ;;  %v10047_v1 = vand.u32 4294901760, %v10015_v20 }
  0xb6   :  { %8158 = vmatpush3.msk.msra.mxu0 %vm9571_vm10, %v12367_v31  ;;  %8186 = vmatpush3.msra.mxu1 %v1010_v52  ;;  %12424 = vst [vmem:[#allocation5_spill] sm:$0xff] %v9789_v22  ;;  %v9810_v34 = vand.u32 4294901760, %v9789_v22 }
  0xb7   :  { %8189 = vmatprep.mubr.f32.mxu1 %v9715_v44  ;;  %8133 = vmatmul.mubr.f32.gmra.mxu0 %v9516_v51  ;;  %v9792_v51 = vand.u32 4294901760, %v9770_v3  ;;  %v935_v27 = vsub.f32 %v9778_v42, %v9804_v19  ;;  %v1697_v23 = vsub.f32 %v10015_v20, %v10047_v1 }
  0xb8   :  { %8159 = vmatprep.subr.msk.mxu0 %vm9581_vm11, %v12367_v31  ;;  %8187 = vmatprep.subr.mxu1 %v1017_v0  ;;  %v945_v37 = vsub.f32 %v9789_v22, %v9810_v34 }
  0xb9   :  { %8160 = vmatpush3.msk.msra.mxu0 %vm9581_vm11, %v12367_v31  ;;  %8188 = vmatpush3.msra.mxu1 %v1017_v0  ;;  %v925_v30 = vsub.f32 %v9770_v3, %v9792_v51  ;;  %v9865_v46 = vand.u32 4294901760, %v935_v27  ;;  %v7144_v0 = vsel %vm10007_vm7, 1.0, %v12365_v14 }
  0xba   :  { %8161 = vmatprep.subr.msk.mxu0 %vm9599_vm12, %v12367_v31  ;;  %8190 = vmatmul.mubr.f32.vlgmr.msra.gmra.mxu1 %v9751_v61  ;;  %v9871_v48 = vand.u32 4294901760, %v945_v37  ;;  %v10053_v27 = vsub.f32 %v7144_v0, %v7144_v0 }
  0xbb   :  { %8215 = vmatprep.subr.msk.mxu1 %vm110_vm0, %v9558_v60  ;;  %8162 = vmatpush3.msk.msra.mxu0 %vm9599_vm12, %v12367_v31  ;;  %v9848_v28 = vand.u32 4294901760, %v925_v30 }
  0xbc   :  { %8169 = vmatprep.mubr.f32.mxu0 %v9783_v47  ;;  %8216 = vmatpush3.msk.msra.mxu1 %vm110_vm0, %v9558_v60 }
  0xbd   :  { %8163 = vmatprep.subr.msk.mxu0 %vm9625_vm13, %v12367_v31  ;;  %8217 = vmatprep.subr.msk.mxu1 %vm9571_vm10, %v12367_v31 }
  0xbe   :  { %8164 = vmatpush3.msk.msra.mxu0 %vm9625_vm13, %v12367_v31  ;;  %8192 = vmatprep.mubr.f32.mxu1 %v9760_v56 }
  0xbf   :  { %8218 = vmatpush3.msk.msra.mxu1 %vm9571_vm10, %v12367_v31  ;;  %8165 = vmatprep.subr.msk.mxu0 %vm9639_vm14, %v12367_v31 }
  0xc0   :  { %8193 = vmatmul.mubr.f32.gmra.mxu1 %v9767_v21  ;;  %8219 = vmatprep.subr.msk.mxu1 %vm9581_vm11, %v12367_v31 }
  0xc1   :  { %8166 = vmatpush3.msk.msra.mxu0 %vm9639_vm14, %v12367_v31  ;;  %8220 = vmatpush3.msk.msra.mxu1 %vm9581_vm11, %v12367_v31 }
  0xc2   :  { %8229 = vmatprep.mubr.f32.mxu1 %v9744_v59  ;;  %8167 = vmatprep.subr.msk.mxu0 %vm9671_vm15, %v12367_v31 }
  0xc3   :  { %8221 = vmatprep.subr.msk.mxu1 %vm9599_vm12, %v12367_v31  ;;  %8168 = vmatpush3.msk.msra.mxu0 %vm9671_vm15, %v12367_v31 }
  0xc4   :  { %8222 = vmatpush3.msk.msra.mxu1 %vm9599_vm12, %v12367_v31  ;;  %8170 = vmatmul.mubr.f32.vlgmr.msra.gmra.mxu0 %v9848_v28 }
  0xc5   :  { %8195 = vmatprep.subr.mxu0 %v9588_v63  ;;  %8223 = vmatprep.subr.msk.mxu1 %vm9625_vm13, %v12367_v31 }
  0xc6   :  { %8196 = vmatpush3.msra.mxu0 %v9588_v63  ;;  %8224 = vmatpush3.msk.msra.mxu1 %vm9625_vm13, %v12367_v31  ;;  %v9890_v63 = vsel %vm1517_vm1, 1.0, %v12365_v14 }
  0xc7   :  { %8197 = vmatprep.subr.mxu0 %v9611_v10  ;;  %8225 = vmatprep.subr.msk.mxu1 %vm9639_vm14, %v12367_v31 }
  0xc8   :  { %8172 = vmatprep.mubr.f32.mxu0 %v9865_v46  ;;  %8198 = vmatpush3.msra.mxu0 %v9611_v10  ;;  %v1533_v10 = vsel %vm110_vm0, %v9890_v63, 0 }
  0xc9   :  { %8226 = vmatpush3.msk.msra.mxu1 %vm9639_vm14, %v12367_v31  ;;  %8173 = vmatmul.mubr.f32.gmra.mxu0 %v9871_v48  ;;  %v9924_v41 = vsub.f32 %v1533_v10, %v1533_v10  ;;  %v10068_v10 = vand.u32 4294901760, %v10053_v27 }
  0xca   :  { %8199 = vmatprep.subr.mxu0 %v9631_v17  ;;  %8227 = vmatprep.subr.msk.mxu1 %vm9671_vm15, %v12367_v31 }
  0xcb   :  { %8200 = vmatpush3.msra.mxu0 %v9631_v17  ;;  %8209 = vmatprep.mubr.f32.mxu0 %v9731_v53 }
  0xcc   :  { %8228 = vmatpush3.msk.msra.mxu1 %vm9671_vm15, %v12367_v31  ;;  %8201 = vmatprep.subr.mxu0 %v9650_v13 }
  0xcd   :  { %8230 = vmatmul.mubr.f32.vlgmr.msra.gmra.mxu1 %v9792_v51  ;;  %8255 = vmatprep.subr.msk.mxu1 %vm110_vm0, %v9558_v60 }
  0xce   :  { %8202 = vmatpush3.msra.mxu0 %v9650_v13  ;;  %8232 = vmatprep.mubr.f32.mxu1 %v9804_v19 }
  0xcf   :  { %8256 = vmatpush3.msk.msra.mxu1 %vm110_vm0, %v9558_v60  ;;  %8203 = vmatprep.subr.mxu0 %v9679_v26  ;;  %v7148_v60 = vsel %vm9917_vm3, 1.0, %v12365_v14 }
  0xd0   :  { %8257 = vmatprep.subr.msk.mxu1 %vm9571_vm10, %v12367_v31  ;;  %8204 = vmatpush3.msra.mxu0 %v9679_v26  ;;  %v9957_v26 = vand.u32 4294901760, %v9924_v41  ;;  %v9967_v39 = vsub.f32 %v7148_v60, %v7148_v60  ;;  %v1698_v60 = vand.u32 4294901760, %v1697_v23 }
  0xd1   :  { %8258 = vmatpush3.msk.msra.mxu1 %vm9571_vm10, %v12367_v31  ;;  %8205 = vmatprep.subr.mxu0 %v9695_v38 }
  0xd2   :  { %8233 = vmatmul.mubr.f32.gmra.mxu1 %v9810_v34  ;;  %8259 = vmatprep.subr.msk.mxu1 %vm9581_vm11, %v12367_v31  ;;  %v1669_v15 = vsub.f32 %v9924_v41, %v9957_v26  ;;  %v10003_v45 = vand.u32 4294901760, %v9967_v39 }
  0xd3   :  { %8206 = vmatpush3.msra.mxu0 %v9695_v38  ;;  %8260 = vmatpush3.msk.msra.mxu1 %vm9581_vm11, %v12367_v31  ;;  %v9981_v38 = vand.u32 4294901760, %v9950_v62 }
  0xd4   :  { %8269 = vmatprep.mubr.f32.mxu1 %v9715_v44  ;;  %8207 = vmatprep.subr.mxu0 %v9719_v49  ;;  %v1670_v4 = vand.u32 4294901760, %v1669_v15  ;;  %v1683_v40 = vsub.f32 %v9967_v39, %v10003_v45 }
  0xd5   :  { %8261 = vmatprep.subr.msk.mxu1 %vm9599_vm12, %v12367_v31  ;;  %8208 = vmatpush3.msra.mxu0 %v9719_v49  ;;  %v9998_v49 = vsub.f32 %v7147_v25, %v7147_v25  ;;  %v1676_v52 = vsub.f32 %v9950_v62, %v9981_v38 }
  0xd6   :  { %8262 = vmatpush3.msk.msra.mxu1 %vm9599_vm12, %v12367_v31  ;;  %8210 = vmatmul.mubr.f32.vlgmr.msra.gmra.mxu0 %v9770_v3  ;;  %v1684_v37 = vand.u32 4294901760, %v1683_v40 }
  0xd7   :  { %8235 = vmatprep.subr.mxu0 %v9618_v36  ;;  %8263 = vmatprep.subr.msk.mxu1 %vm9625_vm13, %v12367_v31  ;;  %v10031_v29 = vand.u32 4294901760, %v9998_v49  ;;  %v1677_v30 = vand.u32 4294901760, %v1676_v52 }
  0xd8   :  { %8212 = vmatprep.mubr.f32.mxu0 %v9778_v42  ;;  %8236 = vmatpush3.msra.mxu0 %v9618_v36  ;;  %v7145_v36 = vsel %vm9988_vm6, 1.0, %v12365_v14 }
  0xd9   :  { %8264 = vmatpush3.msk.msra.mxu1 %vm9625_vm13, %v12367_v31  ;;  %8237 = vmatprep.subr.mxu0 %v9648_v7 }
  0xda   :  { %8265 = vmatprep.subr.msk.mxu1 %vm9639_vm14, %v12367_v31  ;;  %8238 = vmatpush3.msra.mxu0 %v9648_v7  ;;  %v10042_v7 = vsub.f32 %v7145_v36, %v7145_v36 }
  0xdb   :  { %8266 = vmatpush3.msk.msra.mxu1 %vm9639_vm14, %v12367_v31  ;;  %8213 = vmatmul.mubr.f32.gmra.mxu0 %v9789_v22 }
  0xdc   :  { %8239 = vmatprep.subr.mxu0 %v9664_v16  ;;  %8267 = vmatprep.subr.msk.mxu1 %vm9671_vm15, %v12367_v31  ;;  %v10061_v32 = vand.u32 4294901760, %v10042_v7 }
  0xdd   :  { %8240 = vmatpush3.msra.mxu0 %v9664_v16  ;;  %8249 = vmatprep.mubr.f32.mxu0 %v9715_v44  ;;  %v1690_v16 = vsub.f32 %v9998_v49, %v10031_v29 }
  0xde   :  { %8268 = vmatpush3.msk.msra.mxu1 %vm9671_vm15, %v12367_v31  ;;  %8241 = vmatprep.subr.mxu0 %v9688_v33  ;;  %v1704_v50 = vsub.f32 %v10042_v7, %v10061_v32 }
  0xdf   :  { %8270 = vmatmul.mubr.f32.vlgmr.msra.gmra.mxu1 %v9751_v61  ;;  %8295 = vmatprep.subr.mxu1 %v1670_v4 }
  0xe0   :  { %8242 = vmatpush3.msra.mxu0 %v9688_v33  ;;  %8272 = vmatprep.mubr.f32.mxu1 %v9760_v56  ;;  %v1691_v33 = vand.u32 4294901760, %v1690_v16  ;;  %v1705_v25 = vand.u32 4294901760, %v1704_v50 }
  0xe1   :  { %8296 = vmatpush3.msra.mxu1 %v1670_v4  ;;  %8243 = vmatprep.subr.mxu0 %v9709_v43 }
  0xe2   :  { %8297 = vmatprep.subr.mxu1 %v1677_v30  ;;  %8244 = vmatpush3.msra.mxu0 %v9709_v43  ;;  %v1711_v43 = vsub.f32 %v10053_v27, %v10068_v10 }
  0xe3   :  { %8298 = vmatpush3.msra.mxu1 %v1677_v30  ;;  %8245 = vmatprep.subr.mxu0 %v9723_v8 }
  0xe4   :  { %8273 = vmatmul.mubr.f32.gmra.mxu1 %v9767_v21  ;;  %8299 = vmatprep.subr.mxu1 %v1684_v37 }
  0xe5   :  { %8246 = vmatpush3.msra.mxu0 %v9723_v8  ;;  %8300 = vmatpush3.msra.mxu1 %v1684_v37  ;;  %v1712_v8 = vand.u32 4294901760, %v1711_v43 }
  0xe6   :  { %8309 = vmatprep.mubr.f32.mxu1 %v9715_v44  ;;  %8247 = vmatprep.subr.mxu0 %v9735_v55 }
  0xe7   :  { %8301 = vmatprep.subr.mxu1 %v1691_v33  ;;  %8248 = vmatpush3.msra.mxu0 %v9735_v55  ;;  %v10150_v55 = vld [vmem:[%s12363_s1 + $0x2] ss:$0 sm:$0xff] }
  0xe8   :  { %8302 = vmatpush3.msra.mxu1 %v1691_v33  ;;  %8250 = vmatmul.mubr.f32.vlgmr.msra.gmra.mxu0 %v9751_v61  ;;  %vm2212_vm8 = vcmp.eq.s32.totalorder %v9276_v5, %v10150_v55  ;;  %vm10193_vm9 = vcmp.eq.s32.totalorder %v9279_v6, %v10150_v55  ;;  %vm10204_vm10 = vcmp.eq.s32.totalorder %v9288_v9, %v10150_v55 }
  0xe9   :  { %8275 = vmatprep.subr.msk.mxu0 %vm110_vm0, %v9890_v63  ;;  %8303 = vmatprep.subr.mxu1 %v1698_v60  ;;  %v7178_v36 = vsel %vm10193_vm9, 1.0, %v12365_v14  ;;  %vm10229_vm11 = vcmp.eq.s32.totalorder %v9297_v11, %v10150_v55  ;;  %vm10248_vm12 = vcmp.eq.s32.totalorder %v9300_v12, %v10150_v55  ;;  %vm10275_vm13 = vcmp.eq.s32.totalorder %v9317_v18, %v10150_v55 }
  0xea   :  { %8252 = vmatprep.mubr.f32.mxu0 %v9760_v56  ;;  %8276 = vmatpush3.msk.msra.mxu0 %vm110_vm0, %v9890_v63  ;;  %v10237_v35 = vsub.f32 %v7178_v36, %v7178_v36  ;;  %v7176_v17 = vsel %vm10229_vm11, 1.0, %v12365_v14  ;;  %v7175_v40 = vsel %vm10248_vm12, 1.0, %v12365_v14  ;;  %vm10294_vm14 = vcmp.eq.s32.totalorder %v9267_v2, %v10150_v55 }
  0xeb   :  { %8304 = vmatpush3.msra.mxu1 %v1698_v60  ;;  %8277 = vmatprep.subr.msk.mxu0 %vm9906_vm2, %v12367_v31  ;;  %v10285_v30 = vsub.f32 %v7176_v17, %v7176_v17  ;;  %v10302_v37 = vsub.f32 %v7175_v40, %v7175_v40  ;;  %v7173_v50 = vsel %vm10294_vm14, 1.0, %v12365_v14 }
  0xec   :  { %8305 = vmatprep.subr.mxu1 %v1705_v25  ;;  %8278 = vmatpush3.msk.msra.mxu0 %vm9906_vm2, %v12367_v31  ;;  %v10268_v0 = vand.u32 4294901760, %v10237_v35 }
  0xed   :  { %8306 = vmatpush3.msra.mxu1 %v1705_v25  ;;  %8253 = vmatmul.mubr.f32.gmra.mxu0 %v9767_v21  ;;  %v10318_v33 = vand.u32 4294901760, %v10285_v30  ;;  %v10334_v60 = vand.u32 4294901760, %v10302_v37  ;;  %v10340_v25 = vsub.f32 %v7173_v50, %v7173_v50 }
  0xee   :  { %8279 = vmatprep.subr.msk.mxu0 %vm9917_vm3, %v12367_v31  ;;  %8307 = vmatprep.subr.mxu1 %v1712_v8  ;;  %v2371_v23 = vsub.f32 %v10237_v35, %v10268_v0 }
  0xef   :  { %8280 = vmatpush3.msk.msra.mxu0 %vm9917_vm3, %v12367_v31  ;;  %8289 = vmatprep.mubr.f32.mxu0 %v9783_v47  ;;  %v2392_v24 = vsub.f32 %v10302_v37, %v10334_v60 }
  0xf0   :  { %8308 = vmatpush3.msra.mxu1 %v1712_v8  ;;  %8281 = vmatprep.subr.msk.mxu0 %vm9942_vm4, %v12367_v31  ;;  %v2372_v43 = vand.u32 4294901760, %v2371_v23 }
  0xf1   :  { %8310 = vmatmul.mubr.f32.vlgmr.msra.gmra.mxu1 %v9751_v61  ;;  %8335 = vmatprep.subr.msk.mxu1 %vm110_vm0, %v9890_v63 }
  0xf2   :  { %8282 = vmatpush3.msk.msra.mxu0 %vm9942_vm4, %v12367_v31  ;;  %8312 = vmatprep.mubr.f32.mxu1 %v9760_v56 }
  0xf3   :  { %8336 = vmatpush3.msk.msra.mxu1 %vm110_vm0, %v9890_v63  ;;  %8283 = vmatprep.subr.msk.mxu0 %vm9961_vm5, %v12367_v31 }
  0xf4   :  { %8337 = vmatprep.subr.msk.mxu1 %vm9906_vm2, %v12367_v31  ;;  %8284 = vmatpush3.msk.msra.mxu0 %vm9961_vm5, %v12367_v31 }
  0xf5   :  { %8338 = vmatpush3.msk.msra.mxu1 %vm9906_vm2, %v12367_v31  ;;  %8285 = vmatprep.subr.msk.mxu0 %vm9988_vm6, %v12367_v31 }
  0xf6   :  { %8313 = vmatmul.mubr.f32.gmra.mxu1 %v9767_v21  ;;  %8339 = vmatprep.subr.msk.mxu1 %vm9917_vm3, %v12367_v31 }
  0xf7   :  { %8286 = vmatpush3.msk.msra.mxu0 %vm9988_vm6, %v12367_v31  ;;  %8340 = vmatpush3.msk.msra.mxu1 %vm9917_vm3, %v12367_v31 }
  0xf8   :  { %8349 = vmatprep.mubr.f32.mxu1 %v9744_v59  ;;  %8287 = vmatprep.subr.msk.mxu0 %vm10007_vm7, %v12367_v31 }
  0xf9   :  { %8341 = vmatprep.subr.msk.mxu1 %vm9942_vm4, %v12367_v31  ;;  %8288 = vmatpush3.msk.msra.mxu0 %vm10007_vm7, %v12367_v31 }
  0xfa   :  { %8342 = vmatpush3.msk.msra.mxu1 %vm9942_vm4, %v12367_v31  ;;  %8290 = vmatmul.mubr.f32.vlgmr.msra.gmra.mxu0 %v9848_v28 }
  0xfb   :  { %8315 = vmatprep.subr.mxu0 %v9924_v41  ;;  %8343 = vmatprep.subr.msk.mxu1 %vm9961_vm5, %v12367_v31 }
  0xfc   :  { %8292 = vmatprep.mubr.f32.mxu0 %v9865_v46  ;;  %8316 = vmatpush3.msra.mxu0 %v9924_v41  ;;  %v10177_v41 = vsel %vm2212_vm8, 1.0, %v12365_v14 }
  0xfd   :  { %8344 = vmatpush3.msk.msra.mxu1 %vm9961_vm5, %v12367_v31  ;;  %8317 = vmatprep.subr.mxu0 %v9950_v62 }
  0xfe   :  { %8345 = vmatprep.subr.msk.mxu1 %vm9988_vm6, %v12367_v31  ;;  %8318 = vmatpush3.msra.mxu0 %v9950_v62  ;;  %v2228_v62 = vsel %vm110_vm0, %v10177_v41, 0 }
  0xff   :  { %8346 = vmatpush3.msk.msra.mxu1 %vm9988_vm6, %v12367_v31  ;;  %8293 = vmatmul.mubr.f32.gmra.mxu0 %v9871_v48  ;;  %v10211_v15 = vsub.f32 %v2228_v62, %v2228_v62  ;;  %v10355_v62 = vand.u32 4294901760, %v10340_v25 }
 0x100   :  { %8319 = vmatprep.subr.mxu0 %v9967_v39  ;;  %8347 = vmatprep.subr.msk.mxu1 %vm10007_vm7, %v12367_v31 }
 0x101   :  { %8320 = vmatpush3.msra.mxu0 %v9967_v39  ;;  %8329 = vmatprep.mubr.f32.mxu0 %v9731_v53 }
 0x102   :  { %8348 = vmatpush3.msk.msra.mxu1 %vm10007_vm7, %v12367_v31  ;;  %8321 = vmatprep.subr.mxu0 %v9998_v49 }
 0x103   :  { %8350 = vmatmul.mubr.f32.vlgmr.msra.gmra.mxu1 %v9792_v51  ;;  %8375 = vmatprep.subr.msk.mxu1 %vm110_vm0, %v9890_v63 }
 0x104   :  { %8322 = vmatpush3.msra.mxu0 %v9998_v49  ;;  %8352 = vmatprep.mubr.f32.mxu1 %v9804_v19 }
 0x105   :  { %8376 = vmatpush3.msk.msra.mxu1 %vm110_vm0, %v9890_v63  ;;  %8323 = vmatprep.subr.mxu0 %v10015_v20  ;;  %v7177_v63 = vsel %vm10204_vm10, 1.0, %v12365_v14 }
 0x106   :  { %8377 = vmatprep.subr.msk.mxu1 %vm9906_vm2, %v12367_v31  ;;  %8324 = vmatpush3.msra.mxu0 %v10015_v20  ;;  %v10244_v20 = vand.u32 4294901760, %v10211_v15  ;;  %v10254_v4 = vsub.f32 %v7177_v63, %v7177_v63  ;;  %v2393_v63 = vand.u32 4294901760, %v2392_v24 }
 0x107   :  { %8378 = vmatpush3.msk.msra.mxu1 %vm9906_vm2, %v12367_v31  ;;  %8325 = vmatprep.subr.mxu0 %v10042_v7 }
 0x108   :  { %8353 = vmatmul.mubr.f32.gmra.mxu1 %v9810_v34  ;;  %8379 = vmatprep.subr.msk.mxu1 %vm9917_vm3, %v12367_v31  ;;  %v2364_v13 = vsub.f32 %v10211_v15, %v10244_v20 }
 0x109   :  { %8326 = vmatpush3.msra.mxu0 %v10042_v7  ;;  %8380 = vmatpush3.msk.msra.mxu1 %vm9917_vm3, %v12367_v31 }
 0x10a   :  { %8389 = vmatprep.mubr.f32.mxu1 %v9715_v44  ;;  %8327 = vmatprep.subr.mxu0 %v10053_v27  ;;  %v2365_v54 = vand.u32 4294901760, %v2364_v13 }
 0x10b   :  { %8381 = vmatprep.subr.msk.mxu1 %vm9942_vm4, %v12367_v31  ;;  %8328 = vmatpush3.msra.mxu0 %v10053_v27  ;;  %v10290_v27 = vand.u32 4294901760, %v10254_v4 }
 0x10c   :  { %8382 = vmatpush3.msk.msra.mxu1 %vm9942_vm4, %v12367_v31  ;;  %8330 = vmatmul.mubr.f32.vlgmr.msra.gmra.mxu0 %v9770_v3 }
 0x10d   :  { %8355 = vmatprep.subr.mxu0 %v9957_v26  ;;  %8383 = vmatprep.subr.msk.mxu1 %vm9961_vm5, %v12367_v31 }
 0x10e   :  { %8332 = vmatprep.mubr.f32.mxu0 %v9778_v42  ;;  %8356 = vmatpush3.msra.mxu0 %v9957_v26  ;;  %v7174_v26 = vsel %vm10275_vm13, 1.0, %v12365_v14 }
 0x10f   :  { %8384 = vmatpush3.msk.msra.mxu1 %vm9961_vm5, %v12367_v31  ;;  %8357 = vmatprep.subr.mxu0 %v9981_v38  ;;  %v10329_v58 = vsub.f32 %v7174_v26, %v7174_v26 }
 0x110   :  { %8385 = vmatprep.subr.msk.mxu1 %vm9988_vm6, %v12367_v31  ;;  %8358 = vmatpush3.msra.mxu0 %v9981_v38  ;;  %v2378_v38 = vsub.f32 %v10254_v4, %v10290_v27 }
 0x111   :  { %8386 = vmatpush3.msk.msra.mxu1 %vm9988_vm6, %v12367_v31  ;;  %8333 = vmatmul.mubr.f32.gmra.mxu0 %v9789_v22  ;;  %v10348_v55 = vand.u32 4294901760, %v10329_v58 }
 0x112   :  { %8359 = vmatprep.subr.mxu0 %v10003_v45  ;;  %8387 = vmatprep.subr.msk.mxu1 %vm10007_vm7, %v12367_v31  ;;  %v2379_v8 = vand.u32 4294901760, %v2378_v38 }
 0x113   :  { %8360 = vmatpush3.msra.mxu0 %v10003_v45  ;;  %8369 = vmatprep.mubr.f32.mxu0 %v9715_v44  ;;  %v2385_v45 = vsub.f32 %v10285_v30, %v10318_v33  ;;  %v2399_v36 = vsub.f32 %v10329_v58, %v10348_v55 }
 0x114   :  { %8388 = vmatpush3.msk.msra.mxu1 %vm10007_vm7, %v12367_v31  ;;  %8361 = vmatprep.subr.mxu0 %v10031_v29 }
 0x115   :  { %8390 = vmatmul.mubr.f32.vlgmr.msra.gmra.mxu1 %v9751_v61  ;;  %8415 = vmatprep.subr.mxu1 %v2365_v54  ;;  %v2400_v17 = vand.u32 4294901760, %v2399_v36 }
 0x116   :  { %8362 = vmatpush3.msra.mxu0 %v10031_v29  ;;  %8392 = vmatprep.mubr.f32.mxu1 %v9760_v56  ;;  %v2386_v29 = vand.u32 4294901760, %v2385_v45 }
 0x117   :  { %8416 = vmatpush3.msra.mxu1 %v2365_v54  ;;  %8363 = vmatprep.subr.mxu0 %v10047_v1 }
 0x118   :  { %8417 = vmatprep.subr.mxu1 %v2372_v43  ;;  %8364 = vmatpush3.msra.mxu0 %v10047_v1  ;;  %v2406_v1 = vsub.f32 %v10340_v25, %v10355_v62 }
 0x119   :  { %8418 = vmatpush3.msra.mxu1 %v2372_v43  ;;  %8365 = vmatprep.subr.mxu0 %v10061_v32 }
 0x11a   :  { %8393 = vmatmul.mubr.f32.gmra.mxu1 %v9767_v21  ;;  %8419 = vmatprep.subr.mxu1 %v2379_v8 }
 0x11b   :  { %8366 = vmatpush3.msra.mxu0 %v10061_v32  ;;  %8420 = vmatpush3.msra.mxu1 %v2379_v8  ;;  %v2407_v32 = vand.u32 4294901760, %v2406_v1 }
 0x11c   :  { %8429 = vmatprep.mubr.f32.mxu1 %v9715_v44  ;;  %8367 = vmatprep.subr.mxu0 %v10068_v10 }
 0x11d   :  { %8421 = vmatprep.subr.mxu1 %v2386_v29  ;;  %8368 = vmatpush3.msra.mxu0 %v10068_v10  ;;  %v10437_v10 = vld [vmem:[%s12363_s1 + $0x3] ss:$0 sm:$0xff] }
 0x11e   :  { %8422 = vmatpush3.msra.mxu1 %v2386_v29  ;;  %8370 = vmatmul.mubr.f32.vlgmr.msra.gmra.mxu0 %v9751_v61  ;;  %vm2907_vm15 = vcmp.eq.s32.totalorder %v9276_v5, %v10437_v10  ;;  %vm10480_vm1 = vcmp.eq.s32.totalorder %v9279_v6, %v10437_v10  ;;  %vm10491_vm2 = vcmp.eq.s32.totalorder %v9288_v9, %v10437_v10 }
 0x11f   :  { %8395 = vmatprep.subr.msk.mxu0 %vm110_vm0, %v10177_v41  ;;  %8423 = vmatprep.subr.mxu1 %v2393_v63  ;;  %v7207_v26 = vsel %vm10480_vm1, 1.0, %v12365_v14  ;;  %vm10516_vm3 = vcmp.eq.s32.totalorder %v9297_v11, %v10437_v10  ;;  %vm10535_vm4 = vcmp.eq.s32.totalorder %v9300_v12, %v10437_v10  ;;  %vm10562_vm5 = vcmp.eq.s32.totalorder %v9317_v18, %v10437_v10 }
 0x120   :  { %8372 = vmatprep.mubr.f32.mxu0 %v9760_v56  ;;  %8396 = vmatpush3.msk.msra.mxu0 %vm110_vm0, %v10177_v41  ;;  %v10524_v57 = vsub.f32 %v7207_v26, %v7207_v26  ;;  %v7205_v39 = vsel %vm10516_vm3, 1.0, %v12365_v14  ;;  %v7204_v38 = vsel %vm10535_vm4, 1.0, %v12365_v14  ;;  %vm10581_vm6 = vcmp.eq.s32.totalorder %v9267_v2, %v10437_v10 }
 0x121   :  { %8424 = vmatpush3.msra.mxu1 %v2393_v63  ;;  %8397 = vmatprep.subr.msk.mxu0 %vm10193_vm9, %v12367_v31  ;;  %v10572_v43 = vsub.f32 %v7205_v39, %v7205_v39  ;;  %v10589_v8 = vsub.f32 %v7204_v38, %v7204_v38  ;;  %v7202_v36 = vsel %vm10581_vm6, 1.0, %v12365_v14 }
 0x122   :  { %8425 = vmatprep.subr.mxu1 %v2400_v17  ;;  %8398 = vmatpush3.msk.msra.mxu0 %vm10193_vm9, %v12367_v31  ;;  %v10555_v50 = vand.u32 4294901760, %v10524_v57 }
 0x123   :  { %8426 = vmatpush3.msra.mxu1 %v2400_v17  ;;  %8373 = vmatmul.mubr.f32.gmra.mxu0 %v9767_v21  ;;  %v10605_v29 = vand.u32 4294901760, %v10572_v43  ;;  %v10621_v63 = vand.u32 4294901760, %v10589_v8  ;;  %v10627_v17 = vsub.f32 %v7202_v36, %v7202_v36 }
 0x124   :  { %8399 = vmatprep.subr.msk.mxu0 %vm10204_vm10, %v12367_v31  ;;  %8427 = vmatprep.subr.mxu1 %v2407_v32  ;;  %v3066_v24 = vsub.f32 %v10524_v57, %v10555_v50 }
 0x125   :  { %8400 = vmatpush3.msk.msra.mxu0 %vm10204_vm10, %v12367_v31  ;;  %8409 = vmatprep.mubr.f32.mxu0 %v9783_v47  ;;  %v3087_v16 = vsub.f32 %v10589_v8, %v10621_v63 }
 0x126   :  { %8428 = vmatpush3.msra.mxu1 %v2407_v32  ;;  %8401 = vmatprep.subr.msk.mxu0 %vm10229_vm11, %v12367_v31  ;;  %v3067_v1 = vand.u32 4294901760, %v3066_v24 }
 0x127   :  { %8430 = vmatmul.mubr.f32.vlgmr.msra.gmra.mxu1 %v9751_v61  ;;  %8455 = vmatprep.subr.msk.mxu1 %vm110_vm0, %v10177_v41 }
 0x128   :  { %8402 = vmatpush3.msk.msra.mxu0 %vm10229_vm11, %v12367_v31  ;;  %8432 = vmatprep.mubr.f32.mxu1 %v9760_v56 }
 0x129   :  { %8456 = vmatpush3.msk.msra.mxu1 %vm110_vm0, %v10177_v41  ;;  %8403 = vmatprep.subr.msk.mxu0 %vm10248_vm12, %v12367_v31 }
 0x12a   :  { %8457 = vmatprep.subr.msk.mxu1 %vm10193_vm9, %v12367_v31  ;;  %8404 = vmatpush3.msk.msra.mxu0 %vm10248_vm12, %v12367_v31 }
 0x12b   :  { %8458 = vmatpush3.msk.msra.mxu1 %vm10193_vm9, %v12367_v31  ;;  %8405 = vmatprep.subr.msk.mxu0 %vm10275_vm13, %v12367_v31 }
 0x12c   :  { %8433 = vmatmul.mubr.f32.gmra.mxu1 %v9767_v21  ;;  %8459 = vmatprep.subr.msk.mxu1 %vm10204_vm10, %v12367_v31 }
 0x12d   :  { %8406 = vmatpush3.msk.msra.mxu0 %vm10275_vm13, %v12367_v31  ;;  %8460 = vmatpush3.msk.msra.mxu1 %vm10204_vm10, %v12367_v31 }
 0x12e   :  { %8469 = vmatprep.mubr.f32.mxu1 %v9744_v59  ;;  %8407 = vmatprep.subr.msk.mxu0 %vm10294_vm14, %v12367_v31 }
 0x12f   :  { %8461 = vmatprep.subr.msk.mxu1 %vm10229_vm11, %v12367_v31  ;;  %8408 = vmatpush3.msk.msra.mxu0 %vm10294_vm14, %v12367_v31 }
 0x130   :  { %8462 = vmatpush3.msk.msra.mxu1 %vm10229_vm11, %v12367_v31  ;;  %8410 = vmatmul.mubr.f32.vlgmr.msra.gmra.mxu0 %v9848_v28 }
 0x131   :  { %8435 = vmatprep.subr.mxu0 %v10211_v15  ;;  %8463 = vmatprep.subr.msk.mxu1 %vm10248_vm12, %v12367_v31 }
 0x132   :  { %8412 = vmatprep.mubr.f32.mxu0 %v9865_v46  ;;  %8436 = vmatpush3.msra.mxu0 %v10211_v15  ;;  %v10464_v15 = vsel %vm2907_vm15, 1.0, %v12365_v14 }
 0x133   :  { %8464 = vmatpush3.msk.msra.mxu1 %vm10248_vm12, %v12367_v31  ;;  %8437 = vmatprep.subr.mxu0 %v10237_v35 }
 0x134   :  { %8465 = vmatprep.subr.msk.mxu1 %vm10275_vm13, %v12367_v31  ;;  %8438 = vmatpush3.msra.mxu0 %v10237_v35  ;;  %v2923_v35 = vsel %vm110_vm0, %v10464_v15, 0 }
 0x135   :  { %8466 = vmatpush3.msk.msra.mxu1 %vm10275_vm13, %v12367_v31  ;;  %8413 = vmatmul.mubr.f32.gmra.mxu0 %v9871_v48  ;;  %v10498_v13 = vsub.f32 %v2923_v35, %v2923_v35  ;;  %v10642_v35 = vand.u32 4294901760, %v10627_v17 }
 0x136   :  { %8439 = vmatprep.subr.mxu0 %v10254_v4  ;;  %8467 = vmatprep.subr.msk.mxu1 %vm10294_vm14, %v12367_v31 }
 0x137   :  { %8440 = vmatpush3.msra.mxu0 %v10254_v4  ;;  %8449 = vmatprep.mubr.f32.mxu0 %v9731_v53 }
 0x138   :  { %8468 = vmatpush3.msk.msra.mxu1 %vm10294_vm14, %v12367_v31  ;;  %8441 = vmatprep.subr.mxu0 %v10285_v30 }
 0x139   :  { %8470 = vmatmul.mubr.f32.vlgmr.msra.gmra.mxu1 %v9792_v51  ;;  %8495 = vmatprep.subr.msk.mxu1 %vm110_vm0, %v10177_v41 }
 0x13a   :  { %8442 = vmatpush3.msra.mxu0 %v10285_v30  ;;  %8472 = vmatprep.mubr.f32.mxu1 %v9804_v19 }
 0x13b   :  { %8496 = vmatpush3.msk.msra.mxu1 %vm110_vm0, %v10177_v41  ;;  %8443 = vmatprep.subr.mxu0 %v10302_v37  ;;  %v7206_v41 = vsel %vm10491_vm2, 1.0, %v12365_v14 }
 0x13c   :  { %8497 = vmatprep.subr.msk.mxu1 %vm10193_vm9, %v12367_v31  ;;  %8444 = vmatpush3.msra.mxu0 %v10302_v37  ;;  %v10531_v37 = vand.u32 4294901760, %v10498_v13  ;;  %v10541_v54 = vsub.f32 %v7206_v41, %v7206_v41 }
 0x13d   :  { %8498 = vmatpush3.msk.msra.mxu1 %vm10193_vm9, %v12367_v31  ;;  %8445 = vmatprep.subr.mxu0 %v10329_v58 }
 0x13e   :  { %8473 = vmatmul.mubr.f32.gmra.mxu1 %v9810_v34  ;;  %8499 = vmatprep.subr.msk.mxu1 %vm10204_vm10, %v12367_v31  ;;  %v3059_v49 = vsub.f32 %v10498_v13, %v10531_v37 }
 0x13f   :  { %8446 = vmatpush3.msra.mxu0 %v10329_v58  ;;  %8500 = vmatpush3.msk.msra.mxu1 %vm10204_vm10, %v12367_v31 }
 0x140   :  { %8509 = vmatprep.mubr.f32.mxu1 %v9715_v44  ;;  %8447 = vmatprep.subr.mxu0 %v10340_v25  ;;  %v3060_v52 = vand.u32 4294901760, %v3059_v49  ;;  %v3101_v49 = vsub.f32 %v10627_v17, %v10642_v35 }
 0x141   :  { %8501 = vmatprep.subr.msk.mxu1 %vm10229_vm11, %v12367_v31  ;;  %8448 = vmatpush3.msra.mxu0 %v10340_v25  ;;  %v10577_v25 = vand.u32 4294901760, %v10541_v54 }
 0x142   :  { %8502 = vmatpush3.msk.msra.mxu1 %vm10229_vm11, %v12367_v31  ;;  %8450 = vmatmul.mubr.f32.vlgmr.msra.gmra.mxu0 %v9770_v3  ;;  %v3102_v24 = vand.u32 4294901760, %v3101_v49 }
 0x143   :  { %8475 = vmatprep.subr.mxu0 %v10244_v20  ;;  %8503 = vmatprep.subr.msk.mxu1 %vm10248_vm12, %v12367_v31 }
 0x144   :  { %8452 = vmatprep.mubr.f32.mxu0 %v9778_v42  ;;  %8476 = vmatpush3.msra.mxu0 %v10244_v20  ;;  %v7203_v20 = vsel %vm10562_vm5, 1.0, %v12365_v14 }
 0x145   :  { %8504 = vmatpush3.msk.msra.mxu1 %vm10248_vm12, %v12367_v31  ;;  %8477 = vmatprep.subr.mxu0 %v10268_v0  ;;  %v10616_v7 = vsub.f32 %v7203_v20, %v7203_v20 }
 0x146   :  { %8505 = vmatprep.subr.msk.mxu1 %vm10275_vm13, %v12367_v31  ;;  %8478 = vmatpush3.msra.mxu0 %v10268_v0  ;;  %v3073_v0 = vsub.f32 %v10541_v54, %v10577_v25  ;;  %v8071_v26 = vpop.f32.mrf.mxu1 }
 0x147   :  { %8506 = vmatpush3.msk.msra.mxu1 %vm10275_vm13, %v12367_v31  ;;  %8453 = vmatmul.mubr.f32.gmra.mxu0 %v9789_v22  ;;  %v10635_v10 = vand.u32 4294901760, %v10616_v7 }
 0x148   :  { %8479 = vmatprep.subr.mxu0 %v10290_v27  ;;  %8507 = vmatprep.subr.msk.mxu1 %vm10294_vm14, %v12367_v31  ;;  %v3074_v32 = vand.u32 4294901760, %v3073_v0 }
 0x149   :  { %8480 = vmatpush3.msra.mxu0 %v10290_v27  ;;  %8489 = vmatprep.mubr.f32.mxu0 %v9715_v44  ;;  %v3080_v27 = vsub.f32 %v10572_v43, %v10605_v29  ;;  %v3094_v38 = vsub.f32 %v10616_v7, %v10635_v10 }
 0x14a   :  { %8508 = vmatpush3.msk.msra.mxu1 %vm10294_vm14, %v12367_v31  ;;  %8481 = vmatprep.subr.mxu0 %v10318_v33 }
 0x14b   :  { %8510 = vmatmul.mubr.f32.vlgmr.msra.gmra.mxu1 %v9751_v61  ;;  %8535 = vmatprep.subr.mxu1 %v3060_v52  ;;  %v3081_v41 = vand.u32 4294901760, %v3080_v27  ;;  %v3095_v20 = vand.u32 4294901760, %v3094_v38 }
 0x14c   :  { %8482 = vmatpush3.msra.mxu0 %v10318_v33  ;;  %8512 = vmatprep.mubr.f32.mxu1 %v9760_v56 }
 0x14d   :  { %8536 = vmatpush3.msra.mxu1 %v3060_v52  ;;  %8483 = vmatprep.subr.mxu0 %v10334_v60 }
 0x14e   :  { %8537 = vmatprep.subr.mxu1 %v3067_v1  ;;  %8484 = vmatpush3.msra.mxu0 %v10334_v60  ;;  %v8051_v33 = vpop.f32.mrf.mxu0  ;;  %v3088_v60 = vand.u32 4294901760, %v3087_v16 }
 0x14f   :  { %8538 = vmatpush3.msra.mxu1 %v3067_v1  ;;  %8485 = vmatprep.subr.mxu0 %v10348_v55  ;;  %v335_v39 = vadd.f32 %v8071_v26, %v8051_v33 }
 0x150   :  { %8513 = vmatmul.mubr.f32.gmra.mxu1 %v9767_v21  ;;  %8539 = vmatprep.subr.mxu1 %v3074_v32  ;;  %v10665_v52 = vpop.f32.mrf.mxu0 }
 0x151   :  { %8486 = vmatpush3.msra.mxu0 %v10348_v55  ;;  %8540 = vmatpush3.msra.mxu1 %v3074_v32  ;;  %v10657_v55 = vpop.f32.mrf.mxu1 }
 0x152   :  { %8549 = vmatprep.mubr.f32.mxu1 %v9715_v44  ;;  %8487 = vmatprep.subr.mxu0 %v10355_v62 }
 0x153   :  { %8541 = vmatprep.subr.mxu1 %v3081_v41  ;;  %8488 = vmatpush3.msra.mxu0 %v10355_v62  ;;  %v8074_v62 = vpop.f32.mrf.mxu1 }
 0x154   :  { %8542 = vmatpush3.msra.mxu1 %v3081_v41  ;;  %8490 = vmatmul.mubr.f32.vlgmr.msra.gmra.mxu0 %v9751_v61 }
 0x155   :  { %8515 = vmatprep.subr.msk.mxu0 %vm110_vm0, %v10464_v15  ;;  %8543 = vmatprep.subr.mxu1 %v3088_v60  ;;  %v10678_v1 = vpop.f32.mrf.mxu1 }
 0x156   :  { %8492 = vmatprep.mubr.f32.mxu0 %v9760_v56  ;;  %8516 = vmatpush3.msk.msra.mxu0 %vm110_vm0, %v10464_v15 }
 0x157   :  { %8544 = vmatpush3.msra.mxu1 %v3088_v60  ;;  %8517 = vmatprep.subr.msk.mxu0 %vm10480_vm1, %v12367_v31  ;;  %v8111_v32 = vpop.f32.mrf.mxu1 }
 0x158   :  { %8545 = vmatprep.subr.mxu1 %v3095_v20  ;;  %8518 = vmatpush3.msk.msra.mxu0 %vm10480_vm1, %v12367_v31 }
 0x159   :  { %8546 = vmatpush3.msra.mxu1 %v3095_v20  ;;  %8493 = vmatmul.mubr.f32.gmra.mxu0 %v9767_v21  ;;  %v8054_v36 = vpop.f32.mrf.mxu0  ;;  %v533_v41 = vpop.f32.mrf.mxu1 }
 0x15a   :  { %8519 = vmatprep.subr.msk.mxu0 %vm10491_vm2, %v12367_v31  ;;  %8547 = vmatprep.subr.mxu1 %v3102_v24  ;;  %v347_v0 = vadd.f32 %v8074_v62, %v8054_v36 }
 0x15b   :  { %8520 = vmatpush3.msk.msra.mxu0 %vm10491_vm2, %v12367_v31  ;;  %8529 = vmatprep.mubr.f32.mxu0 %v9783_v47  ;;  %v10683_v27 = vpop.f32.mrf.mxu0 }
 0x15c   :  { %8548 = vmatpush3.msra.mxu1 %v3102_v24  ;;  %8521 = vmatprep.subr.msk.mxu0 %vm10516_vm3, %v12367_v31  ;;  %v8114_v20 = vpop.f32.mrf.mxu1 }
 0x15d   :  { %8550 = vmatmul.mubr.f32.vlgmr.msra.gmra.mxu1 %v9751_v61  ;;  %8575 = vmatprep.subr.msk.mxu1 %vm110_vm0, %v10464_v15 }
 0x15e   :  { %8522 = vmatpush3.msk.msra.mxu0 %vm10516_vm3, %v12367_v31  ;;  %8552 = vmatprep.mubr.f32.mxu1 %v9760_v56  ;;  %v549_v36 = vpop.f32.mrf.mxu1 }
 0x15f   :  { %8576 = vmatpush3.msk.msra.mxu1 %vm110_vm0, %v10464_v15  ;;  %8523 = vmatprep.subr.msk.mxu0 %vm10535_vm4, %v12367_v31 }
 0x160   :  { %8577 = vmatprep.subr.msk.mxu1 %vm10480_vm1, %v12367_v31  ;;  %8524 = vmatpush3.msk.msra.mxu0 %vm10535_vm4, %v12367_v31  ;;  %v8091_v16 = vpop.f32.mrf.mxu0 }
 0x161   :  { %8578 = vmatpush3.msk.msra.mxu1 %vm10480_vm1, %v12367_v31  ;;  %8525 = vmatprep.subr.msk.mxu0 %vm10562_vm5, %v12367_v31  ;;  %v440_v26 = vadd.f32 %v8091_v16, %v335_v39  ;;  %v10732_v39 = vld [vmem:[%s12363_s1 + $0x4] ss:$0 sm:$0xff] }
 0x162   :  { %8553 = vmatmul.mubr.f32.gmra.mxu1 %v9767_v21  ;;  %8579 = vmatprep.subr.msk.mxu1 %vm10491_vm2, %v12367_v31  ;;  %v432_v33 = vpop.f32.mrf.mxu0  ;;  %vm3602_vm7 = vcmp.eq.s32.totalorder %v9276_v5, %v10732_v39  ;;  %vm10769_vm8 = vcmp.eq.s32.totalorder %v9279_v6, %v10732_v39  ;;  %vm10793_vm9 = vcmp.eq.s32.totalorder %v9288_v9, %v10732_v39 }
 0x163   :  { %8526 = vmatpush3.msk.msra.mxu0 %vm10562_vm5, %v12367_v31  ;;  %8580 = vmatpush3.msk.msra.mxu1 %vm10491_vm2, %v12367_v31  ;;  %v542_v38 = vadd.f32 %v8111_v32, %v440_v26  ;;  %vm10819_vm10 = vcmp.eq.s32.totalorder %v9297_v11, %v10732_v39  ;;  %vm10836_vm11 = vcmp.eq.s32.totalorder %v9300_v12, %v10732_v39 }
 0x164   :  { %8589 = vmatprep.mubr.f32.mxu1 %v9744_v59  ;;  %8527 = vmatprep.subr.msk.mxu0 %vm10581_vm6, %v12367_v31  ;;  %v7234_v4 = vsel %vm10819_vm10, 1.0, %v12365_v14  ;;  %vm10867_vm12 = vcmp.eq.s32.totalorder %v9317_v18, %v10732_v39  ;;  %vm10887_vm13 = vcmp.eq.s32.totalorder %v9267_v2, %v10732_v39 }
 0x165   :  { %8581 = vmatprep.subr.msk.mxu1 %vm10516_vm3, %v12367_v31  ;;  %8528 = vmatpush3.msk.msra.mxu0 %vm10581_vm6, %v12367_v31  ;;  %v8094_v60 = vpop.f32.mrf.mxu0 }
 0x166   :  { %8582 = vmatpush3.msk.msra.mxu1 %vm10516_vm3, %v12367_v31  ;;  %8530 = vmatmul.mubr.f32.vlgmr.msra.gmra.mxu0 %v9848_v28  ;;  %v454_v49 = vadd.f32 %v8094_v60, %v347_v0 }
 0x167   :  { %8555 = vmatprep.subr.mxu0 %v10498_v13  ;;  %8583 = vmatprep.subr.msk.mxu1 %vm10535_vm4, %v12367_v31  ;;  %v446_v16 = vpop.f32.mrf.mxu0 }
 0x168   :  { %8532 = vmatprep.mubr.f32.mxu0 %v9865_v46  ;;  %8556 = vmatpush3.msra.mxu0 %v10498_v13  ;;  %v10746_v24 = vadd.f32 %v8114_v20, %v454_v49  ;;  %v10761_v13 = vsel %vm3602_vm7, 1.0, %v12365_v14 }
 0x169   :  { %8584 = vmatpush3.msk.msra.mxu1 %vm10535_vm4, %v12367_v31  ;;  %8557 = vmatprep.subr.mxu0 %v10524_v57  ;;  %v3618_v0 = vsel %vm110_vm0, %v10761_v13, 0 }
 0x16a   :  { %8585 = vmatprep.subr.msk.mxu1 %vm10562_vm5, %v12367_v31  ;;  %8558 = vmatpush3.msra.mxu0 %v10524_v57  ;;  %v329_v57 = vadd.f32 %v10657_v55, %v10665_v52  ;;  %v8151_v52 = vpop.f32.mrf.mxu1  ;;  %v10800_v26 = vsub.f32 %v3618_v0, %v3618_v0 }
 0x16b   :  { %8586 = vmatpush3.msk.msra.mxu1 %vm10562_vm5, %v12367_v31  ;;  %8533 = vmatmul.mubr.f32.gmra.mxu0 %v9871_v48 }
 0x16c   :  { %8559 = vmatprep.subr.mxu0 %v10541_v54  ;;  %8587 = vmatprep.subr.msk.mxu1 %vm10581_vm6, %v12367_v31  ;;  %v433_v55 = vadd.f32 %v432_v33, %v329_v57  ;;  %v341_v33 = vadd.f32 %v10678_v1, %v10683_v27  ;;  %v745_v49 = vpop.f32.mrf.mxu1  ;;  %v10832_v57 = vand.u32 4294901760, %v10800_v26 }
 0x16d   :  { %8560 = vmatpush3.msra.mxu0 %v10541_v54  ;;  %8569 = vmatprep.mubr.f32.mxu0 %v9731_v53  ;;  %v7236_v54 = vsel %vm10769_vm8, 1.0, %v12365_v14 }
 0x16e   :  { %8588 = vmatpush3.msk.msra.mxu1 %vm10581_vm6, %v12367_v31  ;;  %8561 = vmatprep.subr.mxu0 %v10572_v43  ;;  %v534_v1 = vadd.f32 %v533_v41, %v433_v55  ;;  %v447_v40 = vadd.f32 %v446_v16, %v341_v33  ;;  %v8154_v55 = vpop.f32.mrf.mxu1  ;;  %v7233_v33 = vsel %vm10836_vm11, 1.0, %v12365_v14  ;;  %v3754_v30 = vsub.f32 %v10800_v26, %v10832_v57 }
 0x16f   :  { %8590 = vmatmul.mubr.f32.vlgmr.msra.gmra.mxu1 %v9792_v51  ;;  %8615 = vmatprep.subr.msk.mxu1 %vm110_vm0, %v10464_v15 }
 0x170   :  { %8562 = vmatpush3.msra.mxu0 %v10572_v43  ;;  %8592 = vmatprep.mubr.f32.mxu1 %v9804_v19  ;;  %v10806_v43 = vsub.f32 %v7236_v54, %v7236_v54 }
 0x171   :  { %8616 = vmatpush3.msk.msra.mxu1 %vm110_vm0, %v10464_v15  ;;  %8563 = vmatprep.subr.mxu0 %v10589_v8  ;;  %v7235_v15 = vsel %vm10793_vm9, 1.0, %v12365_v14 }
 0x172   :  { %8617 = vmatprep.subr.msk.mxu1 %vm10480_vm1, %v12367_v31  ;;  %8564 = vmatpush3.msra.mxu0 %v10589_v8  ;;  %v8131_v60 = vpop.f32.mrf.mxu0  ;;  %v10854_v54 = vand.u32 4294901760, %v10806_v43 }
 0x173   :  { %8618 = vmatpush3.msk.msra.mxu1 %vm10480_vm1, %v12367_v31  ;;  %8565 = vmatprep.subr.mxu0 %v10616_v7  ;;  %v656_v20 = vadd.f32 %v8131_v60, %v542_v38 }
 0x174   :  { %8593 = vmatmul.mubr.f32.gmra.mxu1 %v9810_v34  ;;  %8619 = vmatprep.subr.msk.mxu1 %vm10491_vm2, %v12367_v31  ;;  %v649_v27 = vpop.f32.mrf.mxu0  ;;  %v3761_v39 = vsub.f32 %v10806_v43, %v10854_v54 }
 0x175   :  { %8566 = vmatpush3.msra.mxu0 %v10616_v7  ;;  %8620 = vmatpush3.msk.msra.mxu1 %vm10491_vm2, %v12367_v31  ;;  %v10840_v38 = vadd.f32 %v8151_v52, %v656_v20  ;;  %v650_v0 = vadd.f32 %v649_v27, %v534_v1  ;;  %v10844_v7 = vsub.f32 %v7235_v15, %v7235_v15 }
 0x176   :  { %8629 = vmatprep.mubr.f32.mxu1 %v9715_v44  ;;  %8567 = vmatprep.subr.mxu0 %v10627_v17  ;;  %v550_v15 = vadd.f32 %v549_v36, %v447_v40  ;;  %v10897_v27 = vsub.f32 %v7233_v33, %v7233_v33 }
 0x177   :  { %8621 = vmatprep.subr.msk.mxu1 %vm10516_vm3, %v12367_v31  ;;  %8568 = vmatpush3.msra.mxu0 %v10627_v17  ;;  %v10856_v52 = vadd.f32 %v745_v49, %v650_v0  ;;  %v8134_v16 = vpop.f32.mrf.mxu0  ;;  %v10878_v49 = vsub.f32 %v7234_v4, %v7234_v4  ;;  %v10883_v1 = vand.u32 4294901760, %v10844_v7  ;;  %v757_v0 = vpop.f32.mrf.mxu1  ;;  %v3755_v4 = vand.u32 4294901760, %v3754_v30 }
 0x178   :  { %8622 = vmatpush3.msk.msra.mxu1 %vm10516_vm3, %v12367_v31  ;;  %8570 = vmatmul.mubr.f32.vlgmr.msra.gmra.mxu0 %v9770_v3  ;;  %v668_v60 = vadd.f32 %v8134_v16, %v10746_v24  ;;  %v7231_v16 = vsel %vm10887_vm13, 1.0, %v12365_v14  ;;  %v10931_v33 = vand.u32 4294901760, %v10897_v27 }
 0x179   :  { %8595 = vmatprep.subr.mxu0 %v10531_v37  ;;  %8623 = vmatprep.subr.msk.mxu1 %vm10535_vm4, %v12367_v31  ;;  %v661_v20 = vpop.f32.mrf.mxu0 }
 0x17a   :  { %8572 = vmatprep.mubr.f32.mxu0 %v9778_v42  ;;  %8596 = vmatpush3.msra.mxu0 %v10531_v37  ;;  %v10891_v36 = vadd.f32 %v8154_v55, %v668_v60  ;;  %v662_v40 = vadd.f32 %v661_v20, %v550_v15  ;;  %v7232_v37 = vsel %vm10867_vm12, 1.0, %v12365_v14  ;;  %v10915_v55 = vand.u32 4294901760, %v10878_v49  ;;  %v8191_v30 = vpop.f32.mrf.mxu1 }
 0x17b   :  { %8624 = vmatpush3.msk.msra.mxu1 %vm10535_vm4, %v12367_v31  ;;  %8597 = vmatprep.subr.mxu0 %v10555_v50  ;;  %v10926_v58 = vsub.f32 %v7232_v37, %v7232_v37  ;;  %v3762_v60 = vand.u32 4294901760, %v3761_v39  ;;  %v10937_v15 = vsub.f32 %v7231_v16, %v7231_v16 }
 0x17c   :  { %12473 = vst [vmem:[#allocation6_spill] sm:$0xff] %v10891_v36  ;;  %8625 = vmatprep.subr.msk.mxu1 %vm10562_vm5, %v12367_v31  ;;  %8598 = vmatpush3.msra.mxu0 %v10555_v50  ;;  %v10908_v23 = vadd.f32 %v757_v0, %v662_v40  ;;  %v3768_v50 = vsub.f32 %v10844_v7, %v10883_v1  ;;  %v1054_v39 = vpop.f32.mrf.mxu1 }
 0x17d   :  { %8626 = vmatpush3.msk.msra.mxu1 %vm10562_vm5, %v12367_v31  ;;  %8573 = vmatmul.mubr.f32.gmra.mxu0 %v9789_v22  ;;  %v10945_v45 = vand.u32 4294901760, %v10926_v58  ;;  %v3782_v40 = vsub.f32 %v10897_v27, %v10931_v33  ;;  %v10952_v37 = vand.u32 4294901760, %v10937_v15 }
 0x17e   :  { %12474 = vst [vmem:[#allocation7_spill] sm:$0xff] %v10908_v23  ;;  %8599 = vmatprep.subr.mxu0 %v10577_v25  ;;  %8627 = vmatprep.subr.msk.mxu1 %vm10581_vm6, %v12367_v31  ;;  %v3769_v20 = vand.u32 4294901760, %v3768_v50 }
 0x17f   :  { %8600 = vmatpush3.msra.mxu0 %v10577_v25  ;;  %8609 = vmatprep.mubr.f32.mxu0 %v9715_v44  ;;  %v3775_v25 = vsub.f32 %v10878_v49, %v10915_v55 }
 0x180   :  { %8628 = vmatpush3.msk.msra.mxu1 %vm10581_vm6, %v12367_v31  ;;  %8601 = vmatprep.subr.mxu0 %v10605_v29  ;;  %v8194_v14 = vpop.f32.mrf.mxu1 }
 0x181   :  { %8630 = vmatmul.mubr.f32.vlgmr.msra.gmra.mxu1 %v9751_v61  ;;  %8655 = vmatprep.subr.mxu1 %v3755_v4 }
 0x182   :  { %8602 = vmatpush3.msra.mxu0 %v10605_v29  ;;  %8632 = vmatprep.mubr.f32.mxu1 %v9760_v56  ;;  %v3776_v29 = vand.u32 4294901760, %v3775_v25 }
 0x183   :  { %8656 = vmatpush3.msra.mxu1 %v3755_v4  ;;  %8603 = vmatprep.subr.mxu0 %v10621_v63  ;;  %v3789_v4 = vsub.f32 %v10926_v58, %v10945_v45 }
 0x184   :  { %8657 = vmatprep.subr.mxu1 %v3762_v60  ;;  %8604 = vmatpush3.msra.mxu0 %v10621_v63  ;;  %v8171_v0 = vpop.f32.mrf.mxu0  ;;  %v3783_v63 = vand.u32 4294901760, %v3782_v40 }
 0x185   :  { %8658 = vmatpush3.msra.mxu1 %v3762_v60  ;;  %8605 = vmatprep.subr.mxu0 %v10635_v10  ;;  %v1061_v16 = vadd.f32 %v8191_v30, %v8171_v0  ;;  %v3796_v60 = vsub.f32 %v10937_v15, %v10952_v37  ;;  %v3790_v30 = vand.u32 4294901760, %v3789_v4 }
 0x186   :  { %8633 = vmatmul.mubr.f32.gmra.mxu1 %v9767_v21  ;;  %8659 = vmatprep.subr.mxu1 %v3769_v20  ;;  %v918_v50 = vpop.f32.mrf.mxu0 }
 0x187   :  { %8606 = vmatpush3.msra.mxu0 %v10635_v10  ;;  %8660 = vmatpush3.msra.mxu1 %v3769_v20  ;;  %v1055_v31 = vadd.f32 %v1054_v39, %v918_v50  ;;  %v1066_v20 = vpop.f32.mrf.mxu1  ;;  %v3797_v0 = vand.u32 4294901760, %v3796_v60 }
 0x188   :  { %8669 = vmatprep.mubr.f32.mxu1 %v9715_v44  ;;  %8607 = vmatprep.subr.mxu0 %v10642_v35 }
 0x189   :  { %8661 = vmatprep.subr.mxu1 %v3776_v29  ;;  %8608 = vmatpush3.msra.mxu0 %v10642_v35  ;;  %v8174_v25 = vpop.f32.mrf.mxu0  ;;  %v12475_v35 = vmov 1.0  }
 0x18a   :  { %8662 = vmatpush3.msra.mxu1 %v3776_v29  ;;  %8610 = vmatmul.mubr.f32.vlgmr.msra.gmra.mxu0 %v9751_v61  ;;  %v1073_v10 = vadd.f32 %v8194_v14, %v8174_v25 }
 0x18b   :  { %8635 = vmatprep.subr.msk.mxu0 %vm110_vm0, %v10761_v13  ;;  %8663 = vmatprep.subr.mxu1 %v3783_v63  ;;  %v938_v40 = vpop.f32.mrf.mxu0 }
 0x18c   :  { %8612 = vmatprep.mubr.f32.mxu0 %v9760_v56  ;;  %8636 = vmatpush3.msk.msra.mxu0 %vm110_vm0, %v10761_v13  ;;  %v1067_v39 = vadd.f32 %v1066_v20, %v938_v40 }
 0x18d   :  { %8664 = vmatpush3.msra.mxu1 %v3783_v63  ;;  %8637 = vmatprep.subr.msk.mxu0 %vm10769_vm8, %v12475_v35  ;;  %v8231_v14 = vpop.f32.mrf.mxu1 }
 0x18e   :  { %8665 = vmatprep.subr.mxu1 %v3790_v30  ;;  %8638 = vmatpush3.msk.msra.mxu0 %vm10769_vm8, %v12475_v35 }
 0x18f   :  { %8666 = vmatpush3.msra.mxu1 %v3790_v30  ;;  %8613 = vmatmul.mubr.f32.gmra.mxu0 %v9767_v21  ;;  %v1259_v4 = vpop.f32.mrf.mxu1 }
 0x190   :  { %8639 = vmatprep.subr.msk.mxu0 %vm10793_vm9, %v12475_v35  ;;  %8667 = vmatprep.subr.mxu1 %v3797_v0 }
 0x191   :  { %8640 = vmatpush3.msk.msra.mxu0 %vm10793_vm9, %v12475_v35  ;;  %8649 = vmatprep.mubr.f32.mxu0 %v9783_v47 }
 0x192   :  { %8668 = vmatpush3.msra.mxu1 %v3797_v0  ;;  %8641 = vmatprep.subr.msk.mxu0 %vm10819_vm10, %v12475_v35 }
 0x193   :  { %8670 = vmatmul.mubr.f32.vlgmr.msra.gmra.mxu1 %v9751_v61  ;;  %8695 = vmatprep.subr.msk.mxu1 %vm110_vm0, %v10761_v13 }
 0x194   :  { %8642 = vmatpush3.msk.msra.mxu0 %vm10819_vm10, %v12475_v35  ;;  %8672 = vmatprep.mubr.f32.mxu1 %v9760_v56 }
 0x195   :  { %8696 = vmatpush3.msk.msra.mxu1 %vm110_vm0, %v10761_v13  ;;  %8643 = vmatprep.subr.msk.mxu0 %vm10836_vm11, %v12475_v35 }
 0x196   :  { %8697 = vmatprep.subr.msk.mxu1 %vm10769_vm8, %v12475_v35  ;;  %8644 = vmatpush3.msk.msra.mxu0 %vm10836_vm11, %v12475_v35  ;;  %v8211_v29 = vpop.f32.mrf.mxu0 }
 0x197   :  { %8698 = vmatpush3.msk.msra.mxu1 %vm10769_vm8, %v12475_v35  ;;  %8645 = vmatprep.subr.msk.mxu0 %vm10867_vm12, %v12475_v35  ;;  %v1166_v50 = vadd.f32 %v8211_v29, %v1061_v16  ;;  %v11034_v16 = vld [vmem:[%s12363_s1 + $0x5] ss:$0 sm:$0xff] }
 0x198   :  { %8673 = vmatmul.mubr.f32.gmra.mxu1 %v9767_v21  ;;  %8699 = vmatprep.subr.msk.mxu1 %vm10793_vm9, %v12475_v35  ;;  %v1158_v63 = vpop.f32.mrf.mxu0  ;;  %vm4297_vm14 = vcmp.eq.s32.totalorder %v9276_v5, %v11034_v16  ;;  %vm11079_vm15 = vcmp.eq.s32.totalorder %v9279_v6, %v11034_v16  ;;  %vm11090_vm1 = vcmp.eq.s32.totalorder %v9288_v9, %v11034_v16 }
 0x199   :  { %8646 = vmatpush3.msk.msra.mxu0 %vm10867_vm12, %v12475_v35  ;;  %8700 = vmatpush3.msk.msra.mxu1 %vm10793_vm9, %v12475_v35  ;;  %v1159_v60 = vadd.f32 %v1158_v63, %v1055_v31  ;;  %v1268_v25 = vadd.f32 %v8231_v14, %v1166_v50  ;;  %v8234_v31 = vpop.f32.mrf.mxu1  ;;  %vm11115_vm2 = vcmp.eq.s32.totalorder %v9297_v11, %v11034_v16 }
 0x19a   :  { %8709 = vmatprep.mubr.f32.mxu1 %v9744_v59  ;;  %8647 = vmatprep.subr.msk.mxu0 %vm10887_vm13, %v12475_v35  ;;  %vm11134_vm3 = vcmp.eq.s32.totalorder %v9300_v12, %v11034_v16  ;;  %vm11162_vm4 = vcmp.eq.s32.totalorder %v9317_v18, %v11034_v16  ;;  %vm11182_vm5 = vcmp.eq.s32.totalorder %v9267_v2, %v11034_v16 }
 0x19b   :  { %8701 = vmatprep.subr.msk.mxu1 %vm10819_vm10, %v12475_v35  ;;  %8648 = vmatpush3.msk.msra.mxu0 %vm10887_vm13, %v12475_v35  ;;  %v8214_v30 = vpop.f32.mrf.mxu0  ;;  %v1260_v20 = vadd.f32 %v1259_v4, %v1159_v60 }
 0x19c   :  { %8702 = vmatpush3.msk.msra.mxu1 %vm10819_vm10, %v12475_v35  ;;  %8650 = vmatmul.mubr.f32.vlgmr.msra.gmra.mxu0 %v9848_v28  ;;  %v1180_v40 = vadd.f32 %v8214_v30, %v1073_v10  ;;  %v1275_v10 = vpop.f32.mrf.mxu1 }
 0x19d   :  { %8675 = vmatprep.subr.mxu0 %v10800_v26  ;;  %8703 = vmatprep.subr.msk.mxu1 %vm10836_vm11, %v12475_v35  ;;  %v1172_v0 = vpop.f32.mrf.mxu0 }
 0x19e   :  { %8652 = vmatprep.mubr.f32.mxu0 %v9865_v46  ;;  %8676 = vmatpush3.msra.mxu0 %v10800_v26  ;;  %v1173_v14 = vadd.f32 %v1172_v0, %v1067_v39  ;;  %v1284_v29 = vadd.f32 %v8234_v31, %v1180_v40  ;;  %v12476_v26 = vmov 0.0  }
 0x19f   :  { %8704 = vmatpush3.msk.msra.mxu1 %vm10836_vm11, %v12475_v35  ;;  %8677 = vmatprep.subr.mxu0 %v10806_v43  ;;  %v11063_v39 = vsel %vm4297_vm14, 1.0, %v12476_v26  ;;  %v7265_v31 = vsel %vm11079_vm15, 1.0, %v12476_v26  ;;  %v7263_v32 = vsel %vm11115_vm2, 1.0, %v12476_v26 }
 0x1a0   :  { %8705 = vmatprep.subr.msk.mxu1 %vm10867_vm12, %v12475_v35  ;;  %8678 = vmatpush3.msra.mxu0 %v10806_v43  ;;  %v11056_v4 = vadd.f32 %v1275_v10, %v1173_v14  ;;  %v4313_v43 = vsel %vm110_vm0, %v11063_v39, 0  ;;  %v11123_v62 = vsub.f32 %v7265_v31, %v7265_v31 }
 0x1a1   :  { %8706 = vmatpush3.msk.msra.mxu1 %vm10867_vm12, %v12475_v35  ;;  %8653 = vmatmul.mubr.f32.gmra.mxu0 %v9871_v48  ;;  %v11097_v60 = vsub.f32 %v4313_v43, %v4313_v43 }
 0x1a2   :  { %8679 = vmatprep.subr.mxu0 %v10844_v7  ;;  %8707 = vmatprep.subr.msk.mxu1 %vm10887_vm13, %v12475_v35 }
 0x1a3   :  { %8680 = vmatpush3.msra.mxu0 %v10844_v7  ;;  %8689 = vmatprep.mubr.f32.mxu0 %v9731_v53  ;;  %v8271_v7 = vpop.f32.mrf.mxu1  ;;  %v11130_v14 = vand.u32 4294901760, %v11097_v60 }
 0x1a4   :  { %8708 = vmatpush3.msk.msra.mxu1 %vm10887_vm13, %v12475_v35  ;;  %8681 = vmatprep.subr.mxu0 %v10878_v49 }
 0x1a5   :  { %8710 = vmatmul.mubr.f32.vlgmr.msra.gmra.mxu1 %v9792_v51  ;;  %8735 = vmatprep.subr.msk.mxu1 %vm110_vm0, %v10761_v13  ;;  %v1471_v40 = vpop.f32.mrf.mxu1  ;;  %v4449_v8 = vsub.f32 %v11097_v60, %v11130_v14 }
 0x1a6   :  { %8682 = vmatpush3.msra.mxu0 %v10878_v49  ;;  %8712 = vmatprep.mubr.f32.mxu1 %v9804_v19 }
 0x1a7   :  { %8736 = vmatpush3.msk.msra.mxu1 %vm110_vm0, %v10761_v13  ;;  %8683 = vmatprep.subr.mxu0 %v10897_v27  ;;  %v7264_v13 = vsel %vm11090_vm1, 1.0, %v12476_v26  ;;  %v8274_v31 = vpop.f32.mrf.mxu1 }
 0x1a8   :  { %8737 = vmatprep.subr.msk.mxu1 %vm10769_vm8, %v12475_v35  ;;  %8684 = vmatpush3.msra.mxu0 %v10897_v27  ;;  %v8251_v49 = vpop.f32.mrf.mxu0 }
 0x1a9   :  { %8738 = vmatpush3.msk.msra.mxu1 %vm10769_vm8, %v12475_v35  ;;  %8685 = vmatprep.subr.mxu0 %v10926_v58  ;;  %v1382_v0 = vadd.f32 %v8251_v49, %v1268_v25 }
 0x1aa   :  { %8713 = vmatmul.mubr.f32.gmra.mxu1 %v9810_v34  ;;  %8739 = vmatprep.subr.msk.mxu1 %vm10793_vm9, %v12475_v35  ;;  %v1375_v27 = vpop.f32.mrf.mxu0 }
 0x1ab   :  { %8686 = vmatpush3.msra.mxu0 %v10926_v58  ;;  %8740 = vmatpush3.msk.msra.mxu1 %vm10793_vm9, %v12475_v35  ;;  %v1478_v10 = vadd.f32 %v8271_v7, %v1382_v0  ;;  %v1376_v43 = vadd.f32 %v1375_v27, %v1260_v20  ;;  %v11140_v58 = vsub.f32 %v7264_v13, %v7264_v13  ;;  %v11155_v13 = vand.u32 4294901760, %v11123_v62 }
 0x1ac   :  { %8749 = vmatprep.mubr.f32.mxu1 %v9715_v44  ;;  %8687 = vmatprep.subr.mxu0 %v10937_v15  ;;  %v7262_v0 = vsel %vm11134_vm3, 1.0, %v12476_v26  ;;  %v11172_v27 = vsub.f32 %v7263_v32, %v7263_v32 }
 0x1ad   :  { %8741 = vmatprep.subr.msk.mxu1 %vm10819_vm10, %v12475_v35  ;;  %8688 = vmatpush3.msra.mxu0 %v10937_v15  ;;  %v1494_v7 = vmul.f32 %v1478_v10, %v10840_v38  ;;  %v1472_v20 = vadd.f32 %v1471_v40, %v1376_v43  ;;  %v8254_v49 = vpop.f32.mrf.mxu0  ;;  %v4456_v41 = vsub.f32 %v11123_v62, %v11155_v13 }
 0x1ae   :  { %8742 = vmatpush3.msk.msra.mxu1 %vm10819_vm10, %v12475_v35  ;;  %8690 = vmatmul.mubr.f32.vlgmr.msra.gmra.mxu0 %v9770_v3  ;;  %v1394_v40 = vadd.f32 %v8254_v49, %v1284_v29  ;;  %v11178_v29 = vand.u32 4294901760, %v11140_v58 }
 0x1af   :  { %8715 = vmatprep.subr.mxu0 %v10832_v57  ;;  %8743 = vmatprep.subr.msk.mxu1 %vm10836_vm11, %v12475_v35  ;;  %v1493_v10 = vmul.f32 %v1472_v20, %v10856_v52  ;;  %v1387_v43 = vpop.f32.mrf.mxu0  ;;  %v11191_v20 = vsub.f32 %v7262_v0, %v7262_v0  ;;  %v4450_v0 = vand.u32 4294901760, %v4449_v8 }
 0x1b0   :  { %8692 = vmatprep.mubr.f32.mxu0 %v9778_v42  ;;  %8716 = vmatpush3.msra.mxu0 %v10832_v57  ;;  %v1490_v18 = vadd.f32 %v8274_v31, %v1394_v40  ;;  %v1388_v32 = vadd.f32 %v1387_v43, %v11056_v4  ;;  %v7261_v57 = vsel %vm11162_vm4, 1.0, %v12476_v26  ;;  %v1483_v42 = vpop.f32.mrf.mxu1 }
 0x1b1   :  { %8744 = vmatpush3.msk.msra.mxu1 %vm10836_vm11, %v12475_v35  ;;  %8717 = vmatprep.subr.mxu0 %v10854_v54  ;;  %v1497_v16 = vadd.f32 %v1494_v7, %v1493_v10  ;;  %v11208_v7 = vand.u32 4294901760, %v11172_v27  ;;  %v11225_v40 = vand.u32 4294901760, %v11191_v20  ;;  %v4457_v10 = vand.u32 4294901760, %v4456_v41 }
 0x1b2   :  { %8745 = vmatprep.subr.msk.mxu1 %vm10867_vm12, %v12475_v35  ;;  %8718 = vmatpush3.msra.mxu0 %v10854_v54  ;;  %v1496_v4 = vmul.f32 %v1490_v18, %v10891_v36  ;;  %v1484_v31 = vadd.f32 %v1483_v42, %v1388_v32  ;;  %v7260_v54 = vsel %vm11182_vm5, 1.0, %v12476_v26  ;;  %v4463_v18 = vsub.f32 %v11140_v58, %v11178_v29  ;;  %v8311_v8 = vpop.f32.mrf.mxu1 }
 0x1b3   :  { %8746 = vmatpush3.msk.msra.mxu1 %vm10867_vm12, %v12475_v35  ;;  %8693 = vmatmul.mubr.f32.gmra.mxu0 %v9789_v22  ;;  %v11219_v42 = vsub.f32 %v7261_v57, %v7261_v57  ;;  %12489 = vst [vmem:[#allocation8_spill] sm:$0xff] %v11225_v40  ;;  %v11231_v43 = vsub.f32 %v7260_v54, %v7260_v54 }
 0x1b4   :  { %8719 = vmatprep.subr.mxu0 %v10883_v1  ;;  %8747 = vmatprep.subr.msk.mxu1 %vm10887_vm13, %v12475_v35  ;;  %v1495_v17 = vmul.f32 %v1484_v31, %v10908_v23  ;;  %v4464_v57 = vand.u32 4294901760, %v4463_v18  ;;  %v1749_v41 = vpop.f32.mrf.mxu1 }
 0x1b5   :  { %8720 = vmatpush3.msra.mxu0 %v10883_v1  ;;  %8729 = vmatprep.mubr.f32.mxu0 %v9715_v44  ;;  %v4470_v1 = vsub.f32 %v11172_v27, %v11208_v7  ;;  %v11239_v24 = vand.u32 4294901760, %v11219_v42 }
 0x1b6   :  { %8748 = vmatpush3.msk.msra.mxu1 %vm10887_vm13, %v12475_v35  ;;  %8721 = vmatprep.subr.mxu0 %v10915_v55  ;;  %v1498_v32 = vadd.f32 %v1497_v16, %v1495_v17  ;;  %v4477_v16 = vsub.f32 %v11191_v20, %v11225_v40  ;;  %vm7066_vm13 = vcmask 1040384  }
 0x1b7   :  { %8750 = vmatmul.mubr.f32.vlgmr.msra.gmra.mxu1 %v9751_v61  ;;  %8775 = vmatprep.subr.mxu1 %v4450_v0  ;;  %v4471_v18 = vand.u32 4294901760, %v4470_v1 }
 0x1b8   :  { %8722 = vmatpush3.msra.mxu0 %v10915_v55  ;;  %8752 = vmatprep.mubr.f32.mxu1 %v9760_v56  ;;  %v11241_v31 = vadd.f32 %v1498_v32, %v1496_v4  ;;  %v11248_v55 = vand.u32 4294901760, %v11231_v43  ;;  %v8314_v32 = vpop.f32.mrf.mxu1 }
 0x1b9   :  { %8776 = vmatpush3.msra.mxu1 %v4450_v0  ;;  %8723 = vmatprep.subr.mxu0 %v10931_v33  ;;  %v4484_v0 = vsub.f32 %v11219_v42, %v11239_v24 }
 0x1ba   :  { %8777 = vmatprep.subr.mxu1 %v4457_v10  ;;  %8724 = vmatpush3.msra.mxu0 %v10931_v33  ;;  %v8291_v54 = vpop.f32.mrf.mxu0  ;;  %v4478_v33 = vand.u32 4294901760, %v4477_v16 }
 0x1bb   :  { %8778 = vmatpush3.msra.mxu1 %v4457_v10  ;;  %8725 = vmatprep.subr.mxu0 %v10945_v45  ;;  %v1756_v4 = vadd.f32 %v8311_v8, %v8291_v54  ;;  %v4491_v8 = vsub.f32 %v11231_v43, %v11248_v55  ;;  %v4485_v1 = vand.u32 4294901760, %v4484_v0 }
 0x1bc   :  { %8753 = vmatmul.mubr.f32.gmra.mxu1 %v9767_v21  ;;  %8779 = vmatprep.subr.mxu1 %v4464_v57  ;;  %v1613_v17 = vpop.f32.mrf.mxu0 }
 0x1bd   :  { %8726 = vmatpush3.msra.mxu0 %v10945_v45  ;;  %8780 = vmatpush3.msra.mxu1 %v4464_v57  ;;  %v1750_v40 = vadd.f32 %v1749_v41, %v1613_v17  ;;  %v1761_v57 = vpop.f32.mrf.mxu1  ;;  %v4492_v41 = vand.u32 4294901760, %v4491_v8 }
 0x1be   :  { %8789 = vmatprep.mubr.f32.mxu1 %v9715_v44  ;;  %8727 = vmatprep.subr.mxu0 %v10952_v37 }
 0x1bf   :  { %8781 = vmatprep.subr.mxu1 %v4471_v18  ;;  %8728 = vmatpush3.msra.mxu0 %v10952_v37  ;;  %v8294_v10 = vpop.f32.mrf.mxu0 }
 0x1c0   :  { %8782 = vmatpush3.msra.mxu1 %v4471_v18  ;;  %8730 = vmatmul.mubr.f32.vlgmr.msra.gmra.mxu0 %v9751_v61  ;;  %v1768_v45 = vadd.f32 %v8314_v32, %v8294_v10 }
 0x1c1   :  { %8755 = vmatprep.subr.msk.mxu0 %vm110_vm0, %v11063_v39  ;;  %8783 = vmatprep.subr.mxu1 %v4478_v33  ;;  %v1633_v16 = vpop.f32.mrf.mxu0 }
 0x1c2   :  { %8732 = vmatprep.mubr.f32.mxu0 %v9760_v56  ;;  %8756 = vmatpush3.msk.msra.mxu0 %vm110_vm0, %v11063_v39  ;;  %v1762_v54 = vadd.f32 %v1761_v57, %v1633_v16 }
 0x1c3   :  { %8784 = vmatpush3.msra.mxu1 %v4478_v33  ;;  %8757 = vmatprep.subr.msk.mxu0 %vm11079_vm15, %v12475_v35  ;;  %v8351_v37 = vpop.f32.mrf.mxu1 }
 0x1c4   :  { %8785 = vmatprep.subr.mxu1 %v4485_v1  ;;  %8758 = vmatpush3.msk.msra.mxu0 %vm11079_vm15, %v12475_v35 }
 0x1c5   :  { %8786 = vmatpush3.msra.mxu1 %v4485_v1  ;;  %8733 = vmatmul.mubr.f32.gmra.mxu0 %v9767_v21  ;;  %v1954_v0 = vpop.f32.mrf.mxu1 }
 0x1c6   :  { %8759 = vmatprep.subr.msk.mxu0 %vm11090_vm1, %v12475_v35  ;;  %8787 = vmatprep.subr.mxu1 %v4492_v41 }
 0x1c7   :  { %8760 = vmatpush3.msk.msra.mxu0 %vm11090_vm1, %v12475_v35  ;;  %8769 = vmatprep.mubr.f32.mxu0 %v9783_v47 }
 0x1c8   :  { %8788 = vmatpush3.msra.mxu1 %v4492_v41  ;;  %8761 = vmatprep.subr.msk.mxu0 %vm11115_vm2, %v12475_v35 }
 0x1c9   :  { %8790 = vmatmul.mubr.f32.vlgmr.msra.gmra.mxu1 %v9751_v61  ;;  %8815 = vmatprep.subr.msk.mxu1 %vm110_vm0, %v11063_v39 }
 0x1ca   :  { %8762 = vmatpush3.msk.msra.mxu0 %vm11115_vm2, %v12475_v35  ;;  %8792 = vmatprep.mubr.f32.mxu1 %v9760_v56 }
 0x1cb   :  { %8816 = vmatpush3.msk.msra.mxu1 %vm110_vm0, %v11063_v39  ;;  %8763 = vmatprep.subr.msk.mxu0 %vm11134_vm3, %v12475_v35 }
 0x1cc   :  { %8817 = vmatprep.subr.msk.mxu1 %vm11079_vm15, %v12475_v35  ;;  %8764 = vmatpush3.msk.msra.mxu0 %vm11134_vm3, %v12475_v35  ;;  %v8331_v18 = vpop.f32.mrf.mxu0 }
 0x1cd   :  { %8818 = vmatpush3.msk.msra.mxu1 %vm11079_vm15, %v12475_v35  ;;  %8765 = vmatprep.subr.msk.mxu0 %vm11162_vm4, %v12475_v35  ;;  %v1861_v17 = vadd.f32 %v8331_v18, %v1756_v4  ;;  %v11330_v4 = vld [vmem:[%s12363_s1 + $0x6] ss:$0 sm:$0xff] }
 0x1ce   :  { %8793 = vmatmul.mubr.f32.gmra.mxu1 %v9767_v21  ;;  %8819 = vmatprep.subr.msk.mxu1 %vm11090_vm1, %v12475_v35  ;;  %v1853_v33 = vpop.f32.mrf.mxu0  ;;  %vm4992_vm6 = vcmp.eq.s32.totalorder %v9276_v5, %v11330_v4  ;;  %vm11375_vm7 = vcmp.eq.s32.totalorder %v9279_v6, %v11330_v4  ;;  %vm11381_vm8 = vcmp.eq.s32.totalorder %v9288_v9, %v11330_v4 }
 0x1cf   :  { %8766 = vmatpush3.msk.msra.mxu0 %vm11162_vm4, %v12475_v35  ;;  %8820 = vmatpush3.msk.msra.mxu1 %vm11090_vm1, %v12475_v35  ;;  %v1854_v32 = vadd.f32 %v1853_v33, %v1750_v40  ;;  %v1963_v8 = vadd.f32 %v8351_v37, %v1861_v17  ;;  %v8354_v40 = vpop.f32.mrf.mxu1  ;;  %v7294_v33 = vsel %vm11375_vm7, 1.0, %v12476_v26  ;;  %vm11411_vm9 = vcmp.eq.s32.totalorder %v9297_v11, %v11330_v4 }
 0x1d0   :  { %8829 = vmatprep.mubr.f32.mxu1 %v9744_v59  ;;  %8767 = vmatprep.subr.msk.mxu0 %vm11182_vm5, %v12475_v35  ;;  %vm11432_vm10 = vcmp.eq.s32.totalorder %v9300_v12, %v11330_v4  ;;  %v7292_v63 = vsel %vm11411_vm9, 1.0, %v12476_v26  ;;  %vm11479_vm12 = vcmp.eq.s32.totalorder %v9267_v2, %v11330_v4 }
 0x1d1   :  { %8821 = vmatprep.subr.msk.mxu1 %vm11115_vm2, %v12475_v35  ;;  %8768 = vmatpush3.msk.msra.mxu0 %vm11182_vm5, %v12475_v35  ;;  %v8334_v10 = vpop.f32.mrf.mxu0  ;;  %v1955_v1 = vadd.f32 %v1954_v0, %v1854_v32  ;;  %v7293_v32 = vsel %vm11381_vm8, 1.0, %v12476_v26 }
 0x1d2   :  { %8822 = vmatpush3.msk.msra.mxu1 %vm11115_vm2, %v12475_v35  ;;  %8770 = vmatmul.mubr.f32.vlgmr.msra.gmra.mxu0 %v9848_v28  ;;  %v1875_v57 = vadd.f32 %v8334_v10, %v1768_v45  ;;  %v1970_v45 = vpop.f32.mrf.mxu1  ;;  %v11421_v50 = vsub.f32 %v7293_v32, %v7293_v32  ;;  %v7291_v32 = vsel %vm11432_vm10, 1.0, %v12476_v26 }
 0x1d3   :  { %8795 = vmatprep.subr.mxu0 %v11097_v60  ;;  %8823 = vmatprep.subr.msk.mxu1 %vm11134_vm3, %v12475_v35  ;;  %v1867_v16 = vpop.f32.mrf.mxu0 }
 0x1d4   :  { %8772 = vmatprep.mubr.f32.mxu0 %v9865_v46  ;;  %8796 = vmatpush3.msra.mxu0 %v11097_v60  ;;  %v1868_v41 = vadd.f32 %v1867_v16, %v1762_v54  ;;  %v1979_v37 = vadd.f32 %v8354_v40, %v1875_v57  ;;  %v11359_v60 = vsel %vm4992_vm6, 1.0, %v12476_v26 }
 0x1d5   :  { %8824 = vmatpush3.msk.msra.mxu1 %vm11134_vm3, %v12475_v35  ;;  %8797 = vmatprep.subr.mxu0 %v11123_v62  ;;  %v8391_v0 = vpop.f32.mrf.mxu1 }
 0x1d6   :  { %8825 = vmatprep.subr.msk.mxu1 %vm11162_vm4, %v12475_v35  ;;  %8798 = vmatpush3.msra.mxu0 %v11123_v62  ;;  %v11352_v18 = vadd.f32 %v1970_v45, %v1868_v41  ;;  %v5008_v62 = vsel %vm110_vm0, %v11359_v60, 0 }
 0x1d7   :  { %8826 = vmatpush3.msk.msra.mxu1 %vm11162_vm4, %v12475_v35  ;;  %8773 = vmatmul.mubr.f32.gmra.mxu0 %v9871_v48  ;;  %v11393_v17 = vsub.f32 %v5008_v62, %v5008_v62  ;;  %v2166_v40 = vpop.f32.mrf.mxu1 }
 0x1d8   :  { %8799 = vmatprep.subr.mxu0 %v11140_v58  ;;  %8827 = vmatprep.subr.msk.mxu1 %vm11182_vm5, %v12475_v35 }
 0x1d9   :  { %8800 = vmatpush3.msra.mxu0 %v11140_v58  ;;  %8809 = vmatprep.mubr.f32.mxu0 %v9731_v53  ;;  %v11428_v16 = vand.u32 4294901760, %v11393_v17 }
 0x1da   :  { %8828 = vmatpush3.msk.msra.mxu1 %vm11182_vm5, %v12475_v35  ;;  %8801 = vmatprep.subr.mxu0 %v11172_v27 }
 0x1db   :  { %8830 = vmatmul.mubr.f32.vlgmr.msra.gmra.mxu1 %v9792_v51  ;;  %8855 = vmatprep.subr.msk.mxu1 %vm110_vm0, %v11063_v39  ;;  %12496 = vst [vmem:[#allocation9_spill] sm:$0xff] %v11428_v16  ;;  %v5144_v30 = vsub.f32 %v11393_v17, %v11428_v16 }
 0x1dc   :  { %8802 = vmatpush3.msra.mxu0 %v11172_v27  ;;  %8832 = vmatprep.mubr.f32.mxu1 %v9804_v19 }
 0x1dd   :  { %8856 = vmatpush3.msk.msra.mxu1 %vm110_vm0, %v11063_v39  ;;  %8803 = vmatprep.subr.mxu0 %v11191_v20 }
 0x1de   :  { %8857 = vmatprep.subr.msk.mxu1 %vm11079_vm15, %v12475_v35  ;;  %8804 = vmatpush3.msra.mxu0 %v11191_v20  ;;  %v8371_v27 = vpop.f32.mrf.mxu0  ;;  %v11419_v20 = vsub.f32 %v7294_v33, %v7294_v33 }
 0x1df   :  { %8858 = vmatpush3.msk.msra.mxu1 %vm11079_vm15, %v12475_v35  ;;  %8805 = vmatprep.subr.mxu0 %v11219_v42  ;;  %v2077_v10 = vadd.f32 %v8371_v27, %v1963_v8 }
 0x1e0   :  { %8833 = vmatmul.mubr.f32.gmra.mxu1 %v9810_v34  ;;  %8859 = vmatprep.subr.msk.mxu1 %vm11090_vm1, %v12475_v35  ;;  %v2070_v57 = vpop.f32.mrf.mxu0 }
 0x1e1   :  { %8806 = vmatpush3.msra.mxu0 %v11219_v42  ;;  %8860 = vmatpush3.msk.msra.mxu1 %vm11090_vm1, %v12475_v35  ;;  %v2173_v41 = vadd.f32 %v8391_v0, %v2077_v10  ;;  %v2071_v45 = vadd.f32 %v2070_v57, %v1955_v1  ;;  %v8394_v42 = vpop.f32.mrf.mxu1  ;;  %v11451_v1 = vand.u32 4294901760, %v11419_v20  ;;  %v11469_v10 = vand.u32 4294901760, %v11421_v50 }
 0x1e2   :  { %8869 = vmatprep.mubr.f32.mxu1 %v9715_v44  ;;  %8807 = vmatprep.subr.mxu0 %v11231_v43  ;;  %v11471_v57 = vsub.f32 %v7292_v63, %v7292_v63  ;;  %v11488_v63 = vsub.f32 %v7291_v32, %v7291_v32  ;;  %v5145_v32 = vand.u32 4294901760, %v5144_v30 }
 0x1e3   :  { %8861 = vmatprep.subr.msk.mxu1 %vm11115_vm2, %v12475_v35  ;;  %8808 = vmatpush3.msra.mxu0 %v11231_v43  ;;  %v2189_v62 = vmul.f32 %v2173_v41, %v10840_v38  ;;  %v2167_v33 = vadd.f32 %v2166_v40, %v2071_v45  ;;  %v8374_v0 = vpop.f32.mrf.mxu0  ;;  %v12499_v43 = vld [vmem:[#allocation2_spill] sm:$0xff]  ;;  %12502 = vst [vmem:[#allocation10_spill] sm:$0xff] %v11469_v10 }
 0x1e4   :  { %8862 = vmatpush3.msk.msra.mxu1 %vm11115_vm2, %v12475_v35  ;;  %8810 = vmatmul.mubr.f32.vlgmr.msra.gmra.mxu0 %v9770_v3  ;;  %vm11458_vm11 = vcmp.eq.s32.totalorder %v12499_v43, %v11330_v4  ;;  %v2089_v40 = vadd.f32 %v8374_v0, %v1979_v37  ;;  %v12503_v43 = vld [vmem:[#allocation4_spill] sm:$0xff]  ;;  %v1500_v37 = vrot.slane %v11241_v31, 4  ;;  %v5151_v25 = vsub.f32 %v11419_v20, %v11451_v1 }
 0x1e5   :  { %8835 = vmatprep.subr.mxu0 %v11130_v14  ;;  %8863 = vmatprep.subr.msk.mxu1 %vm11134_vm3, %v12475_v35  ;;  %v2188_v41 = vmul.f32 %v2167_v33, %v10856_v52  ;;  %v2082_v45 = vpop.f32.mrf.mxu0  ;;  %v2178_v33 = vpop.f32.mrf.mxu1  ;;  %v11523_v30 = vand.u32 4294901760, %v11488_v63 }
 0x1e6   :  { %8812 = vmatprep.mubr.f32.mxu0 %v12503_v43  ;;  %8836 = vmatpush3.msra.mxu0 %v11130_v14  ;;  %v2185_v16 = vadd.f32 %v8394_v42, %v2089_v40  ;;  %v2083_v3 = vadd.f32 %v2082_v45, %v11352_v18  ;;  %v7290_v14 = vsel %vm11458_vm11, 1.0, %v12476_v26  ;;  %v11507_v40 = vand.u32 4294901760, %v11471_v57 }
 0x1e7   :  { %8864 = vmatpush3.msk.msra.mxu1 %vm11134_vm3, %v12475_v35  ;;  %8837 = vmatprep.subr.mxu0 %v11155_v13  ;;  %v2192_v4 = vadd.f32 %v2189_v62, %v2188_v41  ;;  %v5158_v62 = vsub.f32 %v11421_v50, %v11469_v10  ;;  %12507 = vst [vmem:[#allocation11_spill] sm:$0xff] %v11523_v30  ;;  %v8431_v41 = vpop.f32.mrf.mxu1 }
 0x1e8   :  { %8865 = vmatprep.subr.msk.mxu1 %vm11162_vm4, %v12475_v35  ;;  %8838 = vmatpush3.msra.mxu0 %v11155_v13  ;;  %v2191_v18 = vmul.f32 %v2185_v16, %v10891_v36  ;;  %v2179_v42 = vadd.f32 %v2178_v33, %v2083_v3  ;;  %12506 = vst [vmem:[#allocation4_spill] sm:$0xff] %v11507_v40  ;;  %v7289_v13 = vsel %vm11479_vm12, 1.0, %v12476_v26 }
 0x1e9   :  { %8866 = vmatpush3.msk.msra.mxu1 %vm11162_vm4, %v12475_v35  ;;  %8813 = vmatmul.mubr.f32.gmra.mxu0 %v9789_v22  ;;  %v1501_v16 = vadd.f32 %v1500_v37, %v11241_v31  ;;  %v11517_v3 = vsub.f32 %v7290_v14, %v7290_v14  ;;  %v5152_v31 = vand.u32 4294901760, %v5151_v25  ;;  %v11529_v45 = vsub.f32 %v7289_v13, %v7289_v13  ;;  %v12508_v25 = vld [vmem:[#allocation8_spill] sm:$0xff]  ;;  %v2444_v13 = vpop.f32.mrf.mxu1 }
 0x1ea   :  { %8839 = vmatprep.subr.mxu0 %v11178_v29  ;;  %8867 = vmatprep.subr.msk.mxu1 %vm11182_vm5, %v12475_v35  ;;  %v2190_v15 = vmul.f32 %v2179_v42, %v10908_v23  ;;  %v5159_v33 = vand.u32 4294901760, %v5158_v62 }
 0x1eb   :  { %8840 = vmatpush3.msra.mxu0 %v11178_v29  ;;  %8849 = vmatprep.mubr.f32.mxu0 %v9715_v44  ;;  %v5165_v29 = vsub.f32 %v11471_v57, %v11507_v40  ;;  %v1502_v14 = vrot.slane %v1501_v16, 2  ;;  %v11537_v49 = vand.u32 4294901760, %v11517_v3 }
 0x1ec   :  { %8868 = vmatpush3.msk.msra.mxu1 %vm11182_vm5, %v12475_v35  ;;  %8841 = vmatprep.subr.mxu0 %v11208_v7  ;;  %v2193_v37 = vadd.f32 %v2192_v4, %v2190_v15  ;;  %v5172_v4 = vsub.f32 %v11488_v63, %v11523_v30  ;;  %v11544_v15 = vand.u32 4294901760, %v11529_v45  ;;  %v8434_v10 = vpop.f32.mrf.mxu1 }
 0x1ed   :  { %8870 = vmatmul.mubr.f32.vlgmr.msra.gmra.mxu1 %v9751_v61  ;;  %8895 = vmatprep.subr.mxu1 %v5145_v32  ;;  %v5166_v62 = vand.u32 4294901760, %v5165_v29 }
 0x1ee   :  { %8842 = vmatpush3.msra.mxu0 %v11208_v7  ;;  %8872 = vmatprep.mubr.f32.mxu1 %v9760_v56  ;;  %v2194_v42 = vadd.f32 %v2193_v37, %v2191_v18  ;;  %v5179_v37 = vsub.f32 %v11517_v3, %v11537_v49  ;;  %v5173_v23 = vand.u32 4294901760, %v5172_v4 }
 0x1ef   :  { %8896 = vmatpush3.msra.mxu1 %v5145_v32  ;;  %8843 = vmatprep.subr.mxu0 %v12508_v25  ;;  %v1503_v32 = vadd.f32 %v1502_v14, %v1501_v16 }
 0x1f0   :  { %8897 = vmatprep.subr.mxu1 %v5152_v31  ;;  %8844 = vmatpush3.msra.mxu0 %v12508_v25  ;;  %v2195_v7 = vrot.slane %v2194_v42, 4  ;;  %v8411_v40 = vpop.f32.mrf.mxu0 }
 0x1f1   :  { %8898 = vmatpush3.msra.mxu1 %v5152_v31  ;;  %8845 = vmatprep.subr.mxu0 %v11239_v24  ;;  %v11547_v18 = vadd.f32 %v8431_v41, %v8411_v40  ;;  %v5186_v40 = vsub.f32 %v11529_v45, %v11544_v15  ;;  %v1504_v29 = vrot.slane %v1503_v32, 1 }
 0x1f2   :  { %8873 = vmatmul.mubr.f32.gmra.mxu1 %v9767_v21  ;;  %8899 = vmatprep.subr.mxu1 %v5159_v33  ;;  %v2196_v30 = vadd.f32 %v2195_v7, %v2194_v42  ;;  %v2308_v25 = vpop.f32.mrf.mxu0  ;;  %v2456_v42 = vpop.f32.mrf.mxu1 }
 0x1f3   :  { %8846 = vmatpush3.msra.mxu0 %v11239_v24  ;;  %8900 = vmatpush3.msra.mxu1 %v5159_v33  ;;  %v2445_v31 = vadd.f32 %v2444_v13, %v2308_v25  ;;  %v5180_v24 = vand.u32 4294901760, %v5179_v37 }
 0x1f4   :  { %8909 = vmatprep.mubr.f32.mxu1 %v9715_v44  ;;  %8847 = vmatprep.subr.mxu0 %v11248_v55  ;;  %v2197_v16 = vrot.slane %v2196_v30, 2 }
 0x1f5   :  { %8901 = vmatprep.subr.mxu1 %v5166_v62  ;;  %8848 = vmatpush3.msra.mxu0 %v11248_v55  ;;  %v8414_v41 = vpop.f32.mrf.mxu0  ;;  %v5187_v55 = vand.u32 4294901760, %v5186_v40 }
 0x1f6   :  { %8902 = vmatpush3.msra.mxu1 %v5166_v62  ;;  %8850 = vmatmul.mubr.f32.vlgmr.msra.gmra.mxu0 %v9751_v61  ;;  %v2198_v14 = vadd.f32 %v2197_v16, %v2196_v30  ;;  %v2463_v33 = vadd.f32 %v8434_v10, %v8414_v41  ;;  %v1505_v10 = vadd.f32 %v1504_v29, %v1503_v32 }
 0x1f7   :  { %8875 = vmatprep.subr.msk.mxu0 %vm110_vm0, %v11359_v60  ;;  %8903 = vmatprep.subr.mxu1 %v5173_v23  ;;  %v2328_v4 = vpop.f32.mrf.mxu0 }
 0x1f8   :  { %8852 = vmatprep.mubr.f32.mxu0 %v9760_v56  ;;  %8876 = vmatpush3.msk.msra.mxu0 %vm110_vm0, %v11359_v60  ;;  %v2199_v13 = vrot.slane %v2198_v14, 1  ;;  %v2457_v7 = vadd.f32 %v2456_v42, %v2328_v4 }
 0x1f9   :  { %8904 = vmatpush3.msra.mxu1 %v5173_v23  ;;  %8877 = vmatprep.subr.msk.mxu0 %vm11375_vm7, %v12475_v35  ;;  %v8471_v62 = vpop.f32.mrf.mxu1 }
 0x1fa   :  { %8905 = vmatprep.subr.mxu1 %v5180_v24  ;;  %8878 = vmatpush3.msk.msra.mxu0 %vm11375_vm7, %v12475_v35  ;;  %v2200_v30 = vadd.f32 %v2199_v13, %v2198_v14 }
 0x1fb   :  { %8906 = vmatpush3.msra.mxu1 %v5180_v24  ;;  %8853 = vmatmul.mubr.f32.gmra.mxu0 %v9767_v21  ;;  %v2649_v37 = vpop.f32.mrf.mxu1 }
 0x1fc   :  { %8879 = vmatprep.subr.msk.mxu0 %vm11381_vm8, %v12475_v35  ;;  %8907 = vmatprep.subr.mxu1 %v5187_v55  ;;  %v11574_v23 = vsel %vm7066_vm13, %v1505_v10, %v2200_v30  ;;  %vm7069_vm13 = vcmask 1042432  }
 0x1fd   :  { %8880 = vmatpush3.msk.msra.mxu0 %vm11381_vm8, %v12475_v35  ;;  %8889 = vmatprep.mubr.f32.mxu0 %v9783_v47 }
 0x1fe   :  { %8908 = vmatpush3.msra.mxu1 %v5187_v55  ;;  %8881 = vmatprep.subr.msk.mxu0 %vm11411_vm9, %v12475_v35 }
 0x1ff   :  { %8910 = vmatmul.mubr.f32.vlgmr.msra.gmra.mxu1 %v9751_v61  ;;  %8935 = vmatprep.subr.msk.mxu1 %vm110_vm0, %v11359_v60 }
 0x200   :  { %8882 = vmatpush3.msk.msra.mxu0 %vm11411_vm9, %v12475_v35  ;;  %8912 = vmatprep.mubr.f32.mxu1 %v9760_v56 }
 0x201   :  { %8936 = vmatpush3.msk.msra.mxu1 %vm110_vm0, %v11359_v60  ;;  %8883 = vmatprep.subr.msk.mxu0 %vm11432_vm10, %v12475_v35 }
 0x202   :  { %8937 = vmatprep.subr.msk.mxu1 %vm11375_vm7, %v12475_v35  ;;  %8884 = vmatpush3.msk.msra.mxu0 %vm11432_vm10, %v12475_v35  ;;  %v8451_v32 = vpop.f32.mrf.mxu0 }
 0x203   :  { %8938 = vmatpush3.msk.msra.mxu1 %vm11375_vm7, %v12475_v35  ;;  %8885 = vmatprep.subr.msk.mxu0 %vm11458_vm11, %v12475_v35  ;;  %v2556_v25 = vadd.f32 %v8451_v32, %v11547_v18  ;;  %v11631_v18 = vld [vmem:[%s12363_s1 + $0x7] ss:$0 sm:$0xff] }
 0x204   :  { %8913 = vmatmul.mubr.f32.gmra.mxu1 %v9767_v21  ;;  %8939 = vmatprep.subr.msk.mxu1 %vm11381_vm8, %v12475_v35  ;;  %v2548_v40 = vpop.f32.mrf.mxu0  ;;  %vm5687_vm14 = vcmp.eq.s32.totalorder %v9276_v5, %v11631_v18  ;;  %vm11676_vm15 = vcmp.eq.s32.totalorder %v9279_v6, %v11631_v18  ;;  %vm11687_vm1 = vcmp.eq.s32.totalorder %v9288_v9, %v11631_v18 }
 0x205   :  { %8886 = vmatpush3.msk.msra.mxu0 %vm11458_vm11, %v12475_v35  ;;  %8940 = vmatpush3.msk.msra.mxu1 %vm11381_vm8, %v12475_v35  ;;  %v2549_v16 = vadd.f32 %v2548_v40, %v2445_v31  ;;  %v2658_v41 = vadd.f32 %v8471_v62, %v2556_v25  ;;  %v8474_v31 = vpop.f32.mrf.mxu1  ;;  %v7323_v62 = vsel %vm11676_vm15, 1.0, %v12476_v26  ;;  %vm11712_vm2 = vcmp.eq.s32.totalorder %v9297_v11, %v11631_v18 }
 0x206   :  { %8949 = vmatprep.mubr.f32.mxu1 %v9744_v59  ;;  %8887 = vmatprep.subr.msk.mxu0 %vm11479_vm12, %v12475_v35  ;;  %v11720_v54 = vsub.f32 %v7323_v62, %v7323_v62  ;;  %vm11731_vm3 = vcmp.eq.s32.totalorder %v9300_v12, %v11631_v18  ;;  %v7321_v58 = vsel %vm11712_vm2, 1.0, %v12476_v26  ;;  %vm11779_vm5 = vcmp.eq.s32.totalorder %v9267_v2, %v11631_v18 }
 0x207   :  { %8941 = vmatprep.subr.msk.mxu1 %vm11411_vm9, %v12475_v35  ;;  %8888 = vmatpush3.msk.msra.mxu0 %vm11479_vm12, %v12475_v35  ;;  %v8454_v29 = vpop.f32.mrf.mxu0  ;;  %v2650_v24 = vadd.f32 %v2649_v37, %v2549_v16 }
 0x208   :  { %8942 = vmatpush3.msk.msra.mxu1 %vm11411_vm9, %v12475_v35  ;;  %8890 = vmatmul.mubr.f32.vlgmr.msra.gmra.mxu0 %v9848_v28  ;;  %v2570_v14 = vadd.f32 %v8454_v29, %v2463_v33  ;;  %v2665_v33 = vpop.f32.mrf.mxu1 }
 0x209   :  { %8915 = vmatprep.subr.mxu0 %v11393_v17  ;;  %8943 = vmatprep.subr.msk.mxu1 %vm11432_vm10, %v12475_v35  ;;  %v2562_v42 = vpop.f32.mrf.mxu0 }
 0x20a   :  { %8892 = vmatprep.mubr.f32.mxu0 %v9865_v46  ;;  %8916 = vmatpush3.msra.mxu0 %v11393_v17  ;;  %v2563_v4 = vadd.f32 %v2562_v42, %v2457_v7  ;;  %v2674_v55 = vadd.f32 %v8474_v31, %v2570_v14  ;;  %v11660_v17 = vsel %vm5687_vm14, 1.0, %v12476_v26  ;;  %vm7073_vm14 = vcmask 1044480  }
 0x20b   :  { %8944 = vmatpush3.msk.msra.mxu1 %vm11432_vm10, %v12475_v35  ;;  %8917 = vmatprep.subr.mxu0 %v11419_v20 }
 0x20c   :  { %8945 = vmatprep.subr.msk.mxu1 %vm11458_vm11, %v12475_v35  ;;  %8918 = vmatpush3.msra.mxu0 %v11419_v20  ;;  %v11653_v13 = vadd.f32 %v2665_v33, %v2563_v4  ;;  %v5703_v20 = vsel %vm110_vm0, %v11660_v17, 0  ;;  %v12517_v4 = vld [vmem:[#allocation3_spill] sm:$0xff]  ;;  %v11752_v33 = vand.u32 4294901760, %v11720_v54 }
 0x20d   :  { %8946 = vmatpush3.msk.msra.mxu1 %vm11458_vm11, %v12475_v35  ;;  %8893 = vmatmul.mubr.f32.gmra.mxu0 %v9871_v48  ;;  %v11694_v30 = vsub.f32 %v5703_v20, %v5703_v20  ;;  %v7320_v20 = vsel %vm11731_vm3, 1.0, %v12476_v26 }
 0x20e   :  { %8919 = vmatprep.subr.mxu0 %v11421_v50  ;;  %8947 = vmatprep.subr.msk.mxu1 %vm11479_vm12, %v12475_v35  ;;  %v5846_v8 = vsub.f32 %v11720_v54, %v11752_v33 }
 0x20f   :  { %8920 = vmatpush3.msra.mxu0 %v11421_v50  ;;  %8929 = vmatprep.mubr.f32.mxu0 %v9731_v53  ;;  %v8511_v50 = vpop.f32.mrf.mxu1  ;;  %v11727_v40 = vand.u32 4294901760, %v11694_v30 }
 0x210   :  { %8948 = vmatpush3.msk.msra.mxu1 %vm11479_vm12, %v12475_v35  ;;  %8921 = vmatprep.subr.mxu0 %v11471_v57 }
 0x211   :  { %8950 = vmatmul.mubr.f32.vlgmr.msra.gmra.mxu1 %v9792_v51  ;;  %8975 = vmatprep.subr.msk.mxu1 %vm110_vm0, %v11359_v60  ;;  %v2861_v37 = vpop.f32.mrf.mxu1  ;;  %v5839_v39 = vsub.f32 %v11694_v30, %v11727_v40 }
 0x212   :  { %8922 = vmatpush3.msra.mxu0 %v11471_v57  ;;  %8952 = vmatprep.mubr.f32.mxu1 %v9804_v19 }
 0x213   :  { %8976 = vmatpush3.msk.msra.mxu1 %vm110_vm0, %v11359_v60  ;;  %8923 = vmatprep.subr.mxu0 %v11488_v63  ;;  %v7322_v60 = vsel %vm11687_vm1, 1.0, %v12476_v26  ;;  %v8514_v29 = vpop.f32.mrf.mxu1 }
 0x214   :  { %8977 = vmatprep.subr.msk.mxu1 %vm11375_vm7, %v12475_v35  ;;  %8924 = vmatpush3.msra.mxu0 %v11488_v63  ;;  %v8491_v57 = vpop.f32.mrf.mxu0 }
 0x215   :  { %8978 = vmatpush3.msk.msra.mxu1 %vm11375_vm7, %v12475_v35  ;;  %8925 = vmatprep.subr.mxu0 %v11517_v3  ;;  %v2772_v25 = vadd.f32 %v8491_v57, %v2658_v41  ;;  %v12521_v57 = vld [vmem:[#allocation9_spill] sm:$0xff] }
 0x216   :  { %8953 = vmatmul.mubr.f32.gmra.mxu1 %v9810_v34  ;;  %8979 = vmatprep.subr.msk.mxu1 %vm11381_vm8, %v12475_v35  ;;  %v2765_v63 = vpop.f32.mrf.mxu0 }
 0x217   :  { %8926 = vmatpush3.msra.mxu0 %v11517_v3  ;;  %8980 = vmatpush3.msk.msra.mxu1 %vm11381_vm8, %v12475_v35  ;;  %v2868_v41 = vadd.f32 %v8511_v50, %v2772_v25  ;;  %v2766_v31 = vadd.f32 %v2765_v63, %v2650_v24  ;;  %v11737_v3 = vsub.f32 %v7322_v60, %v7322_v60 }
 0x218   :  { %8989 = vmatprep.mubr.f32.mxu1 %v9715_v44  ;;  %8927 = vmatprep.subr.mxu0 %v11529_v45  ;;  %v11769_v60 = vsub.f32 %v7321_v58, %v7321_v58  ;;  %v11788_v58 = vsub.f32 %v7320_v20, %v7320_v20  ;;  %v5840_v20 = vand.u32 4294901760, %v5839_v39 }
 0x219   :  { %8981 = vmatprep.subr.msk.mxu1 %vm11411_vm9, %v12475_v35  ;;  %8928 = vmatpush3.msra.mxu0 %v11529_v45  ;;  %v2884_v14 = vmul.f32 %v2868_v41, %v10840_v38  ;;  %v2862_v24 = vadd.f32 %v2861_v37, %v2766_v31  ;;  %v8494_v42 = vpop.f32.mrf.mxu0  ;;  %v12518_v45 = vld [vmem:[#allocation2_spill] sm:$0xff] }
 0x21a   :  { %8982 = vmatpush3.msk.msra.mxu1 %vm11411_vm9, %v12475_v35  ;;  %8930 = vmatmul.mubr.f32.vlgmr.msra.gmra.mxu0 %v12517_v4  ;;  %vm11759_vm4 = vcmp.eq.s32.totalorder %v12518_v45, %v11631_v18  ;;  %v2784_v62 = vadd.f32 %v8494_v42, %v2674_v55  ;;  %v11775_v55 = vand.u32 4294901760, %v11737_v3  ;;  %v2873_v42 = vpop.f32.mrf.mxu1 }
 0x21b   :  { %8955 = vmatprep.subr.mxu0 %v12521_v57  ;;  %8983 = vmatprep.subr.msk.mxu1 %vm11432_vm10, %v12475_v35  ;;  %v2883_v37 = vmul.f32 %v2862_v24, %v10856_v52  ;;  %v2777_v25 = vpop.f32.mrf.mxu0  ;;  %v7319_v24 = vsel %vm11759_vm4, 1.0, %v12476_v26 }
 0x21c   :  { %8932 = vmatprep.mubr.f32.mxu0 %v12503_v43  ;;  %8956 = vmatpush3.msra.mxu0 %v12521_v57  ;;  %12522 = vst [vmem:[#allocation8_spill] sm:$0xff] %v11775_v55  ;;  %v2880_v41 = vadd.f32 %v8514_v29, %v2784_v62  ;;  %v2778_v31 = vadd.f32 %v2777_v25, %v11653_v13  ;;  %v12526_v62 = vld [vmem:[#allocation10_spill] sm:$0xff]  ;;  %v11822_v25 = vand.u32 4294901760, %v11788_v58 }
 0x21d   :  { %8984 = vmatpush3.msk.msra.mxu1 %vm11432_vm10, %v12475_v35  ;;  %8957 = vmatprep.subr.mxu0 %v11451_v1  ;;  %v2887_v18 = vadd.f32 %v2884_v14, %v2883_v37  ;;  %v11805_v14 = vand.u32 4294901760, %v11769_v60  ;;  %v5853_v27 = vsub.f32 %v11737_v3, %v11775_v55  ;;  %v11816_v57 = vsub.f32 %v7319_v24, %v7319_v24  ;;  %v12527_v37 = vld [vmem:[#allocation7_spill] sm:$0xff] }
 0x21e   :  { %8985 = vmatprep.subr.msk.mxu1 %vm11458_vm11, %v12475_v35  ;;  %8958 = vmatpush3.msra.mxu0 %v11451_v1  ;;  %v2886_v13 = vmul.f32 %v2880_v41, %v10891_v36  ;;  %v2874_v29 = vadd.f32 %v2873_v42, %v2778_v31  ;;  %v7318_v1 = vsel %vm11779_vm5, 1.0, %v12476_v26  ;;  %12528 = vst [vmem:[#allocation2_spill] sm:$0xff] %v11822_v25  ;;  %v8551_v41 = vpop.f32.mrf.mxu1  ;;  %v12529_v31 = vld [vmem:[#allocation4_spill] sm:$0xff]  ;;  %v5847_v42 = vand.u32 4294901760, %v5846_v8  ;;  %v12530_v8 = vld [vmem:[#allocation11_spill] sm:$0xff] }
 0x21f   :  { %8986 = vmatpush3.msk.msra.mxu1 %vm11458_vm11, %v12475_v35  ;;  %8933 = vmatmul.mubr.f32.gmra.mxu0 %v9789_v22  ;;  %12525 = vst [vmem:[#allocation3_spill] sm:$0xff] %v11805_v14  ;;  %v11828_v55 = vsub.f32 %v7318_v1, %v7318_v1  ;;  %v11836_v0 = vand.u32 4294901760, %v11816_v57 }
 0x220   :  { %8959 = vmatprep.subr.mxu0 %v12526_v62  ;;  %8987 = vmatprep.subr.msk.mxu1 %vm11479_vm12, %v12475_v35  ;;  %v2885_v39 = vmul.f32 %v2874_v29, %v12527_v37  ;;  %v5860_v29 = vsub.f32 %v11769_v60, %v11805_v14  ;;  %v3139_v1 = vpop.f32.mrf.mxu1 }
 0x221   :  { %8960 = vmatpush3.msra.mxu0 %v12526_v62  ;;  %8969 = vmatprep.mubr.f32.mxu0 %v9715_v44  ;;  %v5854_v62 = vand.u32 4294901760, %v5853_v27 }
 0x222   :  { %8988 = vmatpush3.msk.msra.mxu1 %vm11479_vm12, %v12475_v35  ;;  %8961 = vmatprep.subr.mxu0 %v12529_v31  ;;  %v2888_v24 = vadd.f32 %v2887_v18, %v2885_v39  ;;  %v5867_v18 = vsub.f32 %v11788_v58, %v11822_v25  ;;  %v11843_v39 = vand.u32 4294901760, %v11828_v55  ;;  %v5861_v27 = vand.u32 4294901760, %v5860_v29  ;;  %v8554_v22 = vpop.f32.mrf.mxu1 }
 0x223   :  { %8990 = vmatmul.mubr.f32.vlgmr.msra.gmra.mxu1 %v9751_v61  ;;  %9015 = vmatprep.subr.mxu1 %v5840_v20 }
 0x224   :  { %8962 = vmatpush3.msra.mxu0 %v12529_v31  ;;  %8992 = vmatprep.mubr.f32.mxu1 %v9760_v56  ;;  %v2889_v37 = vadd.f32 %v2888_v24, %v2886_v13 }
 0x225   :  { %9016 = vmatpush3.msra.mxu1 %v5840_v20  ;;  %8963 = vmatprep.subr.mxu0 %v12530_v8  ;;  %v5874_v20 = vsub.f32 %v11816_v57, %v11836_v0 }
 0x226   :  { %9017 = vmatprep.subr.mxu1 %v5847_v42  ;;  %8964 = vmatpush3.msra.mxu0 %v12530_v8  ;;  %v2890_v31 = vrot.slane %v2889_v37, 4  ;;  %v8531_v14 = vpop.f32.mrf.mxu0  ;;  %v5868_v8 = vand.u32 4294901760, %v5867_v18 }
 0x227   :  { %9018 = vmatpush3.msra.mxu1 %v5847_v42  ;;  %8965 = vmatprep.subr.mxu0 %v11537_v49  ;;  %v3146_v13 = vadd.f32 %v8551_v41, %v8531_v14  ;;  %v5881_v14 = vsub.f32 %v11828_v55, %v11843_v39 }
 0x228   :  { %8993 = vmatmul.mubr.f32.gmra.mxu1 %v9767_v21  ;;  %9019 = vmatprep.subr.mxu1 %v5854_v62  ;;  %v2891_v24 = vadd.f32 %v2890_v31, %v2889_v37  ;;  %v3003_v25 = vpop.f32.mrf.mxu0 }
 0x229   :  { %8966 = vmatpush3.msra.mxu0 %v11537_v49  ;;  %9020 = vmatpush3.msra.mxu1 %v5854_v62  ;;  %v3140_v36 = vadd.f32 %v3139_v1, %v3003_v25  ;;  %v5875_v49 = vand.u32 4294901760, %v5874_v20  ;;  %v3151_v25 = vpop.f32.mrf.mxu1  ;;  %v5882_v18 = vand.u32 4294901760, %v5881_v14 }
 0x22a   :  { %9029 = vmatprep.mubr.f32.mxu1 %v9715_v44  ;;  %8967 = vmatprep.subr.mxu0 %v11544_v15  ;;  %v2892_v41 = vrot.slane %v2891_v24, 2 }
 0x22b   :  { %9021 = vmatprep.subr.mxu1 %v5861_v27  ;;  %8968 = vmatpush3.msra.mxu0 %v11544_v15  ;;  %v8534_v42 = vpop.f32.mrf.mxu0 }
 0x22c   :  { %9022 = vmatpush3.msra.mxu1 %v5861_v27  ;;  %8970 = vmatmul.mubr.f32.vlgmr.msra.gmra.mxu0 %v9751_v61  ;;  %v2893_v37 = vadd.f32 %v2892_v41, %v2891_v24  ;;  %v3158_v29 = vadd.f32 %v8554_v22, %v8534_v42 }
 0x22d   :  { %8995 = vmatprep.subr.msk.mxu0 %vm110_vm0, %v11660_v17  ;;  %9023 = vmatprep.subr.mxu1 %v5868_v8  ;;  %v3023_v62 = vpop.f32.mrf.mxu0 }
 0x22e   :  { %8972 = vmatprep.mubr.f32.mxu0 %v9760_v56  ;;  %8996 = vmatpush3.msk.msra.mxu0 %vm110_vm0, %v11660_v17  ;;  %v2894_v15 = vrot.slane %v2893_v37, 1  ;;  %v3152_v1 = vadd.f32 %v3151_v25, %v3023_v62 }
 0x22f   :  { %9024 = vmatpush3.msra.mxu1 %v5868_v8  ;;  %8997 = vmatprep.subr.msk.mxu0 %vm11676_vm15, %v12475_v35  ;;  %v8591_v27 = vpop.f32.mrf.mxu1 }
 0x230   :  { %9025 = vmatprep.subr.mxu1 %v5875_v49  ;;  %8998 = vmatpush3.msk.msra.mxu0 %vm11676_vm15, %v12475_v35  ;;  %v2895_v22 = vadd.f32 %v2894_v15, %v2893_v37 }
 0x231   :  { %9026 = vmatpush3.msra.mxu1 %v5875_v49  ;;  %8973 = vmatmul.mubr.f32.gmra.mxu0 %v9767_v21  ;;  %v3344_v20 = vpop.f32.mrf.mxu1 }
 0x232   :  { %8999 = vmatprep.subr.msk.mxu0 %vm11687_vm1, %v12475_v35  ;;  %9027 = vmatprep.subr.mxu1 %v5882_v18  ;;  %v11873_v31 = vsel %vm110_vm0, %v11574_v23, %v2895_v22 }
 0x233   :  { %9000 = vmatpush3.msk.msra.mxu0 %vm11687_vm1, %v12475_v35  ;;  %9009 = vmatprep.mubr.f32.mxu0 %v9783_v47 }
 0x234   :  { %9028 = vmatpush3.msra.mxu1 %v5882_v18  ;;  %9001 = vmatprep.subr.msk.mxu0 %vm11712_vm2, %v12475_v35 }
 0x235   :  { %9030 = vmatmul.mubr.f32.vlgmr.msra.gmra.mxu1 %v9751_v61  ;;  %9055 = vmatprep.subr.msk.mxu1 %vm110_vm0, %v11660_v17 }
 0x236   :  { %9002 = vmatpush3.msk.msra.mxu0 %vm11712_vm2, %v12475_v35  ;;  %9032 = vmatprep.mubr.f32.mxu1 %v9760_v56 }
 0x237   :  { %9056 = vmatpush3.msk.msra.mxu1 %vm110_vm0, %v11660_v17  ;;  %9003 = vmatprep.subr.msk.mxu0 %vm11731_vm3, %v12475_v35 }
 0x238   :  { %9057 = vmatprep.subr.msk.mxu1 %vm11676_vm15, %v12475_v35  ;;  %9004 = vmatpush3.msk.msra.mxu0 %vm11731_vm3, %v12475_v35  ;;  %v8571_v23 = vpop.f32.mrf.mxu0 }
 0x239   :  { %9058 = vmatpush3.msk.msra.mxu1 %vm11676_vm15, %v12475_v35  ;;  %9005 = vmatprep.subr.msk.mxu0 %vm11759_vm4, %v12475_v35  ;;  %v3251_v24 = vadd.f32 %v8571_v23, %v3146_v13  ;;  %v11929_v13 = vld [vmem:[%s12363_s1 + $0x8] ss:$0 sm:$0xff] }
 0x23a   :  { %9033 = vmatmul.mubr.f32.gmra.mxu1 %v9767_v21  ;;  %9059 = vmatprep.subr.msk.mxu1 %vm11687_vm1, %v12475_v35  ;;  %v3243_v8 = vpop.f32.mrf.mxu0  ;;  %vm6382_vm6 = vcmp.eq.s32.totalorder %v9276_v5, %v11929_v13  ;;  %vm11974_vm7 = vcmp.eq.s32.totalorder %v9279_v6, %v11929_v13  ;;  %vm11985_vm8 = vcmp.eq.s32.totalorder %v9288_v9, %v11929_v13 }
 0x23b   :  { %9006 = vmatpush3.msk.msra.mxu0 %vm11759_vm4, %v12475_v35  ;;  %9060 = vmatpush3.msk.msra.mxu1 %vm11687_vm1, %v12475_v35  ;;  %v3244_v14 = vadd.f32 %v3243_v8, %v3140_v36  ;;  %v3353_v41 = vadd.f32 %v8591_v27, %v3251_v24  ;;  %v8594_v36 = vpop.f32.mrf.mxu1  ;;  %v11958_v5 = vsel %vm6382_vm6, 1.0, %v12476_v26  ;;  %v7352_v22 = vsel %vm11974_vm7, 1.0, %v12476_v26 }
 0x23c   :  { %9069 = vmatprep.mubr.f32.mxu1 %v9744_v59  ;;  %9007 = vmatprep.subr.msk.mxu0 %vm11779_vm5, %v12475_v35  ;;  %vm12010_vm9 = vcmp.eq.s32.totalorder %v9297_v11, %v11929_v13  ;;  %v12018_v7 = vsub.f32 %v7352_v22, %v7352_v22  ;;  %vm12029_vm10 = vcmp.eq.s32.totalorder %v9300_v12, %v11929_v13 }
 0x23d   :  { %9061 = vmatprep.subr.msk.mxu1 %vm11712_vm2, %v12475_v35  ;;  %9008 = vmatpush3.msk.msra.mxu0 %vm11779_vm5, %v12475_v35  ;;  %v8574_v42 = vpop.f32.mrf.mxu0  ;;  %v3345_v49 = vadd.f32 %v3344_v20, %v3244_v14  ;;  %v7350_v10 = vsel %vm12010_vm9, 1.0, %v12476_v26  ;;  %vm12057_vm11 = vcmp.eq.s32.totalorder %v12518_v45, %v11929_v13  ;;  %vm12077_vm12 = vcmp.eq.s32.totalorder %v9267_v2, %v11929_v13  ;;  %v12543_v13 = vld [vmem:[#allocation6_spill] sm:$0xff] }
 0x23e   :  { %9062 = vmatpush3.msk.msra.mxu1 %vm11712_vm2, %v12475_v35  ;;  %9010 = vmatmul.mubr.f32.vlgmr.msra.gmra.mxu0 %v9848_v28  ;;  %v3265_v37 = vadd.f32 %v8574_v42, %v3158_v29  ;;  %v3360_v29 = vpop.f32.mrf.mxu1  ;;  %v12050_v42 = vand.u32 4294901760, %v12018_v7 }
 0x23f   :  { %9035 = vmatprep.subr.mxu0 %v11694_v30  ;;  %9063 = vmatprep.subr.msk.mxu1 %vm11731_vm3, %v12475_v35  ;;  %v3257_v25 = vpop.f32.mrf.mxu0 }
 0x240   :  { %9012 = vmatprep.mubr.f32.mxu0 %v9865_v46  ;;  %9036 = vmatpush3.msra.mxu0 %v11694_v30  ;;  %v3258_v62 = vadd.f32 %v3257_v25, %v3152_v1  ;;  %v3369_v18 = vadd.f32 %v8594_v36, %v3265_v37  ;;  %v6398_v30 = vsel %vm110_vm0, %v11958_v5, 0  ;;  %v12067_v25 = vsub.f32 %v7350_v10, %v7350_v10  ;;  %v12546_v10 = vld [vmem:[#allocation7_spill] sm:$0xff] }
 0x241   :  { %9064 = vmatpush3.msk.msra.mxu1 %vm11731_vm3, %v12475_v35  ;;  %9037 = vmatprep.subr.mxu0 %v11720_v54  ;;  %v11992_v6 = vsub.f32 %v6398_v30, %v6398_v30  ;;  %v6541_v16 = vsub.f32 %v12018_v7, %v12050_v42 }
 0x242   :  { %9065 = vmatprep.subr.msk.mxu1 %vm11759_vm4, %v12475_v35  ;;  %9038 = vmatpush3.msra.mxu0 %v11720_v54  ;;  %v11951_v15 = vadd.f32 %v3360_v29, %v3258_v62 }
 0x243   :  { %9066 = vmatpush3.msk.msra.mxu1 %vm11759_vm4, %v12475_v35  ;;  %9013 = vmatmul.mubr.f32.gmra.mxu0 %v9871_v48  ;;  %v12025_v11 = vand.u32 4294901760, %v11992_v6 }
 0x244   :  { %9039 = vmatprep.subr.mxu0 %v11737_v3  ;;  %9067 = vmatprep.subr.msk.mxu1 %vm11779_vm5, %v12475_v35 }
 0x245   :  { %9040 = vmatpush3.msra.mxu0 %v11737_v3  ;;  %9049 = vmatprep.mubr.f32.mxu0 %v9731_v53  ;;  %v8631_v3 = vpop.f32.mrf.mxu1  ;;  %v6534_v32 = vsub.f32 %v11992_v6, %v12025_v11 }
 0x246   :  { %9068 = vmatpush3.msk.msra.mxu1 %vm11779_vm5, %v12475_v35  ;;  %9041 = vmatprep.subr.mxu0 %v11769_v60 }
 0x247   :  { %9070 = vmatmul.mubr.f32.vlgmr.msra.gmra.mxu1 %v9792_v51  ;;  %9095 = vmatprep.subr.msk.mxu1 %vm110_vm0, %v11660_v17  ;;  %v3556_v27 = vpop.f32.mrf.mxu1 }
 0x248   :  { %9042 = vmatpush3.msra.mxu0 %v11769_v60  ;;  %9072 = vmatprep.mubr.f32.mxu1 %v9804_v19 }
 0x249   :  { %9096 = vmatpush3.msk.msra.mxu1 %vm110_vm0, %v11660_v17  ;;  %9043 = vmatprep.subr.mxu0 %v11788_v58  ;;  %v7351_v17 = vsel %vm11985_vm8, 1.0, %v12476_v26  ;;  %v8634_v12 = vpop.f32.mrf.mxu1 }
 0x24a   :  { %9097 = vmatprep.subr.msk.mxu1 %vm11676_vm15, %v12475_v35  ;;  %9044 = vmatpush3.msra.mxu0 %v11788_v58  ;;  %v8611_v9 = vpop.f32.mrf.mxu0 }
 0x24b   :  { %9098 = vmatpush3.msk.msra.mxu1 %vm11676_vm15, %v12475_v35  ;;  %9045 = vmatprep.subr.mxu0 %v11816_v57  ;;  %v3467_v23 = vadd.f32 %v8611_v9, %v3353_v41  ;;  %v3568_v9 = vpop.f32.mrf.mxu1  ;;  %vm7075_vm15 = vcmask 1045504  }
 0x24c   :  { %9073 = vmatmul.mubr.f32.gmra.mxu1 %v9810_v34  ;;  %9099 = vmatprep.subr.msk.mxu1 %vm11687_vm1, %v12475_v35  ;;  %v3460_v58 = vpop.f32.mrf.mxu0 }
 0x24d   :  { %9046 = vmatpush3.msra.mxu0 %v11816_v57  ;;  %9100 = vmatpush3.msk.msra.mxu1 %vm11687_vm1, %v12475_v35  ;;  %v3563_v24 = vadd.f32 %v8631_v3, %v3467_v23  ;;  %v3461_v8 = vadd.f32 %v3460_v58, %v3345_v49  ;;  %v12035_v57 = vsub.f32 %v7351_v17, %v7351_v17  ;;  %v7349_v49 = vsel %vm12029_vm10, 1.0, %v12476_v26 }
 0x24e   :  { %9109 = vmatprep.mubr.f32.mxu1 %v9715_v44  ;;  %9047 = vmatprep.subr.mxu0 %v11828_v55  ;;  %v12086_v22 = vsub.f32 %v7349_v49, %v7349_v49  ;;  %v6535_v23 = vand.u32 4294901760, %v6534_v32  ;;  %v12103_v58 = vand.u32 4294901760, %v12067_v25  ;;  %vm7077_vm1 = vcmask 1046528  }
 0x24f   :  { %9101 = vmatprep.subr.msk.mxu1 %vm11712_vm2, %v12475_v35  ;;  %9048 = vmatpush3.msra.mxu0 %v11828_v55  ;;  %v3579_v14 = vmul.f32 %v3563_v24, %v10840_v38  ;;  %v3557_v41 = vadd.f32 %v3556_v27, %v3461_v8  ;;  %v8614_v36 = vpop.f32.mrf.mxu0  ;;  %v12073_v45 = vand.u32 4294901760, %v12035_v57  ;;  %v12544_v27 = vld [vmem:[#allocation5_spill] sm:$0xff]  ;;  %v12545_v24 = vld [vmem:[#allocation8_spill] sm:$0xff] }
 0x250   :  { %9102 = vmatpush3.msk.msra.mxu1 %vm11712_vm2, %v12475_v35  ;;  %9050 = vmatmul.mubr.f32.vlgmr.msra.gmra.mxu0 %v12517_v4  ;;  %v3479_v37 = vadd.f32 %v8614_v36, %v3369_v18  ;;  %v6542_v36 = vand.u32 4294901760, %v6541_v16  ;;  %v6555_v32 = vsub.f32 %v12067_v25, %v12103_v58 }
 0x251   :  { %9075 = vmatprep.subr.mxu0 %v11727_v40  ;;  %9103 = vmatprep.subr.msk.mxu1 %vm11731_vm3, %v12475_v35  ;;  %v3578_v62 = vmul.f32 %v3557_v41, %v10856_v52  ;;  %v3472_v29 = vpop.f32.mrf.mxu0  ;;  %v6548_v50 = vsub.f32 %v12035_v57, %v12073_v45  ;;  %v12547_v41 = vld [vmem:[#allocation3_spill] sm:$0xff] }
 0x252   :  { %9052 = vmatprep.mubr.f32.mxu0 %v12503_v43  ;;  %9076 = vmatpush3.msra.mxu0 %v11727_v40  ;;  %v3575_v30 = vadd.f32 %v8634_v12, %v3479_v37  ;;  %v3473_v3 = vadd.f32 %v3472_v29, %v11951_v15  ;;  %v7348_v40 = vsel %vm12057_vm11, 1.0, %v12476_v26 }
 0x253   :  { %9104 = vmatpush3.msk.msra.mxu1 %vm11731_vm3, %v12475_v35  ;;  %9077 = vmatprep.subr.mxu0 %v11752_v33  ;;  %v3582_v2 = vadd.f32 %v3579_v14, %v3578_v62  ;;  %v12114_v8 = vsub.f32 %v7348_v40, %v7348_v40  ;;  %v12120_v14 = vand.u32 4294901760, %v12086_v22  ;;  %v6549_v62 = vand.u32 4294901760, %v6548_v50 }
 0x254   :  { %9105 = vmatprep.subr.msk.mxu1 %vm11759_vm4, %v12475_v35  ;;  %9078 = vmatpush3.msra.mxu0 %v11752_v33  ;;  %v3581_v15 = vmul.f32 %v3575_v30, %v12543_v13  ;;  %v3569_v17 = vadd.f32 %v3568_v9, %v3473_v3  ;;  %v7347_v33 = vsel %vm12077_vm12, 1.0, %v12476_v26  ;;  %v8671_v26 = vpop.f32.mrf.mxu1  ;;  %v12548_v30 = vld [vmem:[#allocation2_spill] sm:$0xff] }
 0x255   :  { %9106 = vmatpush3.msk.msra.mxu1 %vm11759_vm4, %v12475_v35  ;;  %9053 = vmatmul.mubr.f32.gmra.mxu0 %v12544_v27  ;;  %v12126_v49 = vsub.f32 %v7347_v33, %v7347_v33  ;;  %v12134_v63 = vand.u32 4294901760, %v12114_v8  ;;  %v6562_v3 = vsub.f32 %v12086_v22, %v12120_v14 }
 0x256   :  { %9079 = vmatprep.subr.mxu0 %v12545_v24  ;;  %9107 = vmatprep.subr.msk.mxu1 %vm11779_vm5, %v12475_v35  ;;  %v3580_v12 = vmul.f32 %v3569_v17, %v12546_v10  ;;  %v3834_v40 = vpop.f32.mrf.mxu1  ;;  %v6556_v17 = vand.u32 4294901760, %v6555_v32 }
 0x257   :  { %9080 = vmatpush3.msra.mxu0 %v12545_v24  ;;  %9089 = vmatprep.mubr.f32.mxu0 %v9715_v44  ;;  %v12141_v9 = vand.u32 4294901760, %v12126_v49  ;;  %v6563_v50 = vand.u32 4294901760, %v6562_v3 }
 0x258   :  { %9108 = vmatpush3.msk.msra.mxu1 %vm11779_vm5, %v12475_v35  ;;  %9081 = vmatprep.subr.mxu0 %v12547_v41  ;;  %v3583_v37 = vadd.f32 %v3582_v2, %v3580_v12  ;;  %v8674_v12 = vpop.f32.mrf.mxu1 }
 0x259   :  { %9110 = vmatmul.mubr.f32.vlgmr.msra.gmra.mxu1 %v9751_v61  ;;  %9135 = vmatprep.subr.mxu1 %v6535_v23 }
 0x25a   :  { %9082 = vmatpush3.msra.mxu0 %v12547_v41  ;;  %9112 = vmatprep.mubr.f32.mxu1 %v9760_v56  ;;  %v3584_v29 = vadd.f32 %v3583_v37, %v3581_v15 }
 0x25b   :  { %9136 = vmatpush3.msra.mxu1 %v6535_v23  ;;  %9083 = vmatprep.subr.mxu0 %v12548_v30  ;;  %v6569_v23 = vsub.f32 %v12114_v8, %v12134_v63 }
 0x25c   :  { %9137 = vmatprep.subr.mxu1 %v6542_v36  ;;  %9084 = vmatpush3.msra.mxu0 %v12548_v30  ;;  %v3585_v2 = vrot.slane %v3584_v29, 4  ;;  %v8651_v16 = vpop.f32.mrf.mxu0 }
 0x25d   :  { %9138 = vmatpush3.msra.mxu1 %v6542_v36  ;;  %9085 = vmatprep.subr.mxu0 %v11836_v0  ;;  %v3841_v15 = vadd.f32 %v8671_v26, %v8651_v16  ;;  %v6576_v26 = vsub.f32 %v12126_v49, %v12141_v9 }
 0x25e   :  { %9113 = vmatmul.mubr.f32.gmra.mxu1 %v9767_v21  ;;  %9139 = vmatprep.subr.mxu1 %v6549_v62  ;;  %v3586_v33 = vadd.f32 %v3585_v2, %v3584_v29  ;;  %v3698_v24 = vpop.f32.mrf.mxu0  ;;  %v3846_v29 = vpop.f32.mrf.mxu1 }
 0x25f   :  { %9086 = vmatpush3.msra.mxu0 %v11836_v0  ;;  %9140 = vmatpush3.msra.mxu1 %v6549_v62  ;;  %v3835_v41 = vadd.f32 %v3834_v40, %v3698_v24  ;;  %v6570_v0 = vand.u32 4294901760, %v6569_v23  ;;  %v6577_v3 = vand.u32 4294901760, %v6576_v26 }
 0x260   :  { %9149 = vmatprep.mubr.f32.mxu1 %v9715_v44  ;;  %9087 = vmatprep.subr.mxu0 %v11843_v39  ;;  %v3587_v36 = vrot.slane %v3586_v33, 2 }
 0x261   :  { %9141 = vmatprep.subr.mxu1 %v6556_v17  ;;  %9088 = vmatpush3.msra.mxu0 %v11843_v39  ;;  %v8654_v37 = vpop.f32.mrf.mxu0 }
 0x262   :  { %9142 = vmatpush3.msra.mxu1 %v6556_v17  ;;  %9090 = vmatmul.mubr.f32.vlgmr.msra.gmra.mxu0 %v9751_v61  ;;  %v3588_v32 = vadd.f32 %v3587_v36, %v3586_v33  ;;  %v3853_v62 = vadd.f32 %v8674_v12, %v8654_v37 }
 0x263   :  { %9115 = vmatprep.subr.msk.mxu0 %vm110_vm0, %v11958_v5  ;;  %9143 = vmatprep.subr.mxu1 %v6563_v50  ;;  %v3718_v30 = vpop.f32.mrf.mxu0 }
 0x264   :  { %9092 = vmatprep.mubr.f32.mxu0 %v9760_v56  ;;  %9116 = vmatpush3.msk.msra.mxu0 %vm110_vm0, %v11958_v5  ;;  %v3589_v39 = vrot.slane %v3588_v32, 1  ;;  %v3847_v40 = vadd.f32 %v3846_v29, %v3718_v30 }
 0x265   :  { %9144 = vmatpush3.msra.mxu1 %v6563_v50  ;;  %9117 = vmatprep.subr.msk.mxu0 %vm11974_vm7, %v12475_v35  ;;  %v8711_v17 = vpop.f32.mrf.mxu1 }
 0x266   :  { %9145 = vmatprep.subr.mxu1 %v6570_v0  ;;  %9118 = vmatpush3.msk.msra.mxu0 %vm11974_vm7, %v12475_v35  ;;  %v3590_v2 = vadd.f32 %v3589_v39, %v3588_v32 }
 0x267   :  { %9146 = vmatpush3.msra.mxu1 %v6570_v0  ;;  %9093 = vmatmul.mubr.f32.gmra.mxu0 %v9767_v21 }
 0x268   :  { %9119 = vmatprep.subr.msk.mxu0 %vm11985_vm8, %v12475_v35  ;;  %9147 = vmatprep.subr.mxu1 %v6577_v3  ;;  %v12170_v16 = vsel %vm7069_vm13, %v11873_v31, %v3590_v2  ;;  %v4039_v31 = vpop.f32.mrf.mxu1 }
 0x269   :  { %9120 = vmatpush3.msk.msra.mxu0 %vm11985_vm8, %v12475_v35  ;;  %9129 = vmatprep.mubr.f32.mxu0 %v9783_v47 }
 0x26a   :  { %9148 = vmatpush3.msra.mxu1 %v6577_v3  ;;  %9121 = vmatprep.subr.msk.mxu0 %vm12010_vm9, %v12475_v35 }
 0x26b   :  { %9150 = vmatmul.mubr.f32.vlgmr.msra.gmra.mxu1 %v9751_v61  ;;  %9175 = vmatprep.subr.msk.mxu1 %vm110_vm0, %v11958_v5 }
 0x26c   :  { %9122 = vmatpush3.msk.msra.mxu0 %vm12010_vm9, %v12475_v35  ;;  %9152 = vmatprep.mubr.f32.mxu1 %v9760_v56 }
 0x26d   :  { %9176 = vmatpush3.msk.msra.mxu1 %vm110_vm0, %v11958_v5  ;;  %9123 = vmatprep.subr.msk.mxu0 %vm12029_vm10, %v12475_v35 }
 0x26e   :  { %9177 = vmatprep.subr.msk.mxu1 %vm11974_vm7, %v12475_v35  ;;  %9124 = vmatpush3.msk.msra.mxu0 %vm12029_vm10, %v12475_v35  ;;  %v8691_v47 = vpop.f32.mrf.mxu0 }
 0x26f   :  { %9178 = vmatpush3.msk.msra.mxu1 %vm11974_vm7, %v12475_v35  ;;  %9125 = vmatprep.subr.msk.mxu0 %vm12057_vm11, %v12475_v35  ;;  %v3946_v23 = vadd.f32 %v8691_v47, %v3841_v15  ;;  %v8714_v15 = vpop.f32.mrf.mxu1 }
 0x270   :  { %9153 = vmatmul.mubr.f32.gmra.mxu1 %v9767_v21  ;;  %9179 = vmatprep.subr.msk.mxu1 %vm11985_vm8, %v12475_v35  ;;  %v3938_v33 = vpop.f32.mrf.mxu0 }
 0x271   :  { %9126 = vmatpush3.msk.msra.mxu0 %vm12057_vm11, %v12475_v35  ;;  %9180 = vmatpush3.msk.msra.mxu1 %vm11985_vm8, %v12475_v35  ;;  %v3939_v24 = vadd.f32 %v3938_v33, %v3835_v41  ;;  %v4048_v50 = vadd.f32 %v8711_v17, %v3946_v23 }
 0x272   :  { %9189 = vmatprep.mubr.f32.mxu1 %v9744_v59  ;;  %9127 = vmatprep.subr.msk.mxu0 %vm12077_vm12, %v12475_v35 }
 0x273   :  { %9181 = vmatprep.subr.msk.mxu1 %vm12010_vm9, %v12475_v35  ;;  %9128 = vmatpush3.msk.msra.mxu0 %vm12077_vm12, %v12475_v35  ;;  %v8694_v12 = vpop.f32.mrf.mxu0  ;;  %v4040_v26 = vadd.f32 %v4039_v31, %v3939_v24 }
 0x274   :  { %9182 = vmatpush3.msk.msra.mxu1 %vm12010_vm9, %v12475_v35  ;;  %9130 = vmatmul.mubr.f32.vlgmr.msra.gmra.mxu0 %v9848_v28  ;;  %v3960_v59 = vadd.f32 %v8694_v12, %v3853_v62  ;;  %v4055_v28 = vpop.f32.mrf.mxu1 }
 0x275   :  { %9155 = vmatprep.subr.mxu0 %v11992_v6  ;;  %9183 = vmatprep.subr.msk.mxu1 %vm12029_vm10, %v12475_v35  ;;  %v3952_v41 = vpop.f32.mrf.mxu0 }
 0x276   :  { %9132 = vmatprep.mubr.f32.mxu0 %v9865_v46  ;;  %9156 = vmatpush3.msra.mxu0 %v11992_v6  ;;  %v3953_v36 = vadd.f32 %v3952_v41, %v3847_v40  ;;  %v4064_v37 = vadd.f32 %v8714_v15, %v3960_v59 }
 0x277   :  { %9184 = vmatpush3.msk.msra.mxu1 %vm12029_vm10, %v12475_v35  ;;  %9157 = vmatprep.subr.mxu0 %v12018_v7  ;;  %v8751_v46 = vpop.f32.mrf.mxu1 }
 0x278   :  { %9185 = vmatprep.subr.msk.mxu1 %vm12057_vm11, %v12475_v35  ;;  %9158 = vmatpush3.msra.mxu0 %v12018_v7  ;;  %v4056_v0 = vadd.f32 %v4055_v28, %v3953_v36 }
 0x279   :  { %9186 = vmatpush3.msk.msra.mxu1 %vm12057_vm11, %v12475_v35  ;;  %9133 = vmatmul.mubr.f32.gmra.mxu0 %v9871_v48 }
 0x27a   :  { %9159 = vmatprep.subr.mxu0 %v12035_v57  ;;  %9187 = vmatprep.subr.msk.mxu1 %vm12077_vm12, %v12475_v35 }
 0x27b   :  { %9160 = vmatpush3.msra.mxu0 %v12035_v57  ;;  %9169 = vmatprep.mubr.f32.mxu0 %v9731_v53 }
 0x27c   :  { %9188 = vmatpush3.msk.msra.mxu1 %vm12077_vm12, %v12475_v35  ;;  %9161 = vmatprep.subr.mxu0 %v12067_v25 }
 0x27d   :  { %9190 = vmatmul.mubr.f32.vlgmr.msra.gmra.mxu1 %v9792_v51  ;;  %9215 = vmatprep.subr.msk.mxu1 %vm110_vm0, %v11958_v5  ;;  %v4251_v51 = vpop.f32.mrf.mxu1 }
 0x27e   :  { %9162 = vmatpush3.msra.mxu0 %v12067_v25  ;;  %9192 = vmatprep.mubr.f32.mxu1 %v9804_v19 }
 0x27f   :  { %9216 = vmatpush3.msk.msra.mxu1 %vm110_vm0, %v11958_v5  ;;  %9163 = vmatprep.subr.mxu0 %v12086_v22  ;;  %vm7071_vm0 = vcmask 1043456  }
 0x280   :  { %9217 = vmatprep.subr.msk.mxu1 %vm11974_vm7, %v12475_v35  ;;  %9164 = vmatpush3.msra.mxu0 %v12086_v22  ;;  %v8731_v53 = vpop.f32.mrf.mxu0 }
 0x281   :  { %9218 = vmatpush3.msk.msra.mxu1 %vm11974_vm7, %v12475_v35  ;;  %9165 = vmatprep.subr.mxu0 %v12114_v8  ;;  %v4162_v19 = vadd.f32 %v8731_v53, %v4048_v50 }
 0x282   :  { %9193 = vmatmul.mubr.f32.gmra.mxu1 %v9810_v34  ;;  %9219 = vmatprep.subr.msk.mxu1 %vm11985_vm8, %v12475_v35  ;;  %v4155_v48 = vpop.f32.mrf.mxu0  ;;  %v8754_v34 = vpop.f32.mrf.mxu1 }
 0x283   :  { %9166 = vmatpush3.msra.mxu0 %v12114_v8  ;;  %9220 = vmatpush3.msk.msra.mxu1 %vm11985_vm8, %v12475_v35  ;;  %v4258_v5 = vadd.f32 %v8751_v46, %v4162_v19  ;;  %v4156_v54 = vadd.f32 %v4155_v48, %v4040_v26 }
 0x284   :  { %9229 = vmatprep.mubr.f32.mxu1 %v9715_v44  ;;  %9167 = vmatprep.subr.mxu0 %v12126_v49 }
 0x285   :  { %9221 = vmatprep.subr.msk.mxu1 %vm12010_vm9, %v12475_v35  ;;  %9168 = vmatpush3.msra.mxu0 %v12126_v49  ;;  %v4274_v6 = vmul.f32 %v4258_v5, %v10840_v38  ;;  %v4252_v7 = vadd.f32 %v4251_v51, %v4156_v54  ;;  %v8734_v57 = vpop.f32.mrf.mxu0 }
 0x286   :  { %9222 = vmatpush3.msk.msra.mxu1 %vm12010_vm9, %v12475_v35  ;;  %9170 = vmatmul.mubr.f32.vlgmr.msra.gmra.mxu0 %v12517_v4  ;;  %v4174_v1 = vadd.f32 %v8734_v57, %v4064_v37  ;;  %v4263_v4 = vpop.f32.mrf.mxu1 }
 0x287   :  { %9195 = vmatprep.subr.mxu0 %v12025_v11  ;;  %9223 = vmatprep.subr.msk.mxu1 %vm12029_vm10, %v12475_v35  ;;  %v4273_v25 = vmul.f32 %v4252_v7, %v10856_v52  ;;  %v4167_v22 = vpop.f32.mrf.mxu0 }
 0x288   :  { %9172 = vmatprep.mubr.f32.mxu0 %v12503_v43  ;;  %9196 = vmatpush3.msra.mxu0 %v12025_v11  ;;  %v4270_v8 = vadd.f32 %v8754_v34, %v4174_v1  ;;  %v4168_v49 = vadd.f32 %v4167_v22, %v4056_v0 }
 0x289   :  { %9224 = vmatpush3.msk.msra.mxu1 %vm12029_vm10, %v12475_v35  ;;  %9197 = vmatprep.subr.mxu0 %v12050_v42  ;;  %v4277_v60 = vadd.f32 %v4274_v6, %v4273_v25 }
 0x28a   :  { %9225 = vmatprep.subr.msk.mxu1 %vm12057_vm11, %v12475_v35  ;;  %9198 = vmatpush3.msra.mxu0 %v12050_v42  ;;  %v4276_v43 = vmul.f32 %v4270_v8, %v12543_v13  ;;  %v4264_v32 = vadd.f32 %v4263_v4, %v4168_v49 }
 0x28b   :  { %9226 = vmatpush3.msk.msra.mxu1 %vm12057_vm11, %v12475_v35  ;;  %9173 = vmatmul.mubr.f32.gmra.mxu0 %v12544_v27 }
 0x28c   :  { %9199 = vmatprep.subr.mxu0 %v12073_v45  ;;  %9227 = vmatprep.subr.msk.mxu1 %vm12077_vm12, %v12475_v35  ;;  %v4275_v11 = vmul.f32 %v4264_v32, %v12546_v10 }
 0x28d   :  { %9200 = vmatpush3.msra.mxu0 %v12073_v45  ;;  %9209 = vmatprep.mubr.f32.mxu0 %v9715_v44  ;;  %v8791_v45 = vpop.f32.mrf.mxu1 }
 0x28e   :  { %9228 = vmatpush3.msk.msra.mxu1 %vm12077_vm12, %v12475_v35  ;;  %9201 = vmatprep.subr.mxu0 %v12103_v58  ;;  %v4278_v20 = vadd.f32 %v4277_v60, %v4275_v11 }
 0x28f   :  { %9230 = vmatmul.mubr.f32.vlgmr.msra.gmra.mxu1 %v9751_v61  ;;  %9202 = vmatpush3.msra.mxu0 %v12103_v58 }
 0x290   :  { %9232 = vmatprep.mubr.f32.mxu1 %v9760_v56  ;;  %9203 = vmatprep.subr.mxu0 %v12120_v14  ;;  %v4279_v42 = vadd.f32 %v4278_v20, %v4276_v43 }
 0x291   :  { %9204 = vmatpush3.msra.mxu0 %v12120_v14  ;;  %v4529_v14 = vpop.f32.mrf.mxu1 }
 0x292   :  { %9205 = vmatprep.subr.mxu0 %v12134_v63  ;;  %v4280_v44 = vrot.slane %v4279_v42, 4  ;;  %v8771_v58 = vpop.f32.mrf.mxu0 }
 0x293   :  { %9233 = vmatmul.mubr.f32.gmra.mxu1 %v9767_v21  ;;  %9206 = vmatpush3.msra.mxu0 %v12134_v63  ;;  %v8794_v30 = vpop.f32.mrf.mxu1  ;;  %v4536_v47 = vadd.f32 %v8791_v45, %v8771_v58 }
 0x294   :  { %9207 = vmatprep.subr.mxu0 %v12141_v9  ;;  %v4281_v35 = vadd.f32 %v4280_v44, %v4279_v42  ;;  %v4393_v29 = vpop.f32.mrf.mxu0 }
 0x295   :  { %9208 = vmatpush3.msra.mxu0 %v12141_v9  ;;  %v4541_v9 = vpop.f32.mrf.mxu1 }
 0x296   :  { %9210 = vmatmul.mubr.f32.vlgmr.msra.gmra.mxu0 %v9751_v61  ;;  %v4282_v55 = vrot.slane %v4281_v35, 2 }
 0x297   :  { %9212 = vmatprep.mubr.f32.mxu0 %v9760_v56  ;;  %v8774_v3 = vpop.f32.mrf.mxu0 }
 0x298   :  { %v4283_v18 = vadd.f32 %v4282_v55, %v4281_v35  ;;  %v4548_v15 = vadd.f32 %v8794_v30, %v8774_v3 }
 0x299   :  { %v4413_v61 = vpop.f32.mrf.mxu0 }
 0x29a   :  { %9213 = vmatmul.mubr.f32.gmra.mxu0 %v9767_v21  ;;  %v4284_v27 = vrot.slane %v4283_v18, 1  ;;  %v4530_v21 = vadd.f32 %v4529_v14, %v4393_v29  ;;  %v4542_v26 = vadd.f32 %v4541_v9, %v4413_v61 }
 0x29b   :  { %v8831_v39 = vpop.f32.mrf.mxu1 }
 0x29c   :  { %v4285_v62 = vadd.f32 %v4284_v27, %v4283_v18 }
 0x29d   :  { %v4734_v2 = vpop.f32.mrf.mxu1 }
 0x29e   :  { %v7072_v63 = vsel %vm7071_vm0, %v12170_v16, %v4285_v62 }
 0x2a0   :  { %v8834_v17 = vpop.f32.mrf.mxu1 }
 0x2a2   :  { %v4750_v23 = vpop.f32.mrf.mxu1 }
 0x2a4   :  { %v8811_v40 = vpop.f32.mrf.mxu0 }
 0x2a5   :  { %v4641_v33 = vadd.f32 %v8811_v40, %v4536_v47 }
 0x2a6   :  { %v4633_v56 = vpop.f32.mrf.mxu0 }
 0x2a7   :  { %v4634_v24 = vadd.f32 %v4633_v56, %v4530_v21  ;;  %v4743_v16 = vadd.f32 %v8831_v39, %v4641_v33 }
 0x2a9   :  { %v8814_v31 = vpop.f32.mrf.mxu0  ;;  %v4735_v28 = vadd.f32 %v4734_v2, %v4634_v24 }
 0x2aa   :  { %v4655_v59 = vadd.f32 %v8814_v31, %v4548_v15 }
 0x2ab   :  { %v4647_v12 = vpop.f32.mrf.mxu0 }
 0x2ac   :  { %v4648_v0 = vadd.f32 %v4647_v12, %v4542_v26  ;;  %v4759_v19 = vadd.f32 %v8834_v17, %v4655_v59 }
 0x2ad   :  { %v8871_v50 = vpop.f32.mrf.mxu1 }
 0x2ae   :  { %v4751_v6 = vadd.f32 %v4750_v23, %v4648_v0 }
 0x2af   :  { %v4946_v36 = vpop.f32.mrf.mxu1 }
 0x2b2   :  { %v8874_v48 = vpop.f32.mrf.mxu1 }
 0x2b4   :  { %v4958_v22 = vpop.f32.mrf.mxu1 }
 0x2b6   :  { %v8851_v41 = vpop.f32.mrf.mxu0 }
 0x2b7   :  { %v4857_v37 = vadd.f32 %v8851_v41, %v4743_v16 }
 0x2b8   :  { %v4850_v46 = vpop.f32.mrf.mxu0 }
 0x2b9   :  { %v4953_v53 = vadd.f32 %v8871_v50, %v4857_v37  ;;  %v4851_v51 = vadd.f32 %v4850_v46, %v4735_v28 }
 0x2bb   :  { %v4947_v5 = vadd.f32 %v4946_v36, %v4851_v51  ;;  %v8854_v54 = vpop.f32.mrf.mxu0  ;;  %v4969_v7 = vmul.f32 %v4953_v53, %v10840_v38 }
 0x2bc   :  { %v4869_v34 = vadd.f32 %v8854_v54, %v4759_v19 }
 0x2bd   :  { %v4968_v57 = vmul.f32 %v4947_v5, %v10856_v52  ;;  %v4862_v1 = vpop.f32.mrf.mxu0 }
 0x2be   :  { %v4863_v25 = vadd.f32 %v4862_v1, %v4751_v6  ;;  %v4965_v49 = vadd.f32 %v8874_v48, %v4869_v34 }
 0x2bf   :  { %v4972_v8 = vadd.f32 %v4969_v7, %v4968_v57  ;;  %v8911_v35 = vpop.f32.mrf.mxu1 }
 0x2c0   :  { %v4959_v4 = vadd.f32 %v4958_v22, %v4863_v25  ;;  %v4971_v43 = vmul.f32 %v4965_v49, %v12543_v13 }
 0x2c1   :  { %v5224_v27 = vpop.f32.mrf.mxu1 }
 0x2c2   :  { %v4970_v60 = vmul.f32 %v4959_v4, %v12546_v10 }
 0x2c4   :  { %v4973_v32 = vadd.f32 %v4972_v8, %v4970_v60  ;;  %v8914_v29 = vpop.f32.mrf.mxu1 }
 0x2c6   :  { %v4974_v11 = vadd.f32 %v4973_v32, %v4971_v43  ;;  %v5236_v3 = vpop.f32.mrf.mxu1 }
 0x2c8   :  { %v4975_v20 = vrot.slane %v4974_v11, 4  ;;  %v8891_v18 = vpop.f32.mrf.mxu0 }
 0x2c9   :  { %v5231_v17 = vadd.f32 %v8911_v35, %v8891_v18 }
 0x2ca   :  { %v4976_v42 = vadd.f32 %v4975_v20, %v4974_v11  ;;  %v5088_v62 = vpop.f32.mrf.mxu0 }
 0x2cb   :  { %v5225_v31 = vadd.f32 %v5224_v27, %v5088_v62 }
 0x2cc   :  { %v4977_v44 = vrot.slane %v4976_v42, 2 }
 0x2cd   :  { %v8894_v30 = vpop.f32.mrf.mxu0 }
 0x2ce   :  { %v4978_v55 = vadd.f32 %v4977_v44, %v4976_v42  ;;  %v5243_v50 = vadd.f32 %v8914_v29, %v8894_v30 }
 0x2cf   :  { %v5108_v39 = vpop.f32.mrf.mxu0 }
 0x2d0   :  { %v4979_v45 = vrot.slane %v4978_v55, 1  ;;  %v5237_v12 = vadd.f32 %v5236_v3, %v5108_v39 }
 0x2d1   :  { %v8951_v9 = vpop.f32.mrf.mxu1 }
 0x2d2   :  { %v4980_v58 = vadd.f32 %v4979_v45, %v4978_v55 }
 0x2d3   :  { %v5429_v40 = vpop.f32.mrf.mxu1 }
 0x2d4   :  { %v7074_v14 = vsel %vm7073_vm14, %v7072_v63, %v4980_v58 }
 0x2d6   :  { %v8954_v56 = vpop.f32.mrf.mxu1 }
 0x2d8   :  { %v5445_v21 = vpop.f32.mrf.mxu1 }
 0x2da   :  { %v8931_v61 = vpop.f32.mrf.mxu0 }
 0x2db   :  { %v5336_v23 = vadd.f32 %v8931_v61, %v5231_v17 }
 0x2dc   :  { %v5328_v2 = vpop.f32.mrf.mxu0 }
 0x2dd   :  { %v5329_v33 = vadd.f32 %v5328_v2, %v5225_v31  ;;  %v5438_v63 = vadd.f32 %v8951_v9, %v5336_v23 }
 0x2df   :  { %v8934_v47 = vpop.f32.mrf.mxu0  ;;  %v5430_v36 = vadd.f32 %v5429_v40, %v5329_v33 }
 0x2e0   :  { %v5350_v16 = vadd.f32 %v8934_v47, %v5243_v50 }
 0x2e1   :  { %v5342_v15 = vpop.f32.mrf.mxu0 }
 0x2e2   :  { %v5343_v37 = vadd.f32 %v5342_v15, %v5237_v12  ;;  %v5454_v53 = vadd.f32 %v8954_v56, %v5350_v16 }
 0x2e3   :  { %v8991_v24 = vpop.f32.mrf.mxu1 }
 0x2e4   :  { %v5446_v54 = vadd.f32 %v5445_v21, %v5343_v37 }
 0x2e5   :  { %v5641_v59 = vpop.f32.mrf.mxu1 }
 0x2e8   :  { %v8994_v51 = vpop.f32.mrf.mxu1 }
 0x2ea   :  { %v5653_v1 = vpop.f32.mrf.mxu1 }
 0x2ec   :  { %v8971_v26 = vpop.f32.mrf.mxu0 }
 0x2ed   :  { %v5552_v41 = vadd.f32 %v8971_v26, %v5438_v63 }
 0x2ee   :  { %v5545_v28 = vpop.f32.mrf.mxu0 }
 0x2ef   :  { %v5648_v0 = vadd.f32 %v8991_v24, %v5552_v41  ;;  %v5546_v46 = vadd.f32 %v5545_v28, %v5430_v36 }
 0x2f1   :  { %v5642_v19 = vadd.f32 %v5641_v59, %v5546_v46  ;;  %v8974_v48 = vpop.f32.mrf.mxu0  ;;  %v5664_v34 = vmul.f32 %v5648_v0, %v10840_v38 }
 0x2f2   :  { %v5564_v5 = vadd.f32 %v8974_v48, %v5454_v53 }
 0x2f3   :  { %v5663_v6 = vmul.f32 %v5642_v19, %v10856_v52  ;;  %v5557_v7 = vpop.f32.mrf.mxu0 }
 0x2f4   :  { %v5558_v57 = vadd.f32 %v5557_v7, %v5446_v54  ;;  %v5660_v22 = vadd.f32 %v8994_v51, %v5564_v5 }
 0x2f5   :  { %v5667_v25 = vadd.f32 %v5664_v34, %v5663_v6  ;;  %v9031_v42 = vpop.f32.mrf.mxu1 }
 0x2f6   :  { %v5654_v8 = vadd.f32 %v5653_v1, %v5558_v57  ;;  %v5666_v4 = vmul.f32 %v5660_v22, %v12543_v13 }
 0x2f7   :  { %v5919_v45 = vpop.f32.mrf.mxu1 }
 0x2f8   :  { %v5665_v49 = vmul.f32 %v5654_v8, %v12546_v10 }
 0x2fa   :  { %v5668_v60 = vadd.f32 %v5667_v25, %v5665_v49  ;;  %v9034_v62 = vpop.f32.mrf.mxu1 }
 0x2fc   :  { %v5669_v43 = vadd.f32 %v5668_v60, %v5666_v4  ;;  %v5931_v30 = vpop.f32.mrf.mxu1 }
 0x2fe   :  { %v5670_v32 = vrot.slane %v5669_v43, 4  ;;  %v9011_v55 = vpop.f32.mrf.mxu0 }
 0x2ff   :  { %v5926_v56 = vadd.f32 %v9031_v42, %v9011_v55 }
 0x300   :  { %v5671_v11 = vadd.f32 %v5670_v32, %v5669_v43  ;;  %v5783_v58 = vpop.f32.mrf.mxu0 }
 0x301   :  { %v5920_v47 = vadd.f32 %v5919_v45, %v5783_v58 }
 0x302   :  { %v5672_v20 = vrot.slane %v5671_v11, 2 }
 0x303   :  { %v9014_v29 = vpop.f32.mrf.mxu0 }
 0x304   :  { %v5673_v44 = vadd.f32 %v5672_v20, %v5671_v11  ;;  %v5938_v24 = vadd.f32 %v9034_v62, %v9014_v29 }
 0x305   :  { %v5803_v9 = vpop.f32.mrf.mxu0 }
 0x306   :  { %v5674_v35 = vrot.slane %v5673_v44, 1  ;;  %v5932_v15 = vadd.f32 %v5931_v30, %v5803_v9 }
 0x307   :  { %v9071_v3 = vpop.f32.mrf.mxu1 }
 0x308   :  { %v5675_v18 = vadd.f32 %v5674_v35, %v5673_v44 }
 0x309   :  { %v6124_v61 = vpop.f32.mrf.mxu1 }
 0x30a   :  { %v12343_v27 = vsel %vm7075_vm15, %v7074_v14, %v5675_v18 }
 0x30c   :  { %v9074_v2 = vpop.f32.mrf.mxu1 }
 0x30e   :  { %v6140_v31 = vpop.f32.mrf.mxu1 }
 0x310   :  { %v9051_v39 = vpop.f32.mrf.mxu0 }
 0x311   :  { %v6031_v21 = vadd.f32 %v9051_v39, %v5926_v56 }
 0x312   :  { %v6023_v40 = vpop.f32.mrf.mxu0 }
 0x313   :  { %v6024_v23 = vadd.f32 %v6023_v40, %v5920_v47  ;;  %v6133_v50 = vadd.f32 %v9071_v3, %v6031_v21 }
 0x315   :  { %v9054_v17 = vpop.f32.mrf.mxu0  ;;  %v6125_v59 = vadd.f32 %v6124_v61, %v6024_v23 }
 0x316   :  { %v6045_v63 = vadd.f32 %v9054_v17, %v5938_v24 }
 0x317   :  { %v6037_v14 = vpop.f32.mrf.mxu0 }
 0x318   :  { %v6038_v41 = vadd.f32 %v6037_v14, %v5932_v15  ;;  %v6149_v0 = vadd.f32 %v9074_v2, %v6045_v63 }
 0x319   :  { %v9111_v33 = vpop.f32.mrf.mxu1 }
 0x31a   :  { %v6141_v48 = vadd.f32 %v6140_v31, %v6038_v41 }
 0x31b   :  { %v6336_v16 = vpop.f32.mrf.mxu1 }
 0x31e   :  { %v9114_v46 = vpop.f32.mrf.mxu1 }
 0x320   :  { %v6348_v7 = vpop.f32.mrf.mxu1 }
 0x322   :  { %v9091_v12 = vpop.f32.mrf.mxu0 }
 0x323   :  { %v6247_v26 = vadd.f32 %v9091_v12, %v6133_v50 }
 0x324   :  { %v6240_v36 = vpop.f32.mrf.mxu0 }
 0x325   :  { %v6343_v37 = vadd.f32 %v9111_v33, %v6247_v26  ;;  %v6241_v28 = vadd.f32 %v6240_v36, %v6125_v59 }
 0x327   :  { %v6337_v53 = vadd.f32 %v6336_v16, %v6241_v28  ;;  %v9094_v51 = vpop.f32.mrf.mxu0  ;;  %v6359_v5 = vmul.f32 %v6343_v37, %v10840_v38 }
 0x328   :  { %v6259_v19 = vadd.f32 %v9094_v51, %v6149_v0 }
 0x329   :  { %v6358_v54 = vmul.f32 %v6337_v53, %v10856_v52  ;;  %v6252_v34 = vpop.f32.mrf.mxu0 }
 0x32a   :  { %v6253_v6 = vadd.f32 %v6252_v34, %v6141_v48  ;;  %v6355_v1 = vadd.f32 %v9114_v46, %v6259_v19 }
 0x32b   :  { %v6362_v57 = vadd.f32 %v6359_v5, %v6358_v54  ;;  %v9151_v32 = vpop.f32.mrf.mxu1 }
 0x32c   :  { %v6349_v25 = vadd.f32 %v6348_v7, %v6253_v6  ;;  %v6361_v8 = vmul.f32 %v6355_v1, %v12543_v13 }
 0x32d   :  { %v6614_v42 = vpop.f32.mrf.mxu1 }
 0x32e   :  { %v6360_v22 = vmul.f32 %v6349_v25, %v12546_v10 }
 0x330   :  { %v6363_v49 = vadd.f32 %v6362_v57, %v6360_v22  ;;  %v9154_v45 = vpop.f32.mrf.mxu1 }
 0x332   :  { %v6364_v4 = vadd.f32 %v6363_v49, %v6361_v8  ;;  %v6626_v62 = vpop.f32.mrf.mxu1 }
 0x334   :  { %v6365_v60 = vrot.slane %v6364_v4, 4  ;;  %v9131_v44 = vpop.f32.mrf.mxu0 }
 0x335   :  { %v6621_v2 = vadd.f32 %v9151_v32, %v9131_v44 }
 0x336   :  { %v6366_v43 = vadd.f32 %v6365_v60, %v6364_v4  ;;  %v6478_v18 = vpop.f32.mrf.mxu0 }
 0x337   :  { %v6615_v47 = vadd.f32 %v6614_v42, %v6478_v18 }
 0x338   :  { %v6367_v11 = vrot.slane %v6366_v43, 2 }
 0x339   :  { %v9134_v29 = vpop.f32.mrf.mxu0 }
 0x33a   :  { %v6368_v20 = vadd.f32 %v6367_v11, %v6366_v43  ;;  %v6633_v23 = vadd.f32 %v9154_v45, %v9134_v29 }
 0x33b   :  { %v6498_v3 = vpop.f32.mrf.mxu0 }
 0x33c   :  { %v6369_v35 = vrot.slane %v6368_v20, 1  ;;  %v6627_v24 = vadd.f32 %v6626_v62, %v6498_v3 }
 0x33d   :  { %v9191_v30 = vpop.f32.mrf.mxu1 }
 0x33e   :  { %v6370_v55 = vadd.f32 %v6369_v35, %v6368_v20 }
 0x33f   :  { %v6819_v9 = vpop.f32.mrf.mxu1 }
 0x340   :  { %v7078_v58 = vsel %vm7077_vm1, %v12343_v27, %v6370_v55 }
 0x341   :  { %7079 = vst [vmem:[%s12364_s4] sm:$0xff] %v7078_v58 }
 0x342   :  { %v9194_v61 = vpop.f32.mrf.mxu1 }
 0x344   :  { %v6835_v56 = vpop.f32.mrf.mxu1 }
 0x346   :  { %v9171_v39 = vpop.f32.mrf.mxu0 }
 0x347   :  { %v6726_v31 = vadd.f32 %v9171_v39, %v6621_v2 }
 0x348   :  { %v6718_v40 = vpop.f32.mrf.mxu0 }
 0x349   :  { %v6719_v27 = vadd.f32 %v6718_v40, %v6615_v47  ;;  %v6828_v50 = vadd.f32 %v9191_v30, %v6726_v31 }
 0x34b   :  { %v9174_v17 = vpop.f32.mrf.mxu0  ;;  %v6820_v26 = vadd.f32 %v6819_v9, %v6719_v27 }
 0x34c   :  { %v6740_v14 = vadd.f32 %v9174_v17, %v6633_v23 }
 0x34d   :  { %v6732_v33 = vpop.f32.mrf.mxu0 }
 0x34e   :  { %v6733_v12 = vadd.f32 %v6732_v33, %v6627_v24  ;;  %v6844_v37 = vadd.f32 %v9194_v61, %v6740_v14 }
 0x34f   :  { %v9231_v21 = vpop.f32.mrf.mxu1 }
 0x350   :  { %v6836_v51 = vadd.f32 %v6835_v56, %v6733_v12 }
 0x351   :  { %v7031_v15 = vpop.f32.mrf.mxu1 }
 0x353   :  { %v9234_v28 = vpop.f32.mrf.mxu1 }
 0x355   :  { %v7043_v34 = vpop.f32.mrf.mxu1 }
 0x356   :  { %v9211_v63 = vpop.f32.mrf.mxu0 }
 0x357   :  { %v6942_v16 = vadd.f32 %v9211_v63, %v6828_v50 }
 0x358   :  { %v6935_v59 = vpop.f32.mrf.mxu0 }
 0x359   :  { %v7038_v41 = vadd.f32 %v9231_v21, %v6942_v16  ;;  %v6936_v36 = vadd.f32 %v6935_v59, %v6820_v26 }
 0x35a   :  { %v9214_v0 = vpop.f32.mrf.mxu0 }
 0x35b   :  { %v7032_v46 = vadd.f32 %v7031_v15, %v6936_v36  ;;  %v6954_v53 = vadd.f32 %v9214_v0, %v6844_v37  ;;  %v7054_v48 = vmul.f32 %v7038_v41, %v10840_v38 }
 0x35c   :  { %v6947_v19 = vpop.f32.mrf.mxu0 }
 0x35d   :  { %v7053_v5 = vmul.f32 %v7032_v46, %v10856_v52  ;;  %v6948_v54 = vadd.f32 %v6947_v19, %v6836_v51  ;;  %v7050_v7 = vadd.f32 %v9234_v28, %v6954_v53 }
 0x35f   :  { %v7057_v6 = vadd.f32 %v7054_v48, %v7053_v5  ;;  %v7044_v57 = vadd.f32 %v7043_v34, %v6948_v54  ;;  %v7056_v25 = vmul.f32 %v7050_v7, %v12543_v13 }
 0x361   :  { %v7055_v1 = vmul.f32 %v7044_v57, %v12546_v10 }
 0x363   :  { %v7058_v22 = vadd.f32 %v7057_v6, %v7055_v1 }
 0x365   :  { %v7059_v8 = vadd.f32 %v7058_v22, %v7056_v25 }
 0x367   :  { %v7060_v49 = vrot.slane %v7059_v8, 4 }
 0x369   :  { %v7061_v4 = vadd.f32 %v7060_v49, %v7059_v8 }
 0x36b   :  { %v7062_v60 = vrot.slane %v7061_v4, 2 }
 0x36d   :  { %v7063_v43 = vadd.f32 %v7062_v60, %v7061_v4 }
 0x36f   :  { %v7064_v32 = vrot.slane %v7063_v43, 1 }
 0x371   :  { %v7065_v11 = vadd.f32 %v7064_v32, %v7063_v43 }
 0x373   :  { %7080 = vst [vmem:[%s12364_s4 + $0x8] sm:$0x1] %v7065_v11 }

</bundles_post_ra>
